<compile_context>
chip_gen: v6e
topology: v6e:2x2x1
jax: 0.10.0
libtpu: 0.0.40
codegen_flags: <defaults>
</compile_context>

<pallas_src>
import functools
import math

import jax
import jax.numpy as jnp
from jax.experimental import pallas as pl
from jax.experimental.pallas import tpu as pltpu

_VMEM_LIMIT = 32 * 1024 * 1024  # safe on v5e/v6e (128 MiB) and v7x (64 MiB)


def _pick_row_tile(m):
    # Prefer MXU-friendly row tiles; fall back to the full extent for tiny M.
    for tm in (256, 128):
        if m % tm == 0:
            return tm
    return m


def _layernorm(h, g, b, eps):
    mu = jnp.mean(h, axis=-1, keepdims=True)
    d = h - mu
    var = jnp.mean(d * d, axis=-1, keepdims=True)
    return d * jax.lax.rsqrt(var + eps) * g + b


def _dot_nt(a, b):
    # (m, k) x (n, k) -> (m, n), contracting the last dims (no explicit transpose).
    return jax.lax.dot_general(a, b, (((1,), (1,)), ((), ())),
                               preferred_element_type=jnp.float32)


# --------------------------- fused transformer layer ------------------------ #

def _transformer_layer_kernel(x_ref, wqkv_ref, bqkv_ref, wo_ref, bo_ref,
                              ln1g_ref, ln1b_ref, w1_ref, b1_ref,
                              w2_ref, b2_ref, ln2g_ref, ln2b_ref,
                              o_ref, *, heads, eps):
    x = x_ref[0]                                   # (N, D) f32, resident in VMEM
    n, d = x.shape
    dh = d // heads
    scale = 1.0 / math.sqrt(dh)

    # fused QKV projection: one MXU pass against the (D, 3D) weight
    qkv = jnp.dot(x.astype(jnp.bfloat16), wqkv_ref[...],
                  preferred_element_type=jnp.float32) + bqkv_ref[...]
    q = qkv[:, :d] * scale                         # scale folded into Q
    k = qkv[:, d:2 * d]
    v = qkv[:, 2 * d:]

    # per-head attention, static slices, everything stays in VMEM/vregs
    head_outs = []
    for h in range(heads):
        sl = slice(h * dh, (h + 1) * dh)
        qh = q[:, sl].astype(jnp.bfloat16)
        kh = k[:, sl].astype(jnp.bfloat16)
        vh = v[:, sl].astype(jnp.bfloat16)
        s = _dot_nt(qh, kh)                        # (N, N) f32
        s = s - jnp.max(s, axis=-1, keepdims=True)
        p = jnp.exp(s)
        p = p * pl.reciprocal(jnp.sum(p, axis=-1, keepdims=True), approx=True)
        head_outs.append(jnp.dot(p.astype(jnp.bfloat16), vh,
                                 preferred_element_type=jnp.float32))
    attn = jnp.concatenate(head_outs, axis=-1)     # (N, D) f32

    # output projection + residual + LN1 (post-norm)
    attn = jnp.dot(attn.astype(jnp.bfloat16), wo_ref[...],
                   preferred_element_type=jnp.float32) + bo_ref[...]
    h1 = _layernorm(x + attn, ln1g_ref[...], ln1b_ref[...], eps)

    # FFN + residual + LN2
    f = jnp.dot(h1.astype(jnp.bfloat16), w1_ref[...],
                preferred_element_type=jnp.float32) + b1_ref[...]
    f = jnp.maximum(f, 0.0)
    f = jnp.dot(f.astype(jnp.bfloat16), w2_ref[...],
                preferred_element_type=jnp.float32) + b2_ref[...]
    h2 = _layernorm(h1 + f, ln2g_ref[...], ln2b_ref[...], eps)

    o_ref[0] = h2.astype(o_ref.dtype)


def transformer_layer(x, p, heads, eps=1e-5):
    B, N, D = x.shape

    def full2d(arr):
        return pl.BlockSpec(arr.shape, lambda b: (0, 0))

    xspec = pl.BlockSpec((1, N, D), lambda b: (b, 0, 0))
    args = (x, p["wqkv"], p["bqkv"], p["wo"], p["bo"],
            p["ln1_g"], p["ln1_b"], p["w1"], p["b1"],
            p["w2"], p["b2"], p["ln2_g"], p["ln2_b"])
    in_specs = [xspec] + [full2d(a) for a in args[1:]]

    return pl.pallas_call(
        functools.partial(_transformer_layer_kernel, heads=heads, eps=eps),
        out_shape=jax.ShapeDtypeStruct((B, N, D), jnp.float32),
        grid=(B,),
        in_specs=in_specs,
        out_specs=xspec,
        compiler_params=pltpu.CompilerParams(
            dimension_semantics=("parallel",),
            vmem_limit_bytes=_VMEM_LIMIT),
    )(*args)


# --------------------------------- linear ----------------------------------- #

def _linear_kernel(x_ref, w_ref, b_ref, o_ref, *, activation):
    y = jnp.dot(x_ref[...].astype(jnp.bfloat16), w_ref[...],
                preferred_element_type=jnp.float32) + b_ref[...]
    if activation == "relu":
        y = jnp.maximum(y, 0.0)
    o_ref[...] = y.astype(o_ref.dtype)


def linear(x, w, b, activation=None):
    M, K = x.shape
    N = w.shape[1]
    tm = _pick_row_tile(M)
    return pl.pallas_call(
        functools.partial(_linear_kernel, activation=activation),
        out_shape=jax.ShapeDtypeStruct((M, N), jnp.float32),
        grid=(M // tm,),
        in_specs=[pl.BlockSpec((tm, K), lambda i: (i, 0)),
                  pl.BlockSpec((K, N), lambda i: (0, 0)),
                  pl.BlockSpec((1, N), lambda i: (0, 0))],
        out_specs=pl.BlockSpec((tm, N), lambda i: (i, 0)),
        compiler_params=pltpu.CompilerParams(
            dimension_semantics=("parallel",),
            vmem_limit_bytes=_VMEM_LIMIT),
    )(x, w, b)


# ----------------------------- vector quantize ------------------------------ #

def _vq_kernel(z_ref, cb_ref, zq_ref, codes_ref, loss_ref, acc_ref, *,
               commitment_weight, total_elems):
    i = pl.program_id(0)

    @pl.when(i == 0)
    def _():
        acc_ref[...] = jnp.zeros_like(acc_ref)

    z = z_ref[...]                                 # (tm, D) f32
    cb = cb_ref[...]                               # (C, D) f32 (resident)
    tm = z.shape[0]
    C = cb.shape[0]

    z_sq = jnp.sum(z * z, axis=1, keepdims=True)                  # (tm, 1)
    cb_sq = jnp.sum(cb * cb, axis=1, keepdims=True).T             # (1, C)
    dots = _dot_nt(z, cb)                                         # (tm, C) f32
    dist = z_sq - 2.0 * dots + cb_sq
    codes = jnp.argmin(dist, axis=1).astype(jnp.int32)            # (tm,)

    # gather-free exact codebook lookup (kept f32 on purpose)
    onehot = (jax.lax.broadcasted_iota(jnp.int32, (tm, C), 1)
              == codes[:, None]).astype(jnp.float32)
    z_q = jnp.dot(onehot, cb, preferred_element_type=jnp.float32)

    diff = z - z_q
    acc_ref[...] += jnp.sum(diff * diff).reshape(1, 1)

    zq_ref[...] = z_q
    codes_ref[...] = codes[:, None]

    @pl.when(i == pl.num_programs(0) - 1)
    def _():
        loss_ref[...] = acc_ref[...] * (commitment_weight / total_elems)


def vector_quantize(z2d, codebook, commitment_weight=0.25):
    M, D = z2d.shape
    C = codebook.shape[0]
    tm = _pick_row_tile(M)
    z_q, codes, loss = pl.pallas_call(
        functools.partial(_vq_kernel, commitment_weight=commitment_weight,
                          total_elems=float(M * D)),
        out_shape=(
            jax.ShapeDtypeStruct((M, D), jnp.float32),
            jax.ShapeDtypeStruct((M, 1), jnp.int32),
            jax.ShapeDtypeStruct((1, 1), jnp.float32),
        ),
        grid=(M // tm,),
        in_specs=[pl.BlockSpec((tm, D), lambda i: (i, 0)),
                  pl.BlockSpec((C, D), lambda i: (0, 0))],
        out_specs=(pl.BlockSpec((tm, D), lambda i: (i, 0)),
                   pl.BlockSpec((tm, 1), lambda i: (i, 0)),
                   pl.BlockSpec((1, 1), lambda i: (0, 0))),
        scratch_shapes=[pltpu.VMEM((1, 1), jnp.float32)],
        compiler_params=pltpu.CompilerParams(
            dimension_semantics=("arbitrary",),   # loss accumulates across tiles
            vmem_limit_bytes=_VMEM_LIMIT),
    )(z2d, codebook)
    return z_q, codes.reshape(M), loss[0, 0]


# ------------------------------ model forward ------------------------------- #

def vqvae_forward(params, x, *, patch_size, heads, commitment_weight=0.25):
    B, G = x.shape
    # --- VQEncoder: PatchEmbedding ---
    pad_len = (-G) % patch_size
    xpad = jnp.pad(x, ((0, 0), (0, pad_len)))
    n_patch = (G + pad_len) // patch_size
    xp = xpad.reshape(B * n_patch, patch_size)
    z = linear(xp, params["patch_w"], params["patch_b"])
    z = z.reshape(B, n_patch, -1)
    D = z.shape[-1]

    # --- TransformerEncoder (fused layer kernels) ---
    for lp in params["enc_layers"]:
        z = transformer_layer(z, lp, heads)

    # --- VectorQuantize ---
    z_q2d, codes, vq_loss = vector_quantize(
        z.reshape(B * n_patch, D), params["codebook"], commitment_weight)
    z_q = z_q2d.reshape(B, n_patch, D)

    # --- VQDecoder: TransformerDecoder + projector + trim ---
    y = z_q
    for lp in params["dec_layers"]:
        y = transformer_layer(y, lp, heads)
    y2d = linear(y.reshape(B * n_patch, D), params["proj_w"], params["proj_b"])
    y = y2d.reshape(B, n_patch * patch_size)[:, :G]
    return y, vq_loss


# ------------------------------ parameter init ------------------------------ #

def init_params(key, patch_size, embed_dim, encoder_layers, decoder_layers,
                heads, n_codebook):
    n_layers = encoder_layers + decoder_layers
    keys = jax.random.split(key, 3 + n_layers)

    def dense(k, fan_in, fan_out):
        w = (jax.random.normal(k, (fan_in, fan_out), jnp.float32)
             / math.sqrt(fan_in)).astype(jnp.bfloat16)   # bf16 MXU operand
        b = jnp.zeros((1, fan_out), jnp.float32)
        return w, b

    params = {}
    params["patch_w"], params["patch_b"] = dense(keys[0], patch_size, embed_dim)
    params["proj_w"], params["proj_b"] = dense(keys[1], embed_dim, patch_size)
    params["codebook"] = jax.random.normal(
        keys[2], (n_codebook, embed_dim), jnp.float32)

    ffn_dim = 4 * embed_dim

    def make_layer(k):
        lk = jax.random.split(k, 6)
        wq, _ = dense(lk[0], embed_dim, embed_dim)
        wk, _ = dense(lk[1], embed_dim, embed_dim)
        wv, _ = dense(lk[2], embed_dim, embed_dim)
        wo, bo = dense(lk[3], embed_dim, embed_dim)
        w1, b1 = dense(lk[4], embed_dim, ffn_dim)
        w2, b2 = dense(lk[5], ffn_dim, embed_dim)
        return {
            "wqkv": jnp.concatenate([wq, wk, wv], axis=1),     # (D, 3D) bf16
            "bqkv": jnp.zeros((1, 3 * embed_dim), jnp.float32),
            "wo": wo, "bo": bo,
            "ln1_g": jnp.ones((1, embed_dim), jnp.float32),
            "ln1_b": jnp.zeros((1, embed_dim), jnp.float32),
            "w1": w1, "b1": b1, "w2": w2, "b2": b2,
            "ln2_g": jnp.ones((1, embed_dim), jnp.float32),
            "ln2_b": jnp.zeros((1, embed_dim), jnp.float32),
        }

    params["enc_layers"] = [make_layer(keys[3 + i])
                            for i in range(encoder_layers)]
    params["dec_layers"] = [make_layer(keys[3 + encoder_layers + i])
                            for i in range(decoder_layers)]
    return params


# ----------------------------------- main ----------------------------------- #

if __name__ == "__main__":
    # small, module-consistent shapes
    BATCH = 2
    GENE_DIM = 200        # padded to 256 -> 4 patches of 64
    PATCH_SIZE = 64
    EMBED_DIM = 128
    ENC_LAYERS = 2
    DEC_LAYERS = 2
    HEADS = 4
    N_CODEBOOK = 256

    root = jax.random.PRNGKey(0)
    k_params, k_x = jax.random.split(root)

    params = init_params(k_params, PATCH_SIZE, EMBED_DIM,
                         ENC_LAYERS, DEC_LAYERS, HEADS, N_CODEBOOK)
    x = jax.random.normal(k_x, (BATCH, GENE_DIM), jnp.float32)

    fwd = jax.jit(functools.partial(
        vqvae_forward, patch_size=PATCH_SIZE, heads=HEADS,
        commitment_weight=0.25))

    y, vq_loss = fwd(params, x)
    jax.block_until_ready((y, vq_loss))

    assert y.shape == (BATCH, GENE_DIM)
    assert vq_loss.shape == ()
    assert bool(jnp.isfinite(vq_loss))

    print("KERNEL_OK")
</pallas_src>

<mosaic_0001>
module attributes {stable_mosaic.version = 11 : i64} {
  func.func @_linear_kernel(%arg0: i32, %arg1: memref<8x64xf32, #tpu.memory_space<vmem>>, %arg2: memref<64x128xbf16, #tpu.memory_space<vmem>>, %arg3: memref<1x128xf32, #tpu.memory_space<vmem>>, %arg4: memref<8x128xf32, #tpu.memory_space<vmem>>) attributes {dimension_semantics = [#tpu.dimension_semantics<parallel>], iteration_bounds = array<i64: 1>, scalar_prefetch = 0 : i64, scratch_operands = 0 : i64, tpu.core_type = #tpu.core_type<tc>, window_params = [{transform_indices = @transform_0, window_bounds = array<i64: 8, 64>}, {pipeline_mode = #tpu.pipeline_mode<synchronous>, transform_indices = @transform_1, window_bounds = array<i64: 64, 128>}, {pipeline_mode = #tpu.pipeline_mode<synchronous>, transform_indices = @transform_2, window_bounds = array<i64: 1, 128>}, {transform_indices = @transform_3, window_bounds = array<i64: 8, 128>}]} {
    %c0 = arith.constant 0 : index
    %c0_0 = arith.constant 0 : index
    %0 = vector.load %arg1[%c0, %c0_0] : memref<8x64xf32, #tpu.memory_space<vmem>>, vector<8x64xf32>
    %1 = arith.truncf %0 : vector<8x64xf32> to vector<8x64xbf16>
    %c0_1 = arith.constant 0 : index
    %c0_2 = arith.constant 0 : index
    %2 = vector.load %arg2[%c0_1, %c0_2] : memref<64x128xbf16, #tpu.memory_space<vmem>>, vector<64x128xbf16>
    %cst = arith.constant dense<0.000000e+00> : vector<8x128xf32>
    %3 = tpu.matmul %1, %2, %cst {dimension_numbers = #tpu.dot_dimension_numbers<[1], [0], [0], [1], [0, 0, 1, 1], [], []>} : vector<8x64xbf16>, vector<64x128xbf16>, vector<8x128xf32> -> vector<8x128xf32>
    %c0_3 = arith.constant 0 : index
    %c0_4 = arith.constant 0 : index
    %4 = vector.load %arg3[%c0_3, %c0_4] : memref<1x128xf32, #tpu.memory_space<vmem>>, vector<1x128xf32>
    %5 = vector.broadcast %4 : vector<1x128xf32> to vector<8x128xf32>
    %6 = arith.addf %3, %5 : vector<8x128xf32>
    %c0_5 = arith.constant 0 : index
    %c0_6 = arith.constant 0 : index
    %7 = vector.load %arg4[%c0_5, %c0_6] : memref<8x128xf32, #tpu.memory_space<vmem>>, vector<8x128xf32>
    tpu.vector_store %arg4[%c0_5, %c0_6], %6 {strides = array<i32>} : memref<8x128xf32, #tpu.memory_space<vmem>>, vector<8x128xf32>,
    return
  }
  func.func @transform_0(%arg0: i32) -> (i32, i32) {
    %c0_i32 = arith.constant 0 : i32
    %c0_i32_0 = arith.constant 0 : i32
    return %arg0, %c0_i32 : i32, i32
  }
  func.func @transform_1(%arg0: i32) -> (i32, i32) {
    %c0_i32 = arith.constant 0 : i32
    %c0_i32_0 = arith.constant 0 : i32
    %c0_i32_1 = arith.constant 0 : i32
    return %c0_i32, %c0_i32_0 : i32, i32
  }
  func.func @transform_2(%arg0: i32) -> (i32, i32) {
    %c0_i32 = arith.constant 0 : i32
    %c0_i32_0 = arith.constant 0 : i32
    %c0_i32_1 = arith.constant 0 : i32
    return %c0_i32, %c0_i32_0 : i32, i32
  }
  func.func @transform_3(%arg0: i32) -> (i32, i32) {
    %c0_i32 = arith.constant 0 : i32
    %c0_i32_0 = arith.constant 0 : i32
    return %arg0, %c0_i32 : i32, i32
  }
}

module attributes {stable_mosaic.version = 11 : i64} {
  func.func @_transformer_layer_kernel(%arg0: i32, %arg1: memref<1x4x128xf32, #tpu.memory_space<vmem>>, %arg2: memref<128x384xbf16, #tpu.memory_space<vmem>>, %arg3: memref<1x384xf32, #tpu.memory_space<vmem>>, %arg4: memref<128x128xbf16, #tpu.memory_space<vmem>>, %arg5: memref<1x128xf32, #tpu.memory_space<vmem>>, %arg6: memref<1x128xf32, #tpu.memory_space<vmem>>, %arg7: memref<1x128xf32, #tpu.memory_space<vmem>>, %arg8: memref<128x512xbf16, #tpu.memory_space<vmem>>, %arg9: memref<1x512xf32, #tpu.memory_space<vmem>>, %arg10: memref<512x128xbf16, #tpu.memory_space<vmem>>, %arg11: memref<1x128xf32, #tpu.memory_space<vmem>>, %arg12: memref<1x128xf32, #tpu.memory_space<vmem>>, %arg13: memref<1x128xf32, #tpu.memory_space<vmem>>, %arg14: memref<1x4x128xf32, #tpu.memory_space<vmem>>) attributes {dimension_semantics = [#tpu.dimension_semantics<parallel>], iteration_bounds = array<i64: 2>, scalar_prefetch = 0 : i64, scratch_operands = 0 : i64, tpu.core_type = #tpu.core_type<tc>, window_params = [{transform_indices = @transform_0, window_bounds = array<i64: 1, 4, 128>}, {pipeline_mode = #tpu.pipeline_mode<synchronous>, transform_indices = @transform_1, window_bounds = array<i64: 128, 384>}, {pipeline_mode = #tpu.pipeline_mode<synchronous>, transform_indices = @transform_2, window_bounds = array<i64: 1, 384>}, {pipeline_mode = #tpu.pipeline_mode<synchronous>, transform_indices = @transform_3, window_bounds = array<i64: 128, 128>}, {pipeline_mode = #tpu.pipeline_mode<synchronous>, transform_indices = @transform_4, window_bounds = array<i64: 1, 128>}, {pipeline_mode = #tpu.pipeline_mode<synchronous>, transform_indices = @transform_5, window_bounds = array<i64: 1, 128>}, {pipeline_mode = #tpu.pipeline_mode<synchronous>, transform_indices = @transform_6, window_bounds = array<i64: 1, 128>}, {pipeline_mode = #tpu.pipeline_mode<synchronous>, transform_indices = @transform_7, window_bounds = array<i64: 128, 512>}, {pipeline_mode = #tpu.pipeline_mode<synchronous>, transform_indices = @transform_8, window_bounds = array<i64: 1, 512>}, {pipeline_mode = #tpu.pipeline_mode<synchronous>, transform_indices = @transform_9, window_bounds = array<i64: 512, 128>}, {pipeline_mode = #tpu.pipeline_mode<synchronous>, transform_indices = @transform_10, window_bounds = array<i64: 1, 128>}, {pipeline_mode = #tpu.pipeline_mode<synchronous>, transform_indices = @transform_11, window_bounds = array<i64: 1, 128>}, {pipeline_mode = #tpu.pipeline_mode<synchronous>, transform_indices = @transform_12, window_bounds = array<i64: 1, 128>}, {transform_indices = @transform_13, window_bounds = array<i64: 1, 4, 128>}]} {
    %c0 = arith.constant 0 : index
    %c0_0 = arith.constant 0 : index
    %c0_1 = arith.constant 0 : index
    %0 = vector.load %arg1[%c0, %c0_0, %c0_1] : memref<1x4x128xf32, #tpu.memory_space<vmem>>, vector<1x4x128xf32>
    %1 = vector.shape_cast %0 : vector<1x4x128xf32> to vector<4x128xf32>
    %2 = arith.truncf %1 : vector<4x128xf32> to vector<4x128xbf16>
    %c0_2 = arith.constant 0 : index
    %c0_3 = arith.constant 0 : index
    %3 = vector.load %arg2[%c0_2, %c0_3] : memref<128x384xbf16, #tpu.memory_space<vmem>>, vector<128x384xbf16>
    %cst = arith.constant dense<0.000000e+00> : vector<4x384xf32>
    %4 = tpu.matmul %2, %3, %cst {dimension_numbers = #tpu.dot_dimension_numbers<[1], [0], [0], [1], [0, 0, 1, 1], [], []>} : vector<4x128xbf16>, vector<128x384xbf16>, vector<4x384xf32> -> vector<4x384xf32>
    %c0_4 = arith.constant 0 : index
    %c0_5 = arith.constant 0 : index
    %5 = vector.load %arg3[%c0_4, %c0_5] : memref<1x384xf32, #tpu.memory_space<vmem>>, vector<1x384xf32>
    %6 = vector.broadcast %5 : vector<1x384xf32> to vector<4x384xf32>
    %7 = arith.addf %4, %6 : vector<4x384xf32>
    %8 = vector.extract_strided_slice %7 {offsets = [0, 0], sizes = [4, 128], strides = [1, 1]} : vector<4x384xf32> to vector<4x128xf32>
    %cst_6 = arith.constant 0.176776692 : f32
    %9 = vector.broadcast %cst_6 : f32 to vector<4x128xf32>
    %10 = arith.mulf %8, %9 : vector<4x128xf32>
    %11 = vector.extract_strided_slice %7 {offsets = [0, 128], sizes = [4, 128], strides = [1, 1]} : vector<4x384xf32> to vector<4x128xf32>
    %12 = vector.extract_strided_slice %7 {offsets = [0, 256], sizes = [4, 128], strides = [1, 1]} : vector<4x384xf32> to vector<4x128xf32>
    %13 = vector.extract_strided_slice %10 {offsets = [0, 0], sizes = [4, 32], strides = [1, 1]} : vector<4x128xf32> to vector<4x32xf32>
    %14 = arith.truncf %13 : vector<4x32xf32> to vector<4x32xbf16>
    %15 = vector.extract_strided_slice %11 {offsets = [0, 0], sizes = [4, 32], strides = [1, 1]} : vector<4x128xf32> to vector<4x32xf32>
    %16 = arith.truncf %15 : vector<4x32xf32> to vector<4x32xbf16>
    %17 = vector.extract_strided_slice %12 {offsets = [0, 0], sizes = [4, 32], strides = [1, 1]} : vector<4x128xf32> to vector<4x32xf32>
    %18 = arith.truncf %17 : vector<4x32xf32> to vector<4x32xbf16>
    %cst_7 = arith.constant dense<0.000000e+00> : vector<4x4xf32>
    %19 = tpu.matmul %14, %16, %cst_7 {dimension_numbers = #tpu.dot_dimension_numbers<[1], [1], [0], [0], [0, 0, 1, 0], [], []>} : vector<4x32xbf16>, vector<4x32xbf16>, vector<4x4xf32> -> vector<4x4xf32>
    %cst_8 = arith.constant dense<0xFF800000> : vector<4xf32>
    %20 = vector.multi_reduction <maximumf>, %19, %cst_8 [1] : vector<4x4xf32> to vector<4xf32>
    %21 = vector.shape_cast %20 : vector<4xf32> to vector<4x1xf32>
    %22 = vector.broadcast %21 : vector<4x1xf32> to vector<4x4xf32>
    %23 = arith.subf %19, %22 : vector<4x4xf32>
    %24 = math.exp %23 : vector<4x4xf32>
    %cst_9 = arith.constant dense<0.000000e+00> : vector<4xf32>
    %25 = vector.multi_reduction <add>, %24, %cst_9 [1] : vector<4x4xf32> to vector<4xf32>
    %26 = vector.shape_cast %25 : vector<4xf32> to vector<4x1xf32>
    %27 = tpu.reciprocal %26 {approx = true} : vector<4x1xf32> -> vector<4x1xf32>
    %28 = vector.broadcast %27 : vector<4x1xf32> to vector<4x4xf32>
    %29 = arith.mulf %24, %28 : vector<4x4xf32>
    %30 = arith.truncf %29 : vector<4x4xf32> to vector<4x4xbf16>
    %cst_10 = arith.constant dense<0.000000e+00> : vector<4x32xf32>
    %31 = tpu.matmul %30, %18, %cst_10 {dimension_numbers = #tpu.dot_dimension_numbers<[1], [0], [0], [1], [0, 0, 1, 1], [], []>} : vector<4x4xbf16>, vector<4x32xbf16>, vector<4x32xf32> -> vector<4x32xf32>
    %32 = vector.extract_strided_slice %10 {offsets = [0, 32], sizes = [4, 32], strides = [1, 1]} : vector<4x128xf32> to vector<4x32xf32>
    %33 = arith.truncf %32 : vector<4x32xf32> to vector<4x32xbf16>
    %34 = vector.extract_strided_slice %11 {offsets = [0, 32], sizes = [4, 32], strides = [1, 1]} : vector<4x128xf32> to vector<4x32xf32>
    %35 = arith.truncf %34 : vector<4x32xf32> to vector<4x32xbf16>
    %36 = vector.extract_strided_slice %12 {offsets = [0, 32], sizes = [4, 32], strides = [1, 1]} : vector<4x128xf32> to vector<4x32xf32>
    %37 = arith.truncf %36 : vector<4x32xf32> to vector<4x32xbf16>
    %cst_11 = arith.constant dense<0.000000e+00> : vector<4x4xf32>
    %38 = tpu.matmul %33, %35, %cst_11 {dimension_numbers = #tpu.dot_dimension_numbers<[1], [1], [0], [0], [0, 0, 1, 0], [], []>} : vector<4x32xbf16>, vector<4x32xbf16>, vector<4x4xf32> -> vector<4x4xf32>
    %cst_12 = arith.constant dense<0xFF800000> : vector<4xf32>
    %39 = vector.multi_reduction <maximumf>, %38, %cst_12 [1] : vector<4x4xf32> to vector<4xf32>
    %40 = vector.shape_cast %39 : vector<4xf32> to vector<4x1xf32>
    %41 = vector.broadcast %40 : vector<4x1xf32> to vector<4x4xf32>
    %42 = arith.subf %38, %41 : vector<4x4xf32>
    %43 = math.exp %42 : vector<4x4xf32>
    %cst_13 = arith.constant dense<0.000000e+00> : vector<4xf32>
    %44 = vector.multi_reduction <add>, %43, %cst_13 [1] : vector<4x4xf32> to vector<4xf32>
    %45 = vector.shape_cast %44 : vector<4xf32> to vector<4x1xf32>
    %46 = tpu.reciprocal %45 {approx = true} : vector<4x1xf32> -> vector<4x1xf32>
    %47 = vector.broadcast %46 : vector<4x1xf32> to vector<4x4xf32>
    %48 = arith.mulf %43, %47 : vector<4x4xf32>
    %49 = arith.truncf %48 : vector<4x4xf32> to vector<4x4xbf16>
    %cst_14 = arith.constant dense<0.000000e+00> : vector<4x32xf32>
    %50 = tpu.matmul %49, %37, %cst_14 {dimension_numbers = #tpu.dot_dimension_numbers<[1], [0], [0], [1], [0, 0, 1, 1], [], []>} : vector<4x4xbf16>, vector<4x32xbf16>, vector<4x32xf32> -> vector<4x32xf32>
    %51 = vector.extract_strided_slice %10 {offsets = [0, 64], sizes = [4, 32], strides = [1, 1]} : vector<4x128xf32> to vector<4x32xf32>
    %52 = arith.truncf %51 : vector<4x32xf32> to vector<4x32xbf16>
    %53 = vector.extract_strided_slice %11 {offsets = [0, 64], sizes = [4, 32], strides = [1, 1]} : vector<4x128xf32> to vector<4x32xf32>
    %54 = arith.truncf %53 : vector<4x32xf32> to vector<4x32xbf16>
    %55 = vector.extract_strided_slice %12 {offsets = [0, 64], sizes = [4, 32], strides = [1, 1]} : vector<4x128xf32> to vector<4x32xf32>
    %56 = arith.truncf %55 : vector<4x32xf32> to vector<4x32xbf16>
    %cst_15 = arith.constant dense<0.000000e+00> : vector<4x4xf32>
    %57 = tpu.matmul %52, %54, %cst_15 {dimension_numbers = #tpu.dot_dimension_numbers<[1], [1], [0], [0], [0, 0, 1, 0], [], []>} : vector<4x32xbf16>, vector<4x32xbf16>, vector<4x4xf32> -> vector<4x4xf32>
    %cst_16 = arith.constant dense<0xFF800000> : vector<4xf32>
    %58 = vector.multi_reduction <maximumf>, %57, %cst_16 [1] : vector<4x4xf32> to vector<4xf32>
    %59 = vector.shape_cast %58 : vector<4xf32> to vector<4x1xf32>
    %60 = vector.broadcast %59 : vector<4x1xf32> to vector<4x4xf32>
    %61 = arith.subf %57, %60 : vector<4x4xf32>
    %62 = math.exp %61 : vector<4x4xf32>
    %cst_17 = arith.constant dense<0.000000e+00> : vector<4xf32>
    %63 = vector.multi_reduction <add>, %62, %cst_17 [1] : vector<4x4xf32> to vector<4xf32>
    %64 = vector.shape_cast %63 : vector<4xf32> to vector<4x1xf32>
    %65 = tpu.reciprocal %64 {approx = true} : vector<4x1xf32> -> vector<4x1xf32>
    %66 = vector.broadcast %65 : vector<4x1xf32> to vector<4x4xf32>
    %67 = arith.mulf %62, %66 : vector<4x4xf32>
    %68 = arith.truncf %67 : vector<4x4xf32> to vector<4x4xbf16>
    %cst_18 = arith.constant dense<0.000000e+00> : vector<4x32xf32>
    %69 = tpu.matmul %68, %56, %cst_18 {dimension_numbers = #tpu.dot_dimension_numbers<[1], [0], [0], [1], [0, 0, 1, 1], [], []>} : vector<4x4xbf16>, vector<4x32xbf16>, vector<4x32xf32> -> vector<4x32xf32>
    %70 = vector.extract_strided_slice %10 {offsets = [0, 96], sizes = [4, 32], strides = [1, 1]} : vector<4x128xf32> to vector<4x32xf32>
    %71 = arith.truncf %70 : vector<4x32xf32> to vector<4x32xbf16>
    %72 = vector.extract_strided_slice %11 {offsets = [0, 96], sizes = [4, 32], strides = [1, 1]} : vector<4x128xf32> to vector<4x32xf32>
    %73 = arith.truncf %72 : vector<4x32xf32> to vector<4x32xbf16>
    %74 = vector.extract_strided_slice %12 {offsets = [0, 96], sizes = [4, 32], strides = [1, 1]} : vector<4x128xf32> to vector<4x32xf32>
    %75 = arith.truncf %74 : vector<4x32xf32> to vector<4x32xbf16>
    %cst_19 = arith.constant dense<0.000000e+00> : vector<4x4xf32>
    %76 = tpu.matmul %71, %73, %cst_19 {dimension_numbers = #tpu.dot_dimension_numbers<[1], [1], [0], [0], [0, 0, 1, 0], [], []>} : vector<4x32xbf16>, vector<4x32xbf16>, vector<4x4xf32> -> vector<4x4xf32>
    %cst_20 = arith.constant dense<0xFF800000> : vector<4xf32>
    %77 = vector.multi_reduction <maximumf>, %76, %cst_20 [1] : vector<4x4xf32> to vector<4xf32>
    %78 = vector.shape_cast %77 : vector<4xf32> to vector<4x1xf32>
    %79 = vector.broadcast %78 : vector<4x1xf32> to vector<4x4xf32>
    %80 = arith.subf %76, %79 : vector<4x4xf32>
    %81 = math.exp %80 : vector<4x4xf32>
    %cst_21 = arith.constant dense<0.000000e+00> : vector<4xf32>
    %82 = vector.multi_reduction <add>, %81, %cst_21 [1] : vector<4x4xf32> to vector<4xf32>
    %83 = vector.shape_cast %82 : vector<4xf32> to vector<4x1xf32>
    %84 = tpu.reciprocal %83 {approx = true} : vector<4x1xf32> -> vector<4x1xf32>
    %85 = vector.broadcast %84 : vector<4x1xf32> to vector<4x4xf32>
    %86 = arith.mulf %81, %85 : vector<4x4xf32>
    %87 = arith.truncf %86 : vector<4x4xf32> to vector<4x4xbf16>
    %cst_22 = arith.constant dense<0.000000e+00> : vector<4x32xf32>
    %88 = tpu.matmul %87, %75, %cst_22 {dimension_numbers = #tpu.dot_dimension_numbers<[1], [0], [0], [1], [0, 0, 1, 1], [], []>} : vector<4x4xbf16>, vector<4x32xbf16>, vector<4x32xf32> -> vector<4x32xf32>
    %89 = tpu.concatenate %31, %50, %69, %88 in 1 : vector<4x32xf32>, vector<4x32xf32>, vector<4x32xf32>, vector<4x32xf32> -> vector<4x128xf32>
    %90 = arith.truncf %89 : vector<4x128xf32> to vector<4x128xbf16>
    %c0_23 = arith.constant 0 : index
    %c0_24 = arith.constant 0 : index
    %91 = vector.load %arg4[%c0_23, %c0_24] : memref<128x128xbf16, #tpu.memory_space<vmem>>, vector<128x128xbf16>
    %cst_25 = arith.constant dense<0.000000e+00> : vector<4x128xf32>
    %92 = tpu.matmul %90, %91, %cst_25 {dimension_numbers = #tpu.dot_dimension_numbers<[1], [0], [0], [1], [0, 0, 1, 1], [], []>} : vector<4x128xbf16>, vector<128x128xbf16>, vector<4x128xf32> -> vector<4x128xf32>
    %c0_26 = arith.constant 0 : index
    %c0_27 = arith.constant 0 : index
    %93 = vector.load %arg5[%c0_26, %c0_27] : memref<1x128xf32, #tpu.memory_space<vmem>>, vector<1x128xf32>
    %94 = vector.broadcast %93 : vector<1x128xf32> to vector<4x128xf32>
    %95 = arith.addf %92, %94 : vector<4x128xf32>
    %96 = arith.addf %1, %95 : vector<4x128xf32>
    %c0_28 = arith.constant 0 : index
    %c0_29 = arith.constant 0 : index
    %97 = vector.load %arg6[%c0_28, %c0_29] : memref<1x128xf32, #tpu.memory_space<vmem>>, vector<1x128xf32>
    %c0_30 = arith.constant 0 : index
    %c0_31 = arith.constant 0 : index
    %98 = vector.load %arg7[%c0_30, %c0_31] : memref<1x128xf32, #tpu.memory_space<vmem>>, vector<1x128xf32>
    %cst_32 = arith.constant dense<0.000000e+00> : vector<4xf32>
    %99 = vector.multi_reduction <add>, %96, %cst_32 [1] : vector<4x128xf32> to vector<4xf32>
    %100 = vector.shape_cast %99 : vector<4xf32> to vector<4x1xf32>
    %cst_33 = arith.constant 1.280000e+02 : f32
    %101 = vector.broadcast %cst_33 : f32 to vector<4x1xf32>
    %102 = arith.divf %100, %101 : vector<4x1xf32>
    %103 = vector.broadcast %102 : vector<4x1xf32> to vector<4x128xf32>
    %104 = arith.subf %96, %103 : vector<4x128xf32>
    %105 = arith.mulf %104, %104 : vector<4x128xf32>
    %cst_34 = arith.constant dense<0.000000e+00> : vector<4xf32>
    %106 = vector.multi_reduction <add>, %105, %cst_34 [1] : vector<4x128xf32> to vector<4xf32>
    %107 = vector.shape_cast %106 : vector<4xf32> to vector<4x1xf32>
    %cst_35 = arith.constant 1.280000e+02 : f32
    %108 = vector.broadcast %cst_35 : f32 to vector<4x1xf32>
    %109 = arith.divf %107, %108 : vector<4x1xf32>
    %cst_36 = arith.constant 9.99999974E-6 : f32
    %110 = vector.broadcast %cst_36 : f32 to vector<4x1xf32>
    %111 = arith.addf %109, %110 : vector<4x1xf32>
    %112 = math.rsqrt %111 : vector<4x1xf32>
    %113 = vector.broadcast %112 : vector<4x1xf32> to vector<4x128xf32>
    %114 = arith.mulf %104, %113 : vector<4x128xf32>
    %115 = vector.broadcast %97 : vector<1x128xf32> to vector<4x128xf32>
    %116 = arith.mulf %114, %115 : vector<4x128xf32>
    %117 = vector.broadcast %98 : vector<1x128xf32> to vector<4x128xf32>
    %118 = arith.addf %116, %117 : vector<4x128xf32>
    %119 = arith.truncf %118 : vector<4x128xf32> to vector<4x128xbf16>
    %c0_37 = arith.constant 0 : index
    %c0_38 = arith.constant 0 : index
    %120 = vector.load %arg8[%c0_37, %c0_38] : memref<128x512xbf16, #tpu.memory_space<vmem>>, vector<128x512xbf16>
    %cst_39 = arith.constant dense<0.000000e+00> : vector<4x512xf32>
    %121 = tpu.matmul %119, %120, %cst_39 {dimension_numbers = #tpu.dot_dimension_numbers<[1], [0], [0], [1], [0, 0, 1, 1], [], []>} : vector<4x128xbf16>, vector<128x512xbf16>, vector<4x512xf32> -> vector<4x512xf32>
    %c0_40 = arith.constant 0 : index
    %c0_41 = arith.constant 0 : index
    %122 = vector.load %arg9[%c0_40, %c0_41] : memref<1x512xf32, #tpu.memory_space<vmem>>, vector<1x512xf32>
    %123 = vector.broadcast %122 : vector<1x512xf32> to vector<4x512xf32>
    %124 = arith.addf %121, %123 : vector<4x512xf32>
    %cst_42 = arith.constant 0.000000e+00 : f32
    %125 = vector.broadcast %cst_42 : f32 to vector<4x512xf32>
    %126 = arith.maximumf %124, %125 : vector<4x512xf32>
    %127 = arith.truncf %126 : vector<4x512xf32> to vector<4x512xbf16>
    %c0_43 = arith.constant 0 : index
    %c0_44 = arith.constant 0 : index
    %128 = vector.load %arg10[%c0_43, %c0_44] : memref<512x128xbf16, #tpu.memory_space<vmem>>, vector<512x128xbf16>
    %cst_45 = arith.constant dense<0.000000e+00> : vector<4x128xf32>
    %129 = tpu.matmul %127, %128, %cst_45 {dimension_numbers = #tpu.dot_dimension_numbers<[1], [0], [0], [1], [0, 0, 1, 1], [], []>} : vector<4x512xbf16>, vector<512x128xbf16>, vector<4x128xf32> -> vector<4x128xf32>
    %c0_46 = arith.constant 0 : index
    %c0_47 = arith.constant 0 : index
    %130 = vector.load %arg11[%c0_46, %c0_47] : memref<1x128xf32, #tpu.memory_space<vmem>>, vector<1x128xf32>
    %131 = vector.broadcast %130 : vector<1x128xf32> to vector<4x128xf32>
    %132 = arith.addf %129, %131 : vector<4x128xf32>
    %133 = arith.addf %118, %132 : vector<4x128xf32>
    %c0_48 = arith.constant 0 : index
    %c0_49 = arith.constant 0 : index
    %134 = vector.load %arg12[%c0_48, %c0_49] : memref<1x128xf32, #tpu.memory_space<vmem>>, vector<1x128xf32>
    %c0_50 = arith.constant 0 : index
    %c0_51 = arith.constant 0 : index
    %135 = vector.load %arg13[%c0_50, %c0_51] : memref<1x128xf32, #tpu.memory_space<vmem>>, vector<1x128xf32>
    %cst_52 = arith.constant dense<0.000000e+00> : vector<4xf32>
    %136 = vector.multi_reduction <add>, %133, %cst_52 [1] : vector<4x128xf32> to vector<4xf32>
    %137 = vector.shape_cast %136 : vector<4xf32> to vector<4x1xf32>
    %cst_53 = arith.constant 1.280000e+02 : f32
    %138 = vector.broadcast %cst_53 : f32 to vector<4x1xf32>
    %139 = arith.divf %137, %138 : vector<4x1xf32>
    %140 = vector.broadcast %139 : vector<4x1xf32> to vector<4x128xf32>
    %141 = arith.subf %133, %140 : vector<4x128xf32>
    %142 = arith.mulf %141, %141 : vector<4x128xf32>
    %cst_54 = arith.constant dense<0.000000e+00> : vector<4xf32>
    %143 = vector.multi_reduction <add>, %142, %cst_54 [1] : vector<4x128xf32> to vector<4xf32>
    %144 = vector.shape_cast %143 : vector<4xf32> to vector<4x1xf32>
    %cst_55 = arith.constant 1.280000e+02 : f32
    %145 = vector.broadcast %cst_55 : f32 to vector<4x1xf32>
    %146 = arith.divf %144, %145 : vector<4x1xf32>
    %cst_56 = arith.constant 9.99999974E-6 : f32
    %147 = vector.broadcast %cst_56 : f32 to vector<4x1xf32>
    %148 = arith.addf %146, %147 : vector<4x1xf32>
    %149 = math.rsqrt %148 : vector<4x1xf32>
    %150 = vector.broadcast %149 : vector<4x1xf32> to vector<4x128xf32>
    %151 = arith.mulf %141, %150 : vector<4x128xf32>
    %152 = vector.broadcast %134 : vector<1x128xf32> to vector<4x128xf32>
    %153 = arith.mulf %151, %152 : vector<4x128xf32>
    %154 = vector.broadcast %135 : vector<1x128xf32> to vector<4x128xf32>
    %155 = arith.addf %153, %154 : vector<4x128xf32>
    %c0_57 = arith.constant 0 : index
    %c0_58 = arith.constant 0 : index
    %c0_59 = arith.constant 0 : index
    %156 = vector.load %arg14[%c0_57, %c0_58, %c0_59] : memref<1x4x128xf32, #tpu.memory_space<vmem>>, vector<1x4x128xf32>
    %157 = vector.shape_cast %156 : vector<1x4x128xf32> to vector<4x128xf32>
    %158 = vector.shape_cast %155 : vector<4x128xf32> to vector<1x4x128xf32>
    tpu.vector_store %arg14[%c0_57, %c0_58, %c0_59], %158 {strides = array<i32>} : memref<1x4x128xf32, #tpu.memory_space<vmem>>, vector<1x4x128xf32>,
    return
  }
  func.func @transform_0(%arg0: i32) -> (i32, i32, i32) {
    %c0_i32 = arith.constant 0 : i32
    %c0_i32_0 = arith.constant 0 : i32
    %c0_i32_1 = arith.constant 0 : i32
    return %arg0, %c0_i32, %c0_i32_0 : i32, i32, i32
  }
  func.func @transform_1(%arg0: i32) -> (i32, i32) {
    %c0_i32 = arith.constant 0 : i32
    %c0_i32_0 = arith.constant 0 : i32
    %c0_i32_1 = arith.constant 0 : i32
    return %c0_i32, %c0_i32_0 : i32, i32
  }
  func.func @transform_2(%arg0: i32) -> (i32, i32) {
    %c0_i32 = arith.constant 0 : i32
    %c0_i32_0 = arith.constant 0 : i32
    %c0_i32_1 = arith.constant 0 : i32
    return %c0_i32, %c0_i32_0 : i32, i32
  }
  func.func @transform_3(%arg0: i32) -> (i32, i32) {
    %c0_i32 = arith.constant 0 : i32
    %c0_i32_0 = arith.constant 0 : i32
    %c0_i32_1 = arith.constant 0 : i32
    return %c0_i32, %c0_i32_0 : i32, i32
  }
  func.func @transform_4(%arg0: i32) -> (i32, i32) {
    %c0_i32 = arith.constant 0 : i32
    %c0_i32_0 = arith.constant 0 : i32
    %c0_i32_1 = arith.constant 0 : i32
    return %c0_i32, %c0_i32_0 : i32, i32
  }
  func.func @transform_5(%arg0: i32) -> (i32, i32) {
    %c0_i32 = arith.constant 0 : i32
    %c0_i32_0 = arith.constant 0 : i32
    %c0_i32_1 = arith.constant 0 : i32
    return %c0_i32, %c0_i32_0 : i32, i32
  }
  func.func @transform_6(%arg0: i32) -> (i32, i32) {
    %c0_i32 = arith.constant 0 : i32
    %c0_i32_0 = arith.constant 0 : i32
    %c0_i32_1 = arith.constant 0 : i32
    return %c0_i32, %c0_i32_0 : i32, i32
  }
  func.func @transform_7(%arg0: i32) -> (i32, i32) {
    %c0_i32 = arith.constant 0 : i32
    %c0_i32_0 = arith.constant 0 : i32
    %c0_i32_1 = arith.constant 0 : i32
    return %c0_i32, %c0_i32_0 : i32, i32
  }
  func.func @transform_8(%arg0: i32) -> (i32, i32) {
    %c0_i32 = arith.constant 0 : i32
    %c0_i32_0 = arith.constant 0 : i32
    %c0_i32_1 = arith.constant 0 : i32
    return %c0_i32, %c0_i32_0 : i32, i32
  }
  func.func @transform_9(%arg0: i32) -> (i32, i32) {
    %c0_i32 = arith.constant 0 : i32
    %c0_i32_0 = arith.constant 0 : i32
    %c0_i32_1 = arith.constant 0 : i32
    return %c0_i32, %c0_i32_0 : i32, i32
  }
  func.func @transform_10(%arg0: i32) -> (i32, i32) {
    %c0_i32 = arith.constant 0 : i32
    %c0_i32_0 = arith.constant 0 : i32
    %c0_i32_1 = arith.constant 0 : i32
    return %c0_i32, %c0_i32_0 : i32, i32
  }
  func.func @transform_11(%arg0: i32) -> (i32, i32) {
    %c0_i32 = arith.constant 0 : i32
    %c0_i32_0 = arith.constant 0 : i32
    %c0_i32_1 = arith.constant 0 : i32
    return %c0_i32, %c0_i32_0 : i32, i32
  }
  func.func @transform_12(%arg0: i32) -> (i32, i32) {
    %c0_i32 = arith.constant 0 : i32
    %c0_i32_0 = arith.constant 0 : i32
    %c0_i32_1 = arith.constant 0 : i32
    return %c0_i32, %c0_i32_0 : i32, i32
  }
  func.func @transform_13(%arg0: i32) -> (i32, i32, i32) {
    %c0_i32 = arith.constant 0 : i32
    %c0_i32_0 = arith.constant 0 : i32
    %c0_i32_1 = arith.constant 0 : i32
    return %arg0, %c0_i32, %c0_i32_0 : i32, i32, i32
  }
}

module attributes {stable_mosaic.version = 11 : i64} {
  func.func @_transformer_layer_kernel(%arg0: i32, %arg1: memref<1x4x128xf32, #tpu.memory_space<vmem>>, %arg2: memref<128x384xbf16, #tpu.memory_space<vmem>>, %arg3: memref<1x384xf32, #tpu.memory_space<vmem>>, %arg4: memref<128x128xbf16, #tpu.memory_space<vmem>>, %arg5: memref<1x128xf32, #tpu.memory_space<vmem>>, %arg6: memref<1x128xf32, #tpu.memory_space<vmem>>, %arg7: memref<1x128xf32, #tpu.memory_space<vmem>>, %arg8: memref<128x512xbf16, #tpu.memory_space<vmem>>, %arg9: memref<1x512xf32, #tpu.memory_space<vmem>>, %arg10: memref<512x128xbf16, #tpu.memory_space<vmem>>, %arg11: memref<1x128xf32, #tpu.memory_space<vmem>>, %arg12: memref<1x128xf32, #tpu.memory_space<vmem>>, %arg13: memref<1x128xf32, #tpu.memory_space<vmem>>, %arg14: memref<1x4x128xf32, #tpu.memory_space<vmem>>) attributes {dimension_semantics = [#tpu.dimension_semantics<parallel>], iteration_bounds = array<i64: 2>, scalar_prefetch = 0 : i64, scratch_operands = 0 : i64, tpu.core_type = #tpu.core_type<tc>, window_params = [{transform_indices = @transform_0, window_bounds = array<i64: 1, 4, 128>}, {pipeline_mode = #tpu.pipeline_mode<synchronous>, transform_indices = @transform_1, window_bounds = array<i64: 128, 384>}, {pipeline_mode = #tpu.pipeline_mode<synchronous>, transform_indices = @transform_2, window_bounds = array<i64: 1, 384>}, {pipeline_mode = #tpu.pipeline_mode<synchronous>, transform_indices = @transform_3, window_bounds = array<i64: 128, 128>}, {pipeline_mode = #tpu.pipeline_mode<synchronous>, transform_indices = @transform_4, window_bounds = array<i64: 1, 128>}, {pipeline_mode = #tpu.pipeline_mode<synchronous>, transform_indices = @transform_5, window_bounds = array<i64: 1, 128>}, {pipeline_mode = #tpu.pipeline_mode<synchronous>, transform_indices = @transform_6, window_bounds = array<i64: 1, 128>}, {pipeline_mode = #tpu.pipeline_mode<synchronous>, transform_indices = @transform_7, window_bounds = array<i64: 128, 512>}, {pipeline_mode = #tpu.pipeline_mode<synchronous>, transform_indices = @transform_8, window_bounds = array<i64: 1, 512>}, {pipeline_mode = #tpu.pipeline_mode<synchronous>, transform_indices = @transform_9, window_bounds = array<i64: 512, 128>}, {pipeline_mode = #tpu.pipeline_mode<synchronous>, transform_indices = @transform_10, window_bounds = array<i64: 1, 128>}, {pipeline_mode = #tpu.pipeline_mode<synchronous>, transform_indices = @transform_11, window_bounds = array<i64: 1, 128>}, {pipeline_mode = #tpu.pipeline_mode<synchronous>, transform_indices = @transform_12, window_bounds = array<i64: 1, 128>}, {transform_indices = @transform_13, window_bounds = array<i64: 1, 4, 128>}]} {
    %c0 = arith.constant 0 : index
    %c0_0 = arith.constant 0 : index
    %c0_1 = arith.constant 0 : index
    %0 = vector.load %arg1[%c0, %c0_0, %c0_1] : memref<1x4x128xf32, #tpu.memory_space<vmem>>, vector<1x4x128xf32>
    %1 = vector.shape_cast %0 : vector<1x4x128xf32> to vector<4x128xf32>
    %2 = arith.truncf %1 : vector<4x128xf32> to vector<4x128xbf16>
    %c0_2 = arith.constant 0 : index
    %c0_3 = arith.constant 0 : index
    %3 = vector.load %arg2[%c0_2, %c0_3] : memref<128x384xbf16, #tpu.memory_space<vmem>>, vector<128x384xbf16>
    %cst = arith.constant dense<0.000000e+00> : vector<4x384xf32>
    %4 = tpu.matmul %2, %3, %cst {dimension_numbers = #tpu.dot_dimension_numbers<[1], [0], [0], [1], [0, 0, 1, 1], [], []>} : vector<4x128xbf16>, vector<128x384xbf16>, vector<4x384xf32> -> vector<4x384xf32>
    %c0_4 = arith.constant 0 : index
    %c0_5 = arith.constant 0 : index
    %5 = vector.load %arg3[%c0_4, %c0_5] : memref<1x384xf32, #tpu.memory_space<vmem>>, vector<1x384xf32>
    %6 = vector.broadcast %5 : vector<1x384xf32> to vector<4x384xf32>
    %7 = arith.addf %4, %6 : vector<4x384xf32>
    %8 = vector.extract_strided_slice %7 {offsets = [0, 0], sizes = [4, 128], strides = [1, 1]} : vector<4x384xf32> to vector<4x128xf32>
    %cst_6 = arith.constant 0.176776692 : f32
    %9 = vector.broadcast %cst_6 : f32 to vector<4x128xf32>
    %10 = arith.mulf %8, %9 : vector<4x128xf32>
    %11 = vector.extract_strided_slice %7 {offsets = [0, 128], sizes = [4, 128], strides = [1, 1]} : vector<4x384xf32> to vector<4x128xf32>
    %12 = vector.extract_strided_slice %7 {offsets = [0, 256], sizes = [4, 128], strides = [1, 1]} : vector<4x384xf32> to vector<4x128xf32>
    %13 = vector.extract_strided_slice %10 {offsets = [0, 0], sizes = [4, 32], strides = [1, 1]} : vector<4x128xf32> to vector<4x32xf32>
    %14 = arith.truncf %13 : vector<4x32xf32> to vector<4x32xbf16>
    %15 = vector.extract_strided_slice %11 {offsets = [0, 0], sizes = [4, 32], strides = [1, 1]} : vector<4x128xf32> to vector<4x32xf32>
    %16 = arith.truncf %15 : vector<4x32xf32> to vector<4x32xbf16>
    %17 = vector.extract_strided_slice %12 {offsets = [0, 0], sizes = [4, 32], strides = [1, 1]} : vector<4x128xf32> to vector<4x32xf32>
    %18 = arith.truncf %17 : vector<4x32xf32> to vector<4x32xbf16>
    %cst_7 = arith.constant dense<0.000000e+00> : vector<4x4xf32>
    %19 = tpu.matmul %14, %16, %cst_7 {dimension_numbers = #tpu.dot_dimension_numbers<[1], [1], [0], [0], [0, 0, 1, 0], [], []>} : vector<4x32xbf16>, vector<4x32xbf16>, vector<4x4xf32> -> vector<4x4xf32>
    %cst_8 = arith.constant dense<0xFF800000> : vector<4xf32>
    %20 = vector.multi_reduction <maximumf>, %19, %cst_8 [1] : vector<4x4xf32> to vector<4xf32>
    %21 = vector.shape_cast %20 : vector<4xf32> to vector<4x1xf32>
    %22 = vector.broadcast %21 : vector<4x1xf32> to vector<4x4xf32>
    %23 = arith.subf %19, %22 : vector<4x4xf32>
    %24 = math.exp %23 : vector<4x4xf32>
    %cst_9 = arith.constant dense<0.000000e+00> : vector<4xf32>
    %25 = vector.multi_reduction <add>, %24, %cst_9 [1] : vector<4x4xf32> to vector<4xf32>
    %26 = vector.shape_cast %25 : vector<4xf32> to vector<4x1xf32>
    %27 = tpu.reciprocal %26 {approx = true} : vector<4x1xf32> -> vector<4x1xf32>
    %28 = vector.broadcast %27 : vector<4x1xf32> to vector<4x4xf32>
    %29 = arith.mulf %24, %28 : vector<4x4xf32>
    %30 = arith.truncf %29 : vector<4x4xf32> to vector<4x4xbf16>
    %cst_10 = arith.constant dense<0.000000e+00> : vector<4x32xf32>
    %31 = tpu.matmul %30, %18, %cst_10 {dimension_numbers = #tpu.dot_dimension_numbers<[1], [0], [0], [1], [0, 0, 1, 1], [], []>} : vector<4x4xbf16>, vector<4x32xbf16>, vector<4x32xf32> -> vector<4x32xf32>
    %32 = vector.extract_strided_slice %10 {offsets = [0, 32], sizes = [4, 32], strides = [1, 1]} : vector<4x128xf32> to vector<4x32xf32>
    %33 = arith.truncf %32 : vector<4x32xf32> to vector<4x32xbf16>
    %34 = vector.extract_strided_slice %11 {offsets = [0, 32], sizes = [4, 32], strides = [1, 1]} : vector<4x128xf32> to vector<4x32xf32>
    %35 = arith.truncf %34 : vector<4x32xf32> to vector<4x32xbf16>
    %36 = vector.extract_strided_slice %12 {offsets = [0, 32], sizes = [4, 32], strides = [1, 1]} : vector<4x128xf32> to vector<4x32xf32>
    %37 = arith.truncf %36 : vector<4x32xf32> to vector<4x32xbf16>
    %cst_11 = arith.constant dense<0.000000e+00> : vector<4x4xf32>
    %38 = tpu.matmul %33, %35, %cst_11 {dimension_numbers = #tpu.dot_dimension_numbers<[1], [1], [0], [0], [0, 0, 1, 0], [], []>} : vector<4x32xbf16>, vector<4x32xbf16>, vector<4x4xf32> -> vector<4x4xf32>
    %cst_12 = arith.constant dense<0xFF800000> : vector<4xf32>
    %39 = vector.multi_reduction <maximumf>, %38, %cst_12 [1] : vector<4x4xf32> to vector<4xf32>
    %40 = vector.shape_cast %39 : vector<4xf32> to vector<4x1xf32>
    %41 = vector.broadcast %40 : vector<4x1xf32> to vector<4x4xf32>
    %42 = arith.subf %38, %41 : vector<4x4xf32>
    %43 = math.exp %42 : vector<4x4xf32>
    %cst_13 = arith.constant dense<0.000000e+00> : vector<4xf32>
    %44 = vector.multi_reduction <add>, %43, %cst_13 [1] : vector<4x4xf32> to vector<4xf32>
    %45 = vector.shape_cast %44 : vector<4xf32> to vector<4x1xf32>
    %46 = tpu.reciprocal %45 {approx = true} : vector<4x1xf32> -> vector<4x1xf32>
    %47 = vector.broadcast %46 : vector<4x1xf32> to vector<4x4xf32>
    %48 = arith.mulf %43, %47 : vector<4x4xf32>
    %49 = arith.truncf %48 : vector<4x4xf32> to vector<4x4xbf16>
    %cst_14 = arith.constant dense<0.000000e+00> : vector<4x32xf32>
    %50 = tpu.matmul %49, %37, %cst_14 {dimension_numbers = #tpu.dot_dimension_numbers<[1], [0], [0], [1], [0, 0, 1, 1], [], []>} : vector<4x4xbf16>, vector<4x32xbf16>, vector<4x32xf32> -> vector<4x32xf32>
    %51 = vector.extract_strided_slice %10 {offsets = [0, 64], sizes = [4, 32], strides = [1, 1]} : vector<4x128xf32> to vector<4x32xf32>
    %52 = arith.truncf %51 : vector<4x32xf32> to vector<4x32xbf16>
    %53 = vector.extract_strided_slice %11 {offsets = [0, 64], sizes = [4, 32], strides = [1, 1]} : vector<4x128xf32> to vector<4x32xf32>
    %54 = arith.truncf %53 : vector<4x32xf32> to vector<4x32xbf16>
    %55 = vector.extract_strided_slice %12 {offsets = [0, 64], sizes = [4, 32], strides = [1, 1]} : vector<4x128xf32> to vector<4x32xf32>
    %56 = arith.truncf %55 : vector<4x32xf32> to vector<4x32xbf16>
    %cst_15 = arith.constant dense<0.000000e+00> : vector<4x4xf32>
    %57 = tpu.matmul %52, %54, %cst_15 {dimension_numbers = #tpu.dot_dimension_numbers<[1], [1], [0], [0], [0, 0, 1, 0], [], []>} : vector<4x32xbf16>, vector<4x32xbf16>, vector<4x4xf32> -> vector<4x4xf32>
    %cst_16 = arith.constant dense<0xFF800000> : vector<4xf32>
    %58 = vector.multi_reduction <maximumf>, %57, %cst_16 [1] : vector<4x4xf32> to vector<4xf32>
    %59 = vector.shape_cast %58 : vector<4xf32> to vector<4x1xf32>
    %60 = vector.broadcast %59 : vector<4x1xf32> to vector<4x4xf32>
    %61 = arith.subf %57, %60 : vector<4x4xf32>
    %62 = math.exp %61 : vector<4x4xf32>
    %cst_17 = arith.constant dense<0.000000e+00> : vector<4xf32>
    %63 = vector.multi_reduction <add>, %62, %cst_17 [1] : vector<4x4xf32> to vector<4xf32>
    %64 = vector.shape_cast %63 : vector<4xf32> to vector<4x1xf32>
    %65 = tpu.reciprocal %64 {approx = true} : vector<4x1xf32> -> vector<4x1xf32>
    %66 = vector.broadcast %65 : vector<4x1xf32> to vector<4x4xf32>
    %67 = arith.mulf %62, %66 : vector<4x4xf32>
    %68 = arith.truncf %67 : vector<4x4xf32> to vector<4x4xbf16>
    %cst_18 = arith.constant dense<0.000000e+00> : vector<4x32xf32>
    %69 = tpu.matmul %68, %56, %cst_18 {dimension_numbers = #tpu.dot_dimension_numbers<[1], [0], [0], [1], [0, 0, 1, 1], [], []>} : vector<4x4xbf16>, vector<4x32xbf16>, vector<4x32xf32> -> vector<4x32xf32>
    %70 = vector.extract_strided_slice %10 {offsets = [0, 96], sizes = [4, 32], strides = [1, 1]} : vector<4x128xf32> to vector<4x32xf32>
    %71 = arith.truncf %70 : vector<4x32xf32> to vector<4x32xbf16>
    %72 = vector.extract_strided_slice %11 {offsets = [0, 96], sizes = [4, 32], strides = [1, 1]} : vector<4x128xf32> to vector<4x32xf32>
    %73 = arith.truncf %72 : vector<4x32xf32> to vector<4x32xbf16>
    %74 = vector.extract_strided_slice %12 {offsets = [0, 96], sizes = [4, 32], strides = [1, 1]} : vector<4x128xf32> to vector<4x32xf32>
    %75 = arith.truncf %74 : vector<4x32xf32> to vector<4x32xbf16>
    %cst_19 = arith.constant dense<0.000000e+00> : vector<4x4xf32>
    %76 = tpu.matmul %71, %73, %cst_19 {dimension_numbers = #tpu.dot_dimension_numbers<[1], [1], [0], [0], [0, 0, 1, 0], [], []>} : vector<4x32xbf16>, vector<4x32xbf16>, vector<4x4xf32> -> vector<4x4xf32>
    %cst_20 = arith.constant dense<0xFF800000> : vector<4xf32>
    %77 = vector.multi_reduction <maximumf>, %76, %cst_20 [1] : vector<4x4xf32> to vector<4xf32>
    %78 = vector.shape_cast %77 : vector<4xf32> to vector<4x1xf32>
    %79 = vector.broadcast %78 : vector<4x1xf32> to vector<4x4xf32>
    %80 = arith.subf %76, %79 : vector<4x4xf32>
    %81 = math.exp %80 : vector<4x4xf32>
    %cst_21 = arith.constant dense<0.000000e+00> : vector<4xf32>
    %82 = vector.multi_reduction <add>, %81, %cst_21 [1] : vector<4x4xf32> to vector<4xf32>
    %83 = vector.shape_cast %82 : vector<4xf32> to vector<4x1xf32>
    %84 = tpu.reciprocal %83 {approx = true} : vector<4x1xf32> -> vector<4x1xf32>
    %85 = vector.broadcast %84 : vector<4x1xf32> to vector<4x4xf32>
    %86 = arith.mulf %81, %85 : vector<4x4xf32>
    %87 = arith.truncf %86 : vector<4x4xf32> to vector<4x4xbf16>
    %cst_22 = arith.constant dense<0.000000e+00> : vector<4x32xf32>
    %88 = tpu.matmul %87, %75, %cst_22 {dimension_numbers = #tpu.dot_dimension_numbers<[1], [0], [0], [1], [0, 0, 1, 1], [], []>} : vector<4x4xbf16>, vector<4x32xbf16>, vector<4x32xf32> -> vector<4x32xf32>
    %89 = tpu.concatenate %31, %50, %69, %88 in 1 : vector<4x32xf32>, vector<4x32xf32>, vector<4x32xf32>, vector<4x32xf32> -> vector<4x128xf32>
    %90 = arith.truncf %89 : vector<4x128xf32> to vector<4x128xbf16>
    %c0_23 = arith.constant 0 : index
    %c0_24 = arith.constant 0 : index
    %91 = vector.load %arg4[%c0_23, %c0_24] : memref<128x128xbf16, #tpu.memory_space<vmem>>, vector<128x128xbf16>
    %cst_25 = arith.constant dense<0.000000e+00> : vector<4x128xf32>
    %92 = tpu.matmul %90, %91, %cst_25 {dimension_numbers = #tpu.dot_dimension_numbers<[1], [0], [0], [1], [0, 0, 1, 1], [], []>} : vector<4x128xbf16>, vector<128x128xbf16>, vector<4x128xf32> -> vector<4x128xf32>
    %c0_26 = arith.constant 0 : index
    %c0_27 = arith.constant 0 : index
    %93 = vector.load %arg5[%c0_26, %c0_27] : memref<1x128xf32, #tpu.memory_space<vmem>>, vector<1x128xf32>
    %94 = vector.broadcast %93 : vector<1x128xf32> to vector<4x128xf32>
    %95 = arith.addf %92, %94 : vector<4x128xf32>
    %96 = arith.addf %1, %95 : vector<4x128xf32>
    %c0_28 = arith.constant 0 : index
    %c0_29 = arith.constant 0 : index
    %97 = vector.load %arg6[%c0_28, %c0_29] : memref<1x128xf32, #tpu.memory_space<vmem>>, vector<1x128xf32>
    %c0_30 = arith.constant 0 : index
    %c0_31 = arith.constant 0 : index
    %98 = vector.load %arg7[%c0_30, %c0_31] : memref<1x128xf32, #tpu.memory_space<vmem>>, vector<1x128xf32>
    %cst_32 = arith.constant dense<0.000000e+00> : vector<4xf32>
    %99 = vector.multi_reduction <add>, %96, %cst_32 [1] : vector<4x128xf32> to vector<4xf32>
    %100 = vector.shape_cast %99 : vector<4xf32> to vector<4x1xf32>
    %cst_33 = arith.constant 1.280000e+02 : f32
    %101 = vector.broadcast %cst_33 : f32 to vector<4x1xf32>
    %102 = arith.divf %100, %101 : vector<4x1xf32>
    %103 = vector.broadcast %102 : vector<4x1xf32> to vector<4x128xf32>
    %104 = arith.subf %96, %103 : vector<4x128xf32>
    %105 = arith.mulf %104, %104 : vector<4x128xf32>
    %cst_34 = arith.constant dense<0.000000e+00> : vector<4xf32>
    %106 = vector.multi_reduction <add>, %105, %cst_34 [1] : vector<4x128xf32> to vector<4xf32>
    %107 = vector.shape_cast %106 : vector<4xf32> to vector<4x1xf32>
    %cst_35 = arith.constant 1.280000e+02 : f32
    %108 = vector.broadcast %cst_35 : f32 to vector<4x1xf32>
    %109 = arith.divf %107, %108 : vector<4x1xf32>
    %cst_36 = arith.constant 9.99999974E-6 : f32
    %110 = vector.broadcast %cst_36 : f32 to vector<4x1xf32>
    %111 = arith.addf %109, %110 : vector<4x1xf32>
    %112 = math.rsqrt %111 : vector<4x1xf32>
    %113 = vector.broadcast %112 : vector<4x1xf32> to vector<4x128xf32>
    %114 = arith.mulf %104, %113 : vector<4x128xf32>
    %115 = vector.broadcast %97 : vector<1x128xf32> to vector<4x128xf32>
    %116 = arith.mulf %114, %115 : vector<4x128xf32>
    %117 = vector.broadcast %98 : vector<1x128xf32> to vector<4x128xf32>
    %118 = arith.addf %116, %117 : vector<4x128xf32>
    %119 = arith.truncf %118 : vector<4x128xf32> to vector<4x128xbf16>
    %c0_37 = arith.constant 0 : index
    %c0_38 = arith.constant 0 : index
    %120 = vector.load %arg8[%c0_37, %c0_38] : memref<128x512xbf16, #tpu.memory_space<vmem>>, vector<128x512xbf16>
    %cst_39 = arith.constant dense<0.000000e+00> : vector<4x512xf32>
    %121 = tpu.matmul %119, %120, %cst_39 {dimension_numbers = #tpu.dot_dimension_numbers<[1], [0], [0], [1], [0, 0, 1, 1], [], []>} : vector<4x128xbf16>, vector<128x512xbf16>, vector<4x512xf32> -> vector<4x512xf32>
    %c0_40 = arith.constant 0 : index
    %c0_41 = arith.constant 0 : index
    %122 = vector.load %arg9[%c0_40, %c0_41] : memref<1x512xf32, #tpu.memory_space<vmem>>, vector<1x512xf32>
    %123 = vector.broadcast %122 : vector<1x512xf32> to vector<4x512xf32>
    %124 = arith.addf %121, %123 : vector<4x512xf32>
    %cst_42 = arith.constant 0.000000e+00 : f32
    %125 = vector.broadcast %cst_42 : f32 to vector<4x512xf32>
    %126 = arith.maximumf %124, %125 : vector<4x512xf32>
    %127 = arith.truncf %126 : vector<4x512xf32> to vector<4x512xbf16>
    %c0_43 = arith.constant 0 : index
    %c0_44 = arith.constant 0 : index
    %128 = vector.load %arg10[%c0_43, %c0_44] : memref<512x128xbf16, #tpu.memory_space<vmem>>, vector<512x128xbf16>
    %cst_45 = arith.constant dense<0.000000e+00> : vector<4x128xf32>
    %129 = tpu.matmul %127, %128, %cst_45 {dimension_numbers = #tpu.dot_dimension_numbers<[1], [0], [0], [1], [0, 0, 1, 1], [], []>} : vector<4x512xbf16>, vector<512x128xbf16>, vector<4x128xf32> -> vector<4x128xf32>
    %c0_46 = arith.constant 0 : index
    %c0_47 = arith.constant 0 : index
    %130 = vector.load %arg11[%c0_46, %c0_47] : memref<1x128xf32, #tpu.memory_space<vmem>>, vector<1x128xf32>
    %131 = vector.broadcast %130 : vector<1x128xf32> to vector<4x128xf32>
    %132 = arith.addf %129, %131 : vector<4x128xf32>
    %133 = arith.addf %118, %132 : vector<4x128xf32>
    %c0_48 = arith.constant 0 : index
    %c0_49 = arith.constant 0 : index
    %134 = vector.load %arg12[%c0_48, %c0_49] : memref<1x128xf32, #tpu.memory_space<vmem>>, vector<1x128xf32>
    %c0_50 = arith.constant 0 : index
    %c0_51 = arith.constant 0 : index
    %135 = vector.load %arg13[%c0_50, %c0_51] : memref<1x128xf32, #tpu.memory_space<vmem>>, vector<1x128xf32>
    %cst_52 = arith.constant dense<0.000000e+00> : vector<4xf32>
    %136 = vector.multi_reduction <add>, %133, %cst_52 [1] : vector<4x128xf32> to vector<4xf32>
    %137 = vector.shape_cast %136 : vector<4xf32> to vector<4x1xf32>
    %cst_53 = arith.constant 1.280000e+02 : f32
    %138 = vector.broadcast %cst_53 : f32 to vector<4x1xf32>
    %139 = arith.divf %137, %138 : vector<4x1xf32>
    %140 = vector.broadcast %139 : vector<4x1xf32> to vector<4x128xf32>
    %141 = arith.subf %133, %140 : vector<4x128xf32>
    %142 = arith.mulf %141, %141 : vector<4x128xf32>
    %cst_54 = arith.constant dense<0.000000e+00> : vector<4xf32>
    %143 = vector.multi_reduction <add>, %142, %cst_54 [1] : vector<4x128xf32> to vector<4xf32>
    %144 = vector.shape_cast %143 : vector<4xf32> to vector<4x1xf32>
    %cst_55 = arith.constant 1.280000e+02 : f32
    %145 = vector.broadcast %cst_55 : f32 to vector<4x1xf32>
    %146 = arith.divf %144, %145 : vector<4x1xf32>
    %cst_56 = arith.constant 9.99999974E-6 : f32
    %147 = vector.broadcast %cst_56 : f32 to vector<4x1xf32>
    %148 = arith.addf %146, %147 : vector<4x1xf32>
    %149 = math.rsqrt %148 : vector<4x1xf32>
    %150 = vector.broadcast %149 : vector<4x1xf32> to vector<4x128xf32>
    %151 = arith.mulf %141, %150 : vector<4x128xf32>
    %152 = vector.broadcast %134 : vector<1x128xf32> to vector<4x128xf32>
    %153 = arith.mulf %151, %152 : vector<4x128xf32>
    %154 = vector.broadcast %135 : vector<1x128xf32> to vector<4x128xf32>
    %155 = arith.addf %153, %154 : vector<4x128xf32>
    %c0_57 = arith.constant 0 : index
    %c0_58 = arith.constant 0 : index
    %c0_59 = arith.constant 0 : index
    %156 = vector.load %arg14[%c0_57, %c0_58, %c0_59] : memref<1x4x128xf32, #tpu.memory_space<vmem>>, vector<1x4x128xf32>
    %157 = vector.shape_cast %156 : vector<1x4x128xf32> to vector<4x128xf32>
    %158 = vector.shape_cast %155 : vector<4x128xf32> to vector<1x4x128xf32>
    tpu.vector_store %arg14[%c0_57, %c0_58, %c0_59], %158 {strides = array<i32>} : memref<1x4x128xf32, #tpu.memory_space<vmem>>, vector<1x4x128xf32>,
    return
  }
  func.func @transform_0(%arg0: i32) -> (i32, i32, i32) {
    %c0_i32 = arith.constant 0 : i32
    %c0_i32_0 = arith.constant 0 : i32
    %c0_i32_1 = arith.constant 0 : i32
    return %arg0, %c0_i32, %c0_i32_0 : i32, i32, i32
  }
  func.func @transform_1(%arg0: i32) -> (i32, i32) {
    %c0_i32 = arith.constant 0 : i32
    %c0_i32_0 = arith.constant 0 : i32
    %c0_i32_1 = arith.constant 0 : i32
    return %c0_i32, %c0_i32_0 : i32, i32
  }
  func.func @transform_2(%arg0: i32) -> (i32, i32) {
    %c0_i32 = arith.constant 0 : i32
    %c0_i32_0 = arith.constant 0 : i32
    %c0_i32_1 = arith.constant 0 : i32
    return %c0_i32, %c0_i32_0 : i32, i32
  }
  func.func @transform_3(%arg0: i32) -> (i32, i32) {
    %c0_i32 = arith.constant 0 : i32
    %c0_i32_0 = arith.constant 0 : i32
    %c0_i32_1 = arith.constant 0 : i32
    return %c0_i32, %c0_i32_0 : i32, i32
  }
  func.func @transform_4(%arg0: i32) -> (i32, i32) {
    %c0_i32 = arith.constant 0 : i32
    %c0_i32_0 = arith.constant 0 : i32
    %c0_i32_1 = arith.constant 0 : i32
    return %c0_i32, %c0_i32_0 : i32, i32
  }
  func.func @transform_5(%arg0: i32) -> (i32, i32) {
    %c0_i32 = arith.constant 0 : i32
    %c0_i32_0 = arith.constant 0 : i32
    %c0_i32_1 = arith.constant 0 : i32
    return %c0_i32, %c0_i32_0 : i32, i32
  }
  func.func @transform_6(%arg0: i32) -> (i32, i32) {
    %c0_i32 = arith.constant 0 : i32
    %c0_i32_0 = arith.constant 0 : i32
    %c0_i32_1 = arith.constant 0 : i32
    return %c0_i32, %c0_i32_0 : i32, i32
  }
  func.func @transform_7(%arg0: i32) -> (i32, i32) {
    %c0_i32 = arith.constant 0 : i32
    %c0_i32_0 = arith.constant 0 : i32
    %c0_i32_1 = arith.constant 0 : i32
    return %c0_i32, %c0_i32_0 : i32, i32
  }
  func.func @transform_8(%arg0: i32) -> (i32, i32) {
    %c0_i32 = arith.constant 0 : i32
    %c0_i32_0 = arith.constant 0 : i32
    %c0_i32_1 = arith.constant 0 : i32
    return %c0_i32, %c0_i32_0 : i32, i32
  }
  func.func @transform_9(%arg0: i32) -> (i32, i32) {
    %c0_i32 = arith.constant 0 : i32
    %c0_i32_0 = arith.constant 0 : i32
    %c0_i32_1 = arith.constant 0 : i32
    return %c0_i32, %c0_i32_0 : i32, i32
  }
  func.func @transform_10(%arg0: i32) -> (i32, i32) {
    %c0_i32 = arith.constant 0 : i32
    %c0_i32_0 = arith.constant 0 : i32
    %c0_i32_1 = arith.constant 0 : i32
    return %c0_i32, %c0_i32_0 : i32, i32
  }
  func.func @transform_11(%arg0: i32) -> (i32, i32) {
    %c0_i32 = arith.constant 0 : i32
    %c0_i32_0 = arith.constant 0 : i32
    %c0_i32_1 = arith.constant 0 : i32
    return %c0_i32, %c0_i32_0 : i32, i32
  }
  func.func @transform_12(%arg0: i32) -> (i32, i32) {
    %c0_i32 = arith.constant 0 : i32
    %c0_i32_0 = arith.constant 0 : i32
    %c0_i32_1 = arith.constant 0 : i32
    return %c0_i32, %c0_i32_0 : i32, i32
  }
  func.func @transform_13(%arg0: i32) -> (i32, i32, i32) {
    %c0_i32 = arith.constant 0 : i32
    %c0_i32_0 = arith.constant 0 : i32
    %c0_i32_1 = arith.constant 0 : i32
    return %arg0, %c0_i32, %c0_i32_0 : i32, i32, i32
  }
}

module attributes {stable_mosaic.version = 11 : i64} {
  func.func @_vq_kernel(%arg0: i32, %arg1: memref<8x128xf32, #tpu.memory_space<vmem>>, %arg2: memref<256x128xf32, #tpu.memory_space<vmem>>, %arg3: memref<8x128xf32, #tpu.memory_space<vmem>>, %arg4: memref<8x1xi32, #tpu.memory_space<vmem>>, %arg5: memref<1x1xf32, #tpu.memory_space<vmem>>, %arg6: memref<1x1xf32, #tpu.memory_space<vmem>>) attributes {dimension_semantics = [#tpu.dimension_semantics<arbitrary>], iteration_bounds = array<i64: 1>, scalar_prefetch = 0 : i64, scratch_operands = 1 : i64, tpu.core_type = #tpu.core_type<tc>, window_params = [{transform_indices = @transform_0, window_bounds = array<i64: 8, 128>}, {pipeline_mode = #tpu.pipeline_mode<synchronous>, transform_indices = @transform_1, window_bounds = array<i64: 256, 128>}, {transform_indices = @transform_2, window_bounds = array<i64: 8, 128>}, {transform_indices = @transform_3, window_bounds = array<i64: 8, 1>}, {pipeline_mode = #tpu.pipeline_mode<synchronous>, transform_indices = @transform_4, window_bounds = array<i64: 1, 1>}]} {
    %c0_i32 = arith.constant 0 : i32
    %0 = arith.cmpi eq, %arg0, %c0_i32 : i32
    %1 = arith.extui %0 : i1 to i32
    %c0_i32_0 = arith.constant 0 : i32
    %2 = arith.cmpi ne, %1, %c0_i32_0 : i32
    scf.if %2 {
      %cst_19 = arith.constant 0.000000e+00 : f32
      %43 = vector.broadcast %cst_19 : f32 to vector<1x1xf32>
      %c0_20 = arith.constant 0 : index
      %c0_21 = arith.constant 0 : index
      %44 = vector.load %arg6[%c0_20, %c0_21] : memref<1x1xf32, #tpu.memory_space<vmem>>, vector<1x1xf32>
      tpu.vector_store %arg6[%c0_20, %c0_21], %43 {strides = array<i32>} : memref<1x1xf32, #tpu.memory_space<vmem>>, vector<1x1xf32>,
    } else {
    }
    %c0 = arith.constant 0 : index
    %c0_1 = arith.constant 0 : index
    %3 = vector.load %arg1[%c0, %c0_1] : memref<8x128xf32, #tpu.memory_space<vmem>>, vector<8x128xf32>
    %c0_2 = arith.constant 0 : index
    %c0_3 = arith.constant 0 : index
    %4 = vector.load %arg2[%c0_2, %c0_3] : memref<256x128xf32, #tpu.memory_space<vmem>>, vector<256x128xf32>
    %5 = arith.mulf %3, %3 : vector<8x128xf32>
    %cst = arith.constant dense<0.000000e+00> : vector<8xf32>
    %6 = vector.multi_reduction <add>, %5, %cst [1] : vector<8x128xf32> to vector<8xf32>
    %7 = vector.shape_cast %6 : vector<8xf32> to vector<8x1xf32>
    %8 = arith.mulf %4, %4 : vector<256x128xf32>
    %cst_4 = arith.constant dense<0.000000e+00> : vector<256xf32>
    %9 = vector.multi_reduction <add>, %8, %cst_4 [1] : vector<256x128xf32> to vector<256xf32>
    %10 = vector.shape_cast %9 : vector<256xf32> to vector<256x1xf32>
    %11 = tpu.transpose %10, [1, 0] : vector<256x1xf32> -> vector<1x256xf32>
    %cst_5 = arith.constant dense<0.000000e+00> : vector<8x256xf32>
    %12 = tpu.matmul %3, %4, %cst_5 {dimension_numbers = #tpu.dot_dimension_numbers<[1], [1], [0], [0], [0, 0, 1, 0], [], []>} : vector<8x128xf32>, vector<256x128xf32>, vector<8x256xf32> -> vector<8x256xf32>
    %cst_6 = arith.constant 2.000000e+00 : f32
    %13 = vector.broadcast %cst_6 : f32 to vector<8x256xf32>
    %14 = arith.mulf %13, %12 : vector<8x256xf32>
    %15 = vector.broadcast %7 : vector<8x1xf32> to vector<8x256xf32>
    %16 = arith.subf %15, %14 : vector<8x256xf32>
    %17 = vector.broadcast %11 : vector<1x256xf32> to vector<8x256xf32>
    %18 = arith.addf %16, %17 : vector<8x256xf32>
    %19 = tpu.reduce_index %18 {axis = 1 : i32, kind = #tpu.reduction_kind<arg_min>} : vector<8x256xf32> -> vector<8xi32>
    %20 = tpu.iota {dimensions = array<i32: 1>} : vector<8x256xi32>
    %21 = vector.shape_cast %19 : vector<8xi32> to vector<8x1xi32>
    %22 = vector.broadcast %21 : vector<8x1xi32> to vector<8x256xi32>
    %23 = arith.cmpi eq, %20, %22 : vector<8x256xi32>
    %24 = arith.extui %23 : vector<8x256xi1> to vector<8x256xi32>
    %25 = arith.sitofp %24 : vector<8x256xi32> to vector<8x256xf32>
    %cst_7 = arith.constant dense<0.000000e+00> : vector<8x128xf32>
    %26 = tpu.matmul %25, %4, %cst_7 {dimension_numbers = #tpu.dot_dimension_numbers<[1], [0], [0], [1], [0, 0, 1, 1], [], []>} : vector<8x256xf32>, vector<256x128xf32>, vector<8x128xf32> -> vector<8x128xf32>
    %27 = arith.subf %3, %26 : vector<8x128xf32>
    %c0_8 = arith.constant 0 : index
    %c0_9 = arith.constant 0 : index
    %28 = vector.load %arg6[%c0_8, %c0_9] : memref<1x1xf32, #tpu.memory_space<vmem>>, vector<1x1xf32>
    %29 = arith.mulf %27, %27 : vector<8x128xf32>
    %30 = vector.shape_cast %29 : vector<8x128xf32> to vector<1x8x128xf32>
    %cst_10 = arith.constant dense<0.000000e+00> : vector<1xf32>
    %31 = vector.multi_reduction <add>, %30, %cst_10 [1, 2] : vector<1x8x128xf32> to vector<1xf32>
    %32 = vector.shape_cast %31 : vector<1xf32> to vector<1x1x1xf32>
    %33 = vector.extract %32[0, 0, 0] : f32 from vector<1x1x1xf32>
    %34 = vector.broadcast %33 : f32 to vector<1x1xf32>
    %35 = arith.addf %28, %34 : vector<1x1xf32>
    %c0_11 = arith.constant 0 : index
    %c0_12 = arith.constant 0 : index
    %36 = vector.load %arg6[%c0_11, %c0_12] : memref<1x1xf32, #tpu.memory_space<vmem>>, vector<1x1xf32>
    tpu.vector_store %arg6[%c0_11, %c0_12], %35 {strides = array<i32>} : memref<1x1xf32, #tpu.memory_space<vmem>>, vector<1x1xf32>,
    %c0_13 = arith.constant 0 : index
    %c0_14 = arith.constant 0 : index
    %37 = vector.load %arg3[%c0_13, %c0_14] : memref<8x128xf32, #tpu.memory_space<vmem>>, vector<8x128xf32>
    tpu.vector_store %arg3[%c0_13, %c0_14], %26 {strides = array<i32>} : memref<8x128xf32, #tpu.memory_space<vmem>>, vector<8x128xf32>,
    %38 = vector.shape_cast %19 : vector<8xi32> to vector<8x1xi32>
    %c0_15 = arith.constant 0 : index
    %c0_16 = arith.constant 0 : index
    %39 = vector.load %arg4[%c0_15, %c0_16] : memref<8x1xi32, #tpu.memory_space<vmem>>, vector<8x1xi32>
    tpu.vector_store %arg4[%c0_15, %c0_16], %38 {strides = array<i32>} : memref<8x1xi32, #tpu.memory_space<vmem>>, vector<8x1xi32>,
    %c0_i32_17 = arith.constant 0 : i32
    %40 = arith.cmpi eq, %arg0, %c0_i32_17 : i32
    %41 = arith.extui %40 : i1 to i32
    %c0_i32_18 = arith.constant 0 : i32
    %42 = arith.cmpi ne, %41, %c0_i32_18 : i32
    scf.if %42 {
      %c0_19 = arith.constant 0 : index
      %c0_20 = arith.constant 0 : index
      %43 = vector.load %arg6[%c0_19, %c0_20] : memref<1x1xf32, #tpu.memory_space<vmem>>, vector<1x1xf32>
      %cst_21 = arith.constant 2.44140625E-4 : f32
      %44 = vector.broadcast %cst_21 : f32 to vector<1x1xf32>
      %45 = arith.mulf %43, %44 : vector<1x1xf32>
      %c0_22 = arith.constant 0 : index
      %c0_23 = arith.constant 0 : index
      %46 = vector.load %arg5[%c0_22, %c0_23] : memref<1x1xf32, #tpu.memory_space<vmem>>, vector<1x1xf32>
      tpu.vector_store %arg5[%c0_22, %c0_23], %45 {strides = array<i32>} : memref<1x1xf32, #tpu.memory_space<vmem>>, vector<1x1xf32>,
    } else {
    }
    return
  }
  func.func @transform_0(%arg0: i32) -> (i32, i32) {
    %c0_i32 = arith.constant 0 : i32
    %c0_i32_0 = arith.constant 0 : i32
    return %arg0, %c0_i32 : i32, i32
  }
  func.func @transform_1(%arg0: i32) -> (i32, i32) {
    %c0_i32 = arith.constant 0 : i32
    %c0_i32_0 = arith.constant 0 : i32
    %c0_i32_1 = arith.constant 0 : i32
    return %c0_i32, %c0_i32_0 : i32, i32
  }
  func.func @transform_2(%arg0: i32) -> (i32, i32) {
    %c0_i32 = arith.constant 0 : i32
    %c0_i32_0 = arith.constant 0 : i32
    return %arg0, %c0_i32 : i32, i32
  }
  func.func @transform_3(%arg0: i32) -> (i32, i32) {
    %c0_i32 = arith.constant 0 : i32
    %c0_i32_0 = arith.constant 0 : i32
    return %arg0, %c0_i32 : i32, i32
  }
  func.func @transform_4(%arg0: i32) -> (i32, i32) {
    %c0_i32 = arith.constant 0 : i32
    %c0_i32_0 = arith.constant 0 : i32
    %c0_i32_1 = arith.constant 0 : i32
    return %c0_i32, %c0_i32_0 : i32, i32
  }
}

module attributes {stable_mosaic.version = 11 : i64} {
  func.func @_linear_kernel(%arg0: i32, %arg1: memref<8x128xf32, #tpu.memory_space<vmem>>, %arg2: memref<128x64xbf16, #tpu.memory_space<vmem>>, %arg3: memref<1x64xf32, #tpu.memory_space<vmem>>, %arg4: memref<8x64xf32, #tpu.memory_space<vmem>>) attributes {dimension_semantics = [#tpu.dimension_semantics<parallel>], iteration_bounds = array<i64: 1>, scalar_prefetch = 0 : i64, scratch_operands = 0 : i64, tpu.core_type = #tpu.core_type<tc>, window_params = [{transform_indices = @transform_0, window_bounds = array<i64: 8, 128>}, {pipeline_mode = #tpu.pipeline_mode<synchronous>, transform_indices = @transform_1, window_bounds = array<i64: 128, 64>}, {pipeline_mode = #tpu.pipeline_mode<synchronous>, transform_indices = @transform_2, window_bounds = array<i64: 1, 64>}, {transform_indices = @transform_3, window_bounds = array<i64: 8, 64>}]} {
    %c0 = arith.constant 0 : index
    %c0_0 = arith.constant 0 : index
    %0 = vector.load %arg1[%c0, %c0_0] : memref<8x128xf32, #tpu.memory_space<vmem>>, vector<8x128xf32>
    %1 = arith.truncf %0 : vector<8x128xf32> to vector<8x128xbf16>
    %c0_1 = arith.constant 0 : index
    %c0_2 = arith.constant 0 : index
    %2 = vector.load %arg2[%c0_1, %c0_2] : memref<128x64xbf16, #tpu.memory_space<vmem>>, vector<128x64xbf16>
    %cst = arith.constant dense<0.000000e+00> : vector<8x64xf32>
    %3 = tpu.matmul %1, %2, %cst {dimension_numbers = #tpu.dot_dimension_numbers<[1], [0], [0], [1], [0, 0, 1, 1], [], []>} : vector<8x128xbf16>, vector<128x64xbf16>, vector<8x64xf32> -> vector<8x64xf32>
    %c0_3 = arith.constant 0 : index
    %c0_4 = arith.constant 0 : index
    %4 = vector.load %arg3[%c0_3, %c0_4] : memref<1x64xf32, #tpu.memory_space<vmem>>, vector<1x64xf32>
    %5 = vector.broadcast %4 : vector<1x64xf32> to vector<8x64xf32>
    %6 = arith.addf %3, %5 : vector<8x64xf32>
    %c0_5 = arith.constant 0 : index
    %c0_6 = arith.constant 0 : index
    %7 = vector.load %arg4[%c0_5, %c0_6] : memref<8x64xf32, #tpu.memory_space<vmem>>, vector<8x64xf32>
    tpu.vector_store %arg4[%c0_5, %c0_6], %6 {strides = array<i32>} : memref<8x64xf32, #tpu.memory_space<vmem>>, vector<8x64xf32>,
    return
  }
  func.func @transform_0(%arg0: i32) -> (i32, i32) {
    %c0_i32 = arith.constant 0 : i32
    %c0_i32_0 = arith.constant 0 : i32
    return %arg0, %c0_i32 : i32, i32
  }
  func.func @transform_1(%arg0: i32) -> (i32, i32) {
    %c0_i32 = arith.constant 0 : i32
    %c0_i32_0 = arith.constant 0 : i32
    %c0_i32_1 = arith.constant 0 : i32
    return %c0_i32, %c0_i32_0 : i32, i32
  }
  func.func @transform_2(%arg0: i32) -> (i32, i32) {
    %c0_i32 = arith.constant 0 : i32
    %c0_i32_0 = arith.constant 0 : i32
    %c0_i32_1 = arith.constant 0 : i32
    return %c0_i32, %c0_i32_0 : i32, i32
  }
  func.func @transform_3(%arg0: i32) -> (i32, i32) {
    %c0_i32 = arith.constant 0 : i32
    %c0_i32_0 = arith.constant 0 : i32
    return %arg0, %c0_i32 : i32, i32
  }
}

</mosaic_0001>

<bundles_post_ra>
// kernel: vqvae_forward.7
= control target key start
LH: loop header
LB: loop body
LE: loop exit
PB: predicated region body
PF: predicated region fallthrough
CT: control target
= control target key end

     0   :  { %v134_v0 = vmov 0.0   ;;  %vm135_vm0 = vmmov 0   ;;  %vm56_vm1 = vcmask 523264   ;;  %s177_s1 = inlined_call_operand.vmem [shape: bf16[64,128], index: 1, kind: input, shape index: {}]   ;;  %s178_s0 = inlined_call_operand.vmem [shape: f32[8,64], index: 0, kind: input, shape index: {}]   ;;  %s179_s2 = inlined_call_operand.vmem [shape: f32[1,128], index: 2, kind: input, shape index: {}]   ;;  %s180_s3 = inlined_call_operand.vmem [shape: f32[8,128], index: 3, kind: output, shape index: {}]  }
   0x1   :  { %116 = vmatprep.subr.bf16.mxu0 %v134_v0  ;;  %v130_v1 = vld [vmem:[%s177_s1 + $0x18] sm:$0xff]   ;;  %124 = vmatprep.mubr.msk.bf16.mxu0 %vm135_vm0, %v134_v0  ;;  %v131_v2 = vld [vmem:[%s177_s1 + $0x10] sm:$0xff]   ;;  %v132_v3 = vld [vmem:[%s177_s1 + $0x8] sm:$0xff]  }
   0x2   :  { %117 = vmatpush3.bf16.msra.mxu0 %v130_v1  ;;  %v133_v4 = vld [vmem:[%s177_s1] sm:$0xff]  }
   0x3   :  { %118 = vmatprep.subr.bf16.mxu0 %v134_v0  ;;  %v15_v5 = vld [vmem:[%s178_s0] sm:$0xff] }
   0x4   :  { %v16_v6 = vpack.c.bf16 %v15_v5, %v15_v5  ;;  %v105_v7 = vld [vmem:[%s179_s2] ss:$0 sm:$0xff] }
   0x6   :  { %119 = vmatpush3.bf16.msra.mxu0 %v131_v2 }
   0x7   :  { %120 = vmatprep.subr.bf16.mxu0 %v134_v0 }
   0xa   :  { %121 = vmatpush3.bf16.msra.mxu0 %v132_v3 }
   0xb   :  { %122 = vmatprep.subr.bf16.mxu0 %v134_v0 }
   0xe   :  { %123 = vmatpush3.bf16.msra.mxu0 %v133_v4 }
  0x11   :  { %125 = vmatmul.mubr.msk.bf16.vlgmr.msra.gmra.mxu0 %vm56_vm1, %v16_v6 }
  0xd1   :  { %v94_v8 = vpop.f32.mrf.mxu0 }
  0xd2   :  { %v95_v9 = vadd.f32 %v105_v7, %v94_v8 }
  0xd3   :  { %v126_v10 = vpop.f32.mrf.mxu0 }
  0xd4   :  { %100 = vst [vmem:[%s180_s3] sm:$0xff] %v95_v9 }
  0xd5   :  { %v97_v11 = vpop.f32.mrf.mxu0 }
  0xd7   :  { %v127_v12 = vpop.f32.mrf.mxu0 }

// kernel: vqvae_forward.9
= control target key start
LH: loop header
LB: loop body
LE: loop exit
PB: predicated region body
PF: predicated region fallthrough
CT: control target
= control target key end

     0   :  { %s2558_s25 = smov 0   ;;  %s3019_s0 = inlined_call_operand.vmem [shape: f32[2,4,128], index: 0, kind: input, shape index: {}]   ;;  %s3020_s1 = inlined_call_operand.vmem [shape: bf16[128,384], index: 1, kind: input, shape index: {}]   ;;  %s3021_s2 = inlined_call_operand.vmem [shape: f32[1,384], index: 2, kind: input, shape index: {}]   ;;  %s3022_s3 = inlined_call_operand.vmem [shape: bf16[128,128], index: 3, kind: input, shape index: {}]   ;;  %s3023_s4 = inlined_call_operand.vmem [shape: f32[1,128], index: 4, kind: input, shape index: {}]   ;;  %s3024_s5 = inlined_call_operand.vmem [shape: f32[1,128], index: 5, kind: input, shape index: {}]   ;;  %s3025_s6 = inlined_call_operand.vmem [shape: f32[1,128], index: 6, kind: input, shape index: {}]   ;;  %s3026_s7 = inlined_call_operand.vmem [shape: bf16[128,512], index: 7, kind: input, shape index: {}]   ;;  %s3027_s8 = inlined_call_operand.vmem [shape: f32[1,512], index: 8, kind: input, shape index: {}]   ;;  %s3028_s9 = inlined_call_operand.vmem [shape: bf16[512,128], index: 9, kind: input, shape index: {}]   ;;  %s3029_s10 = inlined_call_operand.vmem [shape: f32[1,128], index: 10, kind: input, shape index: {}]   ;;  %s3030_s11 = inlined_call_operand.vmem [shape: f32[1,128], index: 11, kind: input, shape index: {}]   ;;  %s3031_s12 = inlined_call_operand.vmem [shape: f32[1,128], index: 12, kind: input, shape index: {}]   ;;  %s3032_s13 = inlined_call_operand.vmem [shape: f32[2,4,128], index: 13, kind: output, shape index: {}]  }
   0x1 LB: > { %s2035_s26 = sadd.s32 4294967295, %s2480_s25   ;;  %p2039_p0 = scmp.ge.s32.totalorder %s2480_s25, 1  ;;  %s2480_s25 = sphi %s2558_s25, %s23_s25  }
   0x2   : > { %p386_p1 = scmp.lt.s32.totalorder %s2480_s25, 3 }
   0x4   : > { %p387_p2 = pnand %p2039_p0, %p386_p1 }
   0x5   : > { %p428_p3 = scmp.lt.s32.totalorder (!%p387_p2), %s2035_s26, 1  ;;  %s2485_s21 = smov (!%p387_p2), 96  }
   0x6   : > { %390 = sbr.rel (%p387_p2) target bundleno = 2829 (0xb0d), region = 72  ;;  %s2487_s23 = smov (!%p387_p2), 32  }
   0xb   : > { %v2334_v0 = vld [vmem:[%s3020_s1 + $0xac] ss:$12 sps:$4 sm:$0xff]   ;;  %v2336_v1 = vld [vmem:[%s3020_s1 + $0xa8] ss:$12 sps:$4 sm:$0xff]   ;;  %v2482_v2 = vmov 0   ;;  %v2483_v4 = vmov 0.0   ;;  %v473_v28 = vlaneseq }
   0xc   : > { %648 = vmatprep.mubr.bf16.mxu0 %v2482_v2  ;;  %616 = vmatprep.subr.bf16.mxu0 %v2334_v0  ;;  %v2337_v3 = vld [vmem:[%s3020_s1 + $0x94] ss:$12 sps:$4 sm:$0xff]   ;;  %v2339_v5 = vld [vmem:[%s3020_s1 + $0x90] ss:$12 sps:$4 sm:$0xff]   ;;  %v2342_v7 = vld [vmem:[%s3020_s1 + $0x78] ss:$12 sps:$4 sm:$0xff]  }
   0xd   : > { %2232 = vmatprep.subr.bf16.mxu1 %v2483_v4  ;;  %617 = vmatpush1.bf16.msra.mxu0 %v2336_v1  ;;  %v2340_v6 = vld [vmem:[%s3020_s1 + $0x7c] ss:$12 sps:$4 sm:$0xff]   ;;  %v2343_v8 = vld [vmem:[%s3020_s1 + $0x64] ss:$12 sps:$4 sm:$0xff]   ;;  %v2345_v9 = vld [vmem:[%s3020_s1 + $0x60] ss:$12 sps:$4 sm:$0xff]  }
   0xe   : > { %618 = vmatprep.subr.bf16.mxu0 %v2337_v3  ;;  %s3034_s26 = smov (!%p428_p3, %s2035_s26), 1  ;;  %v2358_v10 = vld [vmem:[%s3020_s1 + $0xb0] ss:$12 sps:$4 sm:$0xff]   ;;  %v2346_v11 = vld [vmem:[%s3020_s1 + $0x4c] ss:$12 sps:$4 sm:$0xff]   ;;  %vm2484_vm0 = vmmov 0  }
   0xf   : > { %2233 = vmatpush3.bf16.msra.mxu1 %v2358_v10  ;;  %v2359_v12 = vld [vmem:[%s3020_s1 + $0x98] ss:$12 sps:$4 sm:$0xff]   ;;  %s2040_s17 = sshll.u32 %s3034_s26, 2  ;;  %v2348_v13 = vld [vmem:[%s3020_s1 + $0x48] ss:$12 sps:$4 sm:$0xff]   ;;  %2248 = vmatprep.mubr.msk.bf16.mxu1 %vm2484_vm0, %v2483_v4  ;;  %v2667_v29 = vshrl.u32 %v473_v28, 7 }
  0x10   : > { %2234 = vmatprep.subr.bf16.mxu1 %v2483_v4  ;;  %v2349_v14 = vld [vmem:[%s3020_s1 + $0x34] ss:$12 sps:$4 sm:$0xff]   ;;  %v2351_v15 = vld [vmem:[%s3020_s1 + $0x30] ss:$12 sps:$4 sm:$0xff]   ;;  %v2354_v19 = vld [vmem:[%s3020_s1 + $0x18] ss:$12 sps:$4 sm:$0xff]   ;;  %s431_s22 = scalar_lea.vmem %s3019_s0, %s2040_s17  ;;  %s435_s15 = scalar_lea.vmem %s3032_s13, %s2040_s17 }
  0x11   : > { %619 = vmatpush1.bf16.msra.mxu0 %v2339_v5  ;;  %v2360_v16 = vld [vmem:[%s3020_s1 + $0x80] ss:$12 sps:$4 sm:$0xff]   ;;  %v2352_v17 = vld [vmem:[%s3020_s1 + $0x1c] ss:$12 sps:$4 sm:$0xff]   ;;  %v2355_v20 = vld [vmem:[%s3020_s1 + $0x4] ss:$12 sps:$4 sm:$0xff]  }
  0x12   : > { %620 = vmatprep.subr.bf16.mxu0 %v2340_v6  ;;  %v2361_v18 = vld [vmem:[%s3020_s1 + $0x68] ss:$12 sps:$4 sm:$0xff]   ;;  %v2362_v21 = vld [vmem:[%s3020_s1 + $0x50] ss:$12 sps:$4 sm:$0xff]   ;;  %v2357_v22 = vld [vmem:[%s3020_s1] ss:$12 sps:$4 sm:$0xff]  }
  0x13   : > { %2235 = vmatpush3.bf16.msra.mxu1 %v2359_v12  ;;  %v2642_v23 = vld [vmem:[%s431_s22] sm:$0xf]  ;;  %v2363_v24 = vld [vmem:[%s3020_s1 + $0x38] ss:$12 sps:$4 sm:$0xff]   ;;  %v2365_v27 = vld [vmem:[%s3020_s1 + $0x8] ss:$12 sps:$4 sm:$0xff]  }
  0x14   : > { %2236 = vmatprep.subr.bf16.mxu1 %v2483_v4  ;;  %v438_v25 = vpack.c.bf16 %v2642_v23, %v2642_v23  ;;  %v2364_v26 = vld [vmem:[%s3020_s1 + $0x20] ss:$12 sps:$4 sm:$0xff]   ;;  %v475_v30 = vsub.s32 0, %v2667_v29  ;;  %v479_v32 = vsub.s32 1, %v2667_v29  ;;  %vm701_vm1 = vcmask 261120   ;;  %s2486_s22 = smov 64  }
  0x15   : > { %621 = vmatpush1.bf16.msra.mxu0 %v2342_v7  ;;  %v471_v31 = vld [vmem:[%s3021_s2] sm:$0x7]  ;;  %v483_v45 = vsub.s32 2, %v2667_v29  ;;  %vm765_vm2 = vcmask 1041408   ;;  %vm748_vm3 = vcmask 27648   ;;  %vm761_vm4 = vcmask 31744  }
  0x16   : > { %622 = vmatprep.subr.bf16.mxu0 %v2343_v8  ;;  %v476_v33 = vrot.slane %v471_v31, %v475_v30  ;;  %v480_v34 = vrot.slane %v471_v31, %v479_v32  ;;  %vm1155_vm5 = vcmask 523264   ;;  %vm1157_vm6 = vcmask 785408  }
  0x17   : > { %2237 = vmatpush3.bf16.msra.mxu1 %v2360_v16  ;;  %v484_v46 = vrot.slane %v471_v31, %v483_v45  ;;  %vm1274_vm7 = vcmask 1043456  }
  0x18   : > { %2238 = vmatprep.subr.bf16.mxu1 %v2483_v4 }
  0x19   : > { %623 = vmatpush1.bf16.msra.mxu0 %v2345_v9 }
  0x1a   : > { %624 = vmatprep.subr.bf16.mxu0 %v2346_v11 }
  0x1b   : > { %2239 = vmatpush3.bf16.msra.mxu1 %v2361_v18 }
  0x1c   : > { %2240 = vmatprep.subr.bf16.mxu1 %v2483_v4 }
  0x1d   : > { %625 = vmatpush1.bf16.msra.mxu0 %v2348_v13 }
  0x1e   : > { %626 = vmatprep.subr.bf16.mxu0 %v2349_v14 }
  0x1f   : > { %2241 = vmatpush3.bf16.msra.mxu1 %v2362_v21 }
  0x20   : > { %2242 = vmatprep.subr.bf16.mxu1 %v2483_v4 }
  0x21   : > { %627 = vmatpush1.bf16.msra.mxu0 %v2351_v15 }
  0x22   : > { %628 = vmatprep.subr.bf16.mxu0 %v2352_v17 }
  0x23   : > { %2243 = vmatpush3.bf16.msra.mxu1 %v2363_v24 }
  0x24   : > { %2244 = vmatprep.subr.bf16.mxu1 %v2483_v4 }
  0x25   : > { %629 = vmatpush1.bf16.msra.mxu0 %v2354_v19 }
  0x26   : > { %630 = vmatprep.subr.bf16.mxu0 %v2355_v20 }
  0x27   : > { %2245 = vmatpush3.bf16.msra.mxu1 %v2364_v26 }
  0x28   : > { %2246 = vmatprep.subr.bf16.mxu1 %v2483_v4 }
  0x29   : > { %631 = vmatpush1.bf16.msra.mxu0 %v2357_v22 }
  0x2a   : > { %2276 = vmatprep.subr.bf16.mxu0 %v2483_v4 }
  0x2b   : > { %2247 = vmatpush3.bf16.msra.mxu1 %v2365_v27 }
  0x2c   : > { %649 = vmatmul.mubr.bf16.vlgmr.msra.gmra.mxu0 %v438_v25  ;;  %2252 = vmatprep.subr.bf16.mxu1 %v2483_v4 }
  0x2d   : > { %2278 = vmatprep.mubr.msk.bf16.mxu0 %vm2484_vm0, %v2483_v4 }
  0x2e   : > { %2249 = vmatmul.mubr.bf16.vlgmr.msra.gmra.mxu1 %v438_v25 }
  0x2f   : > { %2254 = vmatprep.mubr.msk.bf16.mxu1 %vm2484_vm0, %v2483_v4 }
  0xec   : > { %v650_v35 = vpop.f32.mrf.mxu0 }
  0xed   : > { %v651_v36 = vadd.f32 %v650_v35, %v476_v33 }
  0xee   : > { %v652_v37 = vpop.f32.mrf.mxu0  ;;  %v691_v47 = vpop.f32.mrf.mxu1 }
  0xef   : > { %v653_v38 = vadd.f32 %v652_v37, %v480_v34  ;;  %v697_v40 = vmul.f32 0.17677669, %v651_v36  ;;  %v692_v48 = vadd.f32 %v691_v47, %v484_v46 }
  0xf0   : > { %v654_v39 = vpop.f32.mrf.mxu0  ;;  %v2250_v49 = vpop.f32.mrf.mxu1 }
  0xf1   : > { %v699_v41 = vpack.c.bf16 %v653_v38, %v653_v38  ;;  %v698_v44 = vpack.c.bf16 %v697_v40, %v697_v40  ;;  %v2691_v50 = vpack.c.bf16 %v692_v48, %v692_v48 }
  0xf2   : > { %v655_v42 = vpop.f32.mrf.mxu0  ;;  %v694_v51 = vpop.f32.mrf.mxu1 }
  0xf3   : > { %813 = vrot.lane.b32.xlu1 %v699_v41, %s2485_s21  ;;  %v706_v43 = vsel %vm701_vm1, %v699_v41, 0  ;;  %v767_v52 = vsel %vm765_vm2, %v2691_v50, 0 }
  0xf4   : > { %2253 = vmatpush3.bf16.xpose.msra.mxu1 %v706_v43  ;;  %v2251_v53 = vpop.f32.mrf.mxu1 }
  0xf5   : > { %2258 = vmatprep.subr.bf16.mxu1 %v2483_v4 }
  0xf7   : > { %810 = vrot.lane.b32.xlu1 %v698_v44, %s2485_s21 }
  0xfb   : > { %922 = vrot.lane.b32.xlu1 %v698_v44, %s2486_s22  ;;  %2255 = vmatmul.mubr.msk.bf16.vlgmr.msra.gmra.mxu1 %vm701_vm1, %v698_v44 }
  0xfc   : > { %2260 = vmatprep.mubr.msk.bf16.mxu1 %vm2484_vm0, %v2483_v4  ;;  %2259 = vmatpush3.bf16.msra.mxu1 %v767_v52 }
  0xfd   : > { %2264 = vmatprep.subr.bf16.mxu1 %v2483_v4 }
  0xff   : > { %1034 = vrot.lane.b32.xlu1 %v699_v41, %s2487_s23 }
 0x103   : > { %1032 = vrot.lane.b32.xlu1 %v698_v44, %s2487_s23 }
 0x165   : > { %v814_v0 = vpop.permute.xlu1 %813 }
 0x166   : > { %v819_v13 = vsel %vm701_vm1, %v814_v0, 0 }
 0x169   : > { %v811_v1 = vpop.permute.xlu1 %810 }
 0x16d   : > { %v923_v5 = vpop.permute.xlu1 %922 }
 0x171   : > { %v1035_v8 = vpop.permute.xlu1 %1034 }
 0x172   : > { %v1040_v9 = vsel %vm701_vm1, %v1035_v8, 0 }
 0x175   : > { %v1033_v14 = vpop.permute.xlu1 %1032 }
 0x1bb   : > { %v742_v54 = vpop.f32.mrf.mxu1 }
 0x1bc   : > { %v749_v55 = vsel %vm748_vm3, %v742_v54, -inf }
 0x1bd   : > { %750 = vmax.xlane.f32.xlu0 %v749_v55  ;;  %v2256_v56 = vpop.f32.mrf.mxu1 }
 0x1bf   : > { %v745_v57 = vpop.f32.mrf.mxu1 }
 0x1c1   : > { %v2257_v58 = vpop.f32.mrf.mxu1 }
 0x246   : > { %v751_v59 = vpop.xlane.xlu0 %750 }
 0x247   : > { %v752_v60 = vsub.f32 %v742_v54, %v751_v59 }
 0x249   : > { %v753_v61 = vmul.f32 1.442695, %v752_v60 }
 0x24b   : > { %2454 = vpow2.f32 %v753_v61 }
 0x258   : > { %v2455_v62 = vpop.eup %2454 }
 0x259   : > { %v755_v63 = vsel %vm748_vm3, %v2455_v62, 0.0 }
 0x25a   : > { %756 = vadd.xlane.f32.xlu0 %v755_v63 }
 0x270   : > { %924 = vrot.lane.b32.xlu0 %v699_v41, %s2486_s22 }
 0x2e3   : > { %v757_v3 = vpop.xlane.xlu0 %756 }
 0x2e4   : > { %2456 = vrcp.f32 %v757_v3 }
 0x2e7   : > { %v925_v6 = vpop.permute.xlu0 %924 }
 0x2e8   : > { %v930_v7 = vsel %vm701_vm1, %v925_v6, 0 }
 0x2e9   : > { %2277 = vmatpush3.bf16.xpose.msra.mxu0 %v930_v7 }
 0x2ea   : > { %2288 = vmatprep.subr.bf16.mxu0 %v2483_v4 }
 0x2f0   : > { %2279 = vmatmul.mubr.msk.bf16.vlgmr.msra.gmra.mxu0 %vm701_vm1, %v923_v5 }
 0x2f1   : > { %v2457_v10 = vpop.eup %2456  ;;  %2289 = vmatpush3.bf16.xpose.msra.mxu0 %v1040_v9  ;;  %2290 = vmatprep.mubr.msk.bf16.mxu0 %vm2484_vm0, %v2483_v4 }
 0x2f2   : > { %v759_v11 = vmul.f32 %v2457_v10, %v2455_v62  ;;  %2300 = vmatprep.subr.bf16.mxu0 %v2483_v4  ;;  %v2366_v10 = vld [vmem:[%s3022_s3 + $0x38] sm:$0xff]  }
 0x2f4   : > { %v760_v12 = vpack.c.bf16 %v759_v11, %v759_v11  ;;  %v2367_v11 = vld [vmem:[%s3022_s3 + $0x30] sm:$0xff]  }
 0x2f6   : > { %2261 = vmatmul.mubr.msk.bf16.vlgmr.msra.gmra.mxu1 %vm761_vm4, %v760_v12  ;;  %v2368_v12 = vld [vmem:[%s3022_s3 + $0x28] sm:$0xff]  }
 0x2f7   : > { %2265 = vmatpush3.bf16.xpose.msra.mxu1 %v819_v13  ;;  %2266 = vmatprep.mubr.msk.bf16.mxu1 %vm2484_vm0, %v2483_v4  ;;  %v2369_v13 = vld [vmem:[%s3022_s3 + $0x20] sm:$0xff]  }
 0x2f8   : > { %2291 = vmatmul.mubr.msk.bf16.vlgmr.msra.gmra.mxu0 %vm701_vm1, %v1033_v14  ;;  %2270 = vmatprep.subr.bf16.mxu1 %v2483_v4  ;;  %v2370_v14 = vld [vmem:[%s3022_s3 + $0x18] sm:$0xff]  }
 0x2f9   : > { %2316 = vmatprep.mubr.msk.bf16.mxu0 %vm2484_vm0, %v2483_v4  ;;  %2301 = vmatpush3.bf16.msra.mxu0 %v2366_v10  ;;  %v2406_v10 = vld [vmem:[%s3026_s7 + $0x44] ss:$16 sps:$4 sm:$0xff]  }
 0x2fa   : > { %2302 = vmatprep.subr.bf16.mxu0 %v2483_v4 }
 0x2fd   : > { %2303 = vmatpush3.bf16.msra.mxu0 %v2367_v11  ;;  %v2409_v11 = vld [vmem:[%s3026_s7 + $0x4c] ss:$16 sps:$4 sm:$0xff]  }
 0x2fe   : > { %2267 = vmatmul.mubr.msk.bf16.vlgmr.msra.gmra.mxu1 %vm701_vm1, %v811_v1  ;;  %2304 = vmatprep.subr.bf16.mxu0 %v2483_v4 }
 0x2ff   : > { %2272 = vmatprep.mubr.msk.bf16.mxu1 %vm2484_vm0, %v2483_v4 }
 0x301   : > { %2305 = vmatpush3.bf16.msra.mxu0 %v2368_v12  ;;  %v2404_v12 = vld [vmem:[%s3026_s7 + $0x40] ss:$16 sps:$4 sm:$0xff]  }
 0x302   : > { %2306 = vmatprep.subr.bf16.mxu0 %v2483_v4 }
 0x305   : > { %2307 = vmatpush3.bf16.msra.mxu0 %v2369_v13  ;;  %v2407_v13 = vld [vmem:[%s3026_s7 + $0x48] ss:$16 sps:$4 sm:$0xff]  }
 0x306   : > { %2308 = vmatprep.subr.bf16.mxu0 %v2483_v4 }
 0x309   : > { %2309 = vmatpush3.bf16.msra.mxu0 %v2370_v14  ;;  %v2412_v14 = vld [vmem:[%s3026_s7 + $0x24] ss:$16 sps:$4 sm:$0xff]  }
 0x30a   : > { %2310 = vmatprep.subr.bf16.mxu0 %v2483_v4 }
 0x3b0   : > { %v966_v15 = vpop.f32.mrf.mxu0 }
 0x3b1   : > { %v972_v16 = vsel %vm748_vm3, %v966_v15, -inf }
 0x3b2   : > { %973 = vmax.xlane.f32.xlu0 %v972_v16  ;;  %v2280_v17 = vpop.f32.mrf.mxu0  ;;  %v2372_v16 = vld [vmem:[%s3022_s3 + $0x8] sm:$0xff]  }
 0x3b4   : > { %v969_v18 = vpop.f32.mrf.mxu0 }
 0x3b6   : > { %v2718_v19 = vpop.f32.mrf.mxu1  ;;  %v2281_v20 = vpop.f32.mrf.mxu0 }
 0x3b7   : > { %v2373_v20 = vld [vmem:[%s3022_s3] sm:$0xff]  }
 0x3b8   : > { %v2262_v21 = vpop.f32.mrf.mxu1  ;;  %v1076_v22 = vpop.f32.mrf.mxu0 }
 0x3b9   : > { %v1082_v36 = vsel %vm748_vm3, %v1076_v22, -inf }
 0x3ba   : > { %v806_v24 = vpop.f32.mrf.mxu1  ;;  %v2292_v25 = vpop.f32.mrf.mxu0 }
 0x3bc   : > { %v2263_v26 = vpop.f32.mrf.mxu1  ;;  %v1079_v27 = vpop.f32.mrf.mxu0 }
 0x3be   : > { %v855_v28 = vpop.f32.mrf.mxu1  ;;  %v2293_v31 = vpop.f32.mrf.mxu0 }
 0x3bf   : > { %v861_v33 = vsel %vm748_vm3, %v855_v28, -inf }
 0x3c0   : > { %862 = vmax.xlane.f32.xlu1 %v861_v33  ;;  %v2268_v34 = vpop.f32.mrf.mxu1 }
 0x3c2   : > { %v858_v35 = vpop.f32.mrf.mxu1 }
 0x3c4   : > { %1083 = vmax.xlane.f32.xlu1 %v1082_v36  ;;  %v2269_v37 = vpop.f32.mrf.mxu1 }
 0x43b   : > { %v974_v38 = vpop.xlane.xlu0 %973 }
 0x43c   : > { %v975_v39 = vsub.f32 %v966_v15, %v974_v38  ;;  %v2371_v15 = vld [vmem:[%s3022_s3 + $0x10] sm:$0xff]  }
 0x43d   : > { %2311 = vmatpush3.bf16.msra.mxu0 %v2371_v15  ;;  %v2415_v15 = vld [vmem:[%s3026_s7 + $0x2c] ss:$16 sps:$4 sm:$0xff]  }
 0x43e   : > { %v976_v40 = vmul.f32 1.442695, %v975_v39  ;;  %2312 = vmatprep.subr.bf16.mxu0 %v2483_v4 }
 0x440   : > { %2458 = vpow2.f32 %v976_v40 }
 0x441   : > { %2313 = vmatpush3.bf16.msra.mxu0 %v2372_v16  ;;  %v2410_v16 = vld [vmem:[%s3026_s7 + $0x20] ss:$16 sps:$4 sm:$0xff]  }
 0x442   : > { %2314 = vmatprep.subr.bf16.mxu0 %v2483_v4 }
 0x445   : > { %2315 = vmatpush3.bf16.msra.mxu0 %v2373_v20  ;;  %v2421_v20 = vld [vmem:[%s3026_s7 + $0xc] ss:$16 sps:$4 sm:$0xff]  }
 0x449   : > { %v863_v41 = vpop.xlane.xlu1 %862 }
 0x44a   : > { %v864_v42 = vsub.f32 %v855_v28, %v863_v41  ;;  %v2074_v41 = vld [vmem:[%s3023_s4] ss:$0 sm:$0xff] }
 0x44c   : > { %v865_v48 = vmul.f32 1.442695, %v864_v42 }
 0x44d   : > { %v2459_v43 = vpop.eup %2458  ;;  %v1084_v44 = vpop.xlane.xlu1 %1083 }
 0x44e   : > { %v1085_v46 = vsub.f32 %v1076_v22, %v1084_v44  ;;  %v978_v47 = vsel %vm748_vm3, %v2459_v43, 0.0 }
 0x44f   : > { %979 = vadd.xlane.f32.xlu0 %v978_v47 }
 0x450   : > { %v1086_v49 = vmul.f32 1.442695, %v1085_v46 }
 0x452   : > { %2460 = vpow2.f32 %v1086_v49  ;;  %v2374_v49 = vld [vmem:[%s3026_s7 + $0xe0] ss:$16 sps:$4 sm:$0xff]  }
 0x453   : > { %2462 = vpow2.f32 %v865_v48 }
 0x45f   : > { %v2461_v51 = vpop.eup %2460 }
 0x460   : > { %v1088_v52 = vsel %vm748_vm3, %v2461_v51, 0.0  ;;  %v2463_v53 = vpop.eup %2462 }
 0x461   : > { %1089 = vadd.xlane.f32.xlu1 %v1088_v52  ;;  %v867_v54 = vsel %vm748_vm3, %v2463_v53, 0.0  ;;  %v2382_v52 = vld [vmem:[%s3026_s7 + $0xc4] ss:$16 sps:$4 sm:$0xff]  }
 0x465   : > { %874 = vrot.lane.b32.xlu0 %v2691_v50, %s2485_s21  ;;  %868 = vadd.xlane.f32.xlu1 %v867_v54  ;;  %v2380_v54 = vld [vmem:[%s3026_s7 + $0xc0] ss:$16 sps:$4 sm:$0xff]  }
 0x476   : > { %984 = vrot.lane.b32.xlu1 %v2691_v50, %s2486_s22 }
 0x47a   : > { %1094 = vrot.lane.b32.xlu1 %v2691_v50, %s2487_s23 }
 0x4d8   : > { %v980_v55 = vpop.xlane.xlu0 %979 }
 0x4dc   : > { %v875_v56 = vpop.permute.xlu0 %874 }
 0x4dd   : > { %v880_v57 = vsel %vm765_vm2, %v875_v56, 0 }
 0x4de   : > { %2271 = vmatpush3.bf16.msra.mxu1 %v880_v57 }
 0x4df   : > { %2282 = vmatprep.subr.bf16.mxu1 %v2483_v4 }
 0x4ea   : > { %v1090_v58 = vpop.xlane.xlu1 %1089 }
 0x4ee   : > { %v869_v59 = vpop.xlane.xlu1 %868 }
 0x4ef   : > { %2464 = vrcp.f32 %v869_v59 }
 0x4f0   : > { %2466 = vrcp.f32 %v980_v55  ;;  %v2383_v55 = vld [vmem:[%s3026_s7 + $0xc8] ss:$16 sps:$4 sm:$0xff]  }
 0x4f1   : > { %2468 = vrcp.f32 %v1090_v58 }
 0x4f2   : > { %v985_v62 = vpop.permute.xlu1 %984 }
 0x4f3   : > { %v990_v1 = vsel %vm765_vm2, %v985_v62, 0  ;;  %v2391_v62 = vld [vmem:[%s3026_s7 + $0xac] ss:$16 sps:$4 sm:$0xff]  }
 0x4f6   : > { %v1095_v3 = vpop.permute.xlu1 %1094 }
 0x4f7   : > { %v1100_v7 = vsel %vm765_vm2, %v1095_v3, 0  ;;  %v2395_v3 = vld [vmem:[%s3026_s7 + $0x88] ss:$16 sps:$4 sm:$0xff]  }
 0x4fc   : > { %v2465_v60 = vpop.eup %2464 }
 0x4fd   : > { %v871_v61 = vmul.f32 %v2465_v60, %v2463_v53  ;;  %v2467_v0 = vpop.eup %2466  ;;  %v2385_v53 = vld [vmem:[%s3026_s7 + $0xcc] ss:$16 sps:$4 sm:$0xff]  }
 0x4fe   : > { %v982_v50 = vmul.f32 %v2467_v0, %v2459_v43  ;;  %v2469_v6 = vpop.eup %2468  ;;  %v2389_v0 = vld [vmem:[%s3026_s7 + $0xa8] ss:$16 sps:$4 sm:$0xff]  }
 0x4ff   : > { %v872_v63 = vpack.c.bf16 %v871_v61, %v871_v61  ;;  %v1092_v8 = vmul.f32 %v2469_v6, %v2461_v51  ;;  %v2377_v51 = vld [vmem:[%s3026_s7 + $0xe8] ss:$16 sps:$4 sm:$0xff]   ;;  %v2388_v61 = vld [vmem:[%s3026_s7 + $0xa4] ss:$16 sps:$4 sm:$0xff]  }
 0x500   : > { %v983_v5 = vpack.c.bf16 %v982_v50, %v982_v50  ;;  %v2394_v50 = vld [vmem:[%s3026_s7 + $0x84] ss:$16 sps:$4 sm:$0xff]  }
 0x501   : > { %2273 = vmatmul.mubr.msk.bf16.vlgmr.msra.gmra.mxu1 %vm761_vm4, %v872_v63  ;;  %v1093_v9 = vpack.c.bf16 %v1092_v8, %v1092_v8  ;;  %v2386_v63 = vld [vmem:[%s3026_s7 + $0xa0] ss:$16 sps:$4 sm:$0xff]   ;;  %v2400_v6 = vld [vmem:[%s3026_s7 + $0x64] ss:$16 sps:$4 sm:$0xff]  }
 0x502   : > { %2283 = vmatpush3.bf16.msra.mxu1 %v990_v1  ;;  %2284 = vmatprep.mubr.msk.bf16.mxu1 %vm2484_vm0, %v2483_v4  ;;  %v2392_v1 = vld [vmem:[%s3026_s7 + $0x80] ss:$16 sps:$4 sm:$0xff]  }
 0x503   : > { %2294 = vmatprep.subr.bf16.mxu1 %v2483_v4  ;;  %v2398_v8 = vld [vmem:[%s3026_s7 + $0x60] ss:$16 sps:$4 sm:$0xff]  }
 0x509   : > { %2285 = vmatmul.mubr.msk.bf16.vlgmr.msra.gmra.mxu1 %vm761_vm4, %v983_v5  ;;  %v2397_v5 = vld [vmem:[%s3026_s7 + $0x8c] ss:$16 sps:$4 sm:$0xff]  }
 0x50a   : > { %2295 = vmatpush3.bf16.msra.mxu1 %v1100_v7  ;;  %2296 = vmatprep.mubr.msk.bf16.mxu1 %vm2484_vm0, %v2483_v4  ;;  %v2403_v7 = vld [vmem:[%s3026_s7 + $0x6c] ss:$16 sps:$4 sm:$0xff]  }
 0x511   : > { %2297 = vmatmul.mubr.msk.bf16.vlgmr.msra.gmra.mxu1 %vm761_vm4, %v1093_v9  ;;  %v2401_v9 = vld [vmem:[%s3026_s7 + $0x68] ss:$16 sps:$4 sm:$0xff]  }
 0x512   : > { %1550 = vmatprep.mubr.bf16.mxu1 %v2482_v2 }
 0x5c1   : > { %v916_v17 = vpop.f32.mrf.mxu1 }
 0x5c2   : > { %1143 = vrot.lane.b32.xlu0 %v916_v17, %s2487_s23  ;;  %v2413_v17 = vld [vmem:[%s3026_s7 + $0x28] ss:$16 sps:$4 sm:$0xff]  }
 0x5c3   : > { %v2274_v18 = vpop.f32.mrf.mxu1 }
 0x5c4   : > { %v2418_v18 = vld [vmem:[%s3026_s7 + $0x4] ss:$16 sps:$4 sm:$0xff]  }
 0x5c5   : > { %v919_v21 = vpop.f32.mrf.mxu1 }
 0x5c6   : > { %v2416_v21 = vld [vmem:[%s3026_s7] ss:$16 sps:$4 sm:$0xff]  }
 0x5c7   : > { %v2275_v22 = vpop.f32.mrf.mxu1 }
 0x5c8   : > { %v2419_v22 = vld [vmem:[%s3026_s7 + $0x8] ss:$16 sps:$4 sm:$0xff]  }
 0x5c9   : > { %v1026_v24 = vpop.f32.mrf.mxu1 }
 0x5ca   : > { %1147 = vrot.lane.b32.xlu1 %v1026_v24, %s2486_s22  ;;  %v2422_v24 = vld [vmem:[%s3028_s9 + $0x78] sm:$0xff]  }
 0x5cb   : > { %v2286_v25 = vpop.f32.mrf.mxu1 }
 0x5cc   : > { %v2423_v25 = vld [vmem:[%s3028_s9 + $0xf8] sm:$0xff]  }
 0x5cd   : > { %v1029_v26 = vpop.f32.mrf.mxu1 }
 0x5cf   : > { %v2287_v27 = vpop.f32.mrf.mxu1 }
 0x5d1   : > { %v1136_v28 = vpop.f32.mrf.mxu1 }
 0x5d2   : > { %1151 = vrot.lane.b32.xlu0 %v1136_v28, %s2485_s21 }
 0x5d3   : > { %v2298_v31 = vpop.f32.mrf.mxu1 }
 0x5d5   : > { %v1139_v33 = vpop.f32.mrf.mxu1 }
 0x5d6   : > { %v2083_v33 = vld [vmem:[%s3024_s5] ss:$0 sm:$0xff] }
 0x5d7   : > { %v2299_v34 = vpop.f32.mrf.mxu1 }
 0x634   : > { %v1144_v4 = vpop.permute.xlu0 %1143 }
 0x635   : > { %v1154_v36 = vsel %vm701_vm1, %v2718_v19, %v1144_v4  ;;  %v2084_v4 = vld [vmem:[%s3025_s6] ss:$0 sm:$0xff] }
 0x63c   : > { %v1148_v35 = vpop.permute.xlu1 %1147 }
 0x63d   : > { %v1156_v37 = vsel %vm1155_vm5, %v1154_v36, %v1148_v35 }
 0x644   : > { %v1152_v38 = vpop.permute.xlu0 %1151 }
 0x645   : > { %v1158_v39 = vsel %vm1157_vm6, %v1156_v37, %v1152_v38  ;;  %v2424_v37 = vld [vmem:[%s3028_s9 + $0x38] sm:$0xff]  }
 0x646   : > { %v1159_v40 = vpack.c.bf16 %v1158_v39, %v1158_v39  ;;  %v2425_v38 = vld [vmem:[%s3028_s9 + $0xb8] sm:$0xff]  }
 0x648   : > { %2317 = vmatmul.mubr.bf16.vlgmr.msra.gmra.mxu0 %v1159_v40  ;;  %v2426_v40 = vld [vmem:[%s3028_s9 + $0x70] sm:$0xff]  }
 0x649   : > { %1591 = vmatprep.mubr.bf16.mxu0 %v2482_v2  ;;  %v2376_v2 = vld [vmem:[%s3026_s7 + $0xe4] ss:$16 sps:$4 sm:$0xff]  }
 0x64a   : > { %1518 = vmatprep.subr.bf16.mxu1 %v2376_v2  ;;  %v2436_v2 = vld [vmem:[%s3028_s9 + $0x20] sm:$0xff]  }
 0x64b   : > { %1519 = vmatpush1.bf16.msra.mxu1 %v2374_v49  ;;  %v2435_v49 = vld [vmem:[%s3028_s9 + $0xe0] sm:$0xff]  }
 0x64c   : > { %1520 = vmatprep.subr.bf16.mxu1 %v2382_v52  ;;  %v2439_v52 = vld [vmem:[%s3028_s9 + $0xd8] sm:$0xff]  }
 0x64f   : > { %1521 = vmatpush1.bf16.msra.mxu1 %v2380_v54  ;;  %v2441_v54 = vld [vmem:[%s3028_s9 + $0x98] sm:$0xff]  }
 0x650   : > { %1522 = vmatprep.subr.bf16.mxu1 %v2388_v61  ;;  %v2448_v61 = vld [vmem:[%s3028_s9 + $0x8] sm:$0xff]  }
 0x653   : > { %1523 = vmatpush1.bf16.msra.mxu1 %v2386_v63  ;;  %v2450_v63 = vld [vmem:[%s3028_s9 + $0x40] sm:$0xff]  }
 0x654   : > { %1524 = vmatprep.subr.bf16.mxu1 %v2394_v50  ;;  %v2453_v50 = vld [vmem:[%s3028_s9 + $0x80] sm:$0xff]  }
 0x657   : > { %1525 = vmatpush1.bf16.msra.mxu1 %v2392_v1  ;;  %v2452_v1 = vld [vmem:[%s3028_s9] sm:$0xff]  }
 0x658   : > { %1526 = vmatprep.subr.bf16.mxu1 %v2400_v6 }
 0x65b   : > { %1527 = vmatpush1.bf16.msra.mxu1 %v2398_v8 }
 0x65c   : > { %1528 = vmatprep.subr.bf16.mxu1 %v2406_v10 }
 0x65f   : > { %1529 = vmatpush1.bf16.msra.mxu1 %v2404_v12 }
 0x660   : > { %1530 = vmatprep.subr.bf16.mxu1 %v2412_v14 }
 0x663   : > { %1531 = vmatpush1.bf16.msra.mxu1 %v2410_v16 }
 0x664   : > { %1532 = vmatprep.subr.bf16.mxu1 %v2418_v18 }
 0x667   : > { %1533 = vmatpush1.bf16.msra.mxu1 %v2416_v21 }
 0x668   : > { %2188 = vmatprep.subr.bf16.mxu1 %v2422_v24 }
 0x708   : > { %v1265_v42 = vpop.f32.mrf.mxu0 }
 0x709   : > { %v1266_v43 = vadd.f32 %v2074_v41, %v1265_v42  ;;  %v2427_v41 = vld [vmem:[%s3028_s9 + $0xf0] sm:$0xff]  }
 0x70a   : > { %v2318_v44 = vpop.f32.mrf.mxu0  ;;  %v2428_v42 = vld [vmem:[%s3028_s9 + $0x30] sm:$0xff]  }
 0x70b   : > { %v1271_v46 = vadd.f32 %v1266_v43, %v2642_v23  ;;  %v2379_v23 = vld [vmem:[%s3026_s7 + $0xec] ss:$16 sps:$4 sm:$0xff]   ;;  %v2429_v43 = vld [vmem:[%s3028_s9 + $0xb0] sm:$0xff]  }
 0x70c   : > { %v1268_v47 = vpop.f32.mrf.mxu0  ;;  %1559 = vmatprep.subr.bf16.mxu0 %v2379_v23  ;;  %v2430_v44 = vld [vmem:[%s3028_s9 + $0x68] sm:$0xff]   ;;  %v2438_v23 = vld [vmem:[%s3028_s9 + $0x58] sm:$0xff]  }
 0x70d   : > { %v1275_v19 = vsel %vm1274_vm7, %v1271_v46, 0.0  ;;  %1560 = vmatpush1.bf16.msra.mxu0 %v2377_v51  ;;  %v2432_v47 = vld [vmem:[%s3028_s9 + $0x28] sm:$0xff]   ;;  %v2437_v51 = vld [vmem:[%s3028_s9 + $0xa0] sm:$0xff]  }
 0x70e   : > { %1276 = vadd.xlane.f32.xlu1 %v1275_v19  ;;  %v2319_v48 = vpop.f32.mrf.mxu0  ;;  %1561 = vmatprep.subr.bf16.mxu0 %v2385_v53  ;;  %v2433_v19 = vld [vmem:[%s3028_s9 + $0xa8] sm:$0xff]   ;;  %v2440_v53 = vld [vmem:[%s3028_s9 + $0x18] sm:$0xff]  }
 0x70f   : > { %v2434_v48 = vld [vmem:[%s3028_s9 + $0x60] sm:$0xff]  }
 0x711   : > { %1562 = vmatpush1.bf16.msra.mxu0 %v2383_v55  ;;  %v2442_v55 = vld [vmem:[%s3028_s9 + $0x50] sm:$0xff]  }
 0x712   : > { %1563 = vmatprep.subr.bf16.mxu0 %v2391_v62  ;;  %v2449_v62 = vld [vmem:[%s3028_s9 + $0x88] sm:$0xff]  }
 0x715   : > { %1564 = vmatpush1.bf16.msra.mxu0 %v2389_v0  ;;  %v2451_v0 = vld [vmem:[%s3028_s9 + $0xc0] sm:$0xff]  }
 0x716   : > { %1565 = vmatprep.subr.bf16.mxu0 %v2397_v5  ;;  %v1352_v5 = vsub.s32 3, %v2667_v29 }
 0x719   : > { %1566 = vmatpush1.bf16.msra.mxu0 %v2395_v3  ;;  %v1336_v3 = vld [vmem:[%s3027_s8] sm:$0xf] }
 0x71a   : > { %1567 = vmatprep.subr.bf16.mxu0 %v2403_v7  ;;  %v1341_v6 = vrot.slane %v1336_v3, %v475_v30  ;;  %v1349_v7 = vrot.slane %v1336_v3, %v483_v45  ;;  %v1345_v8 = vrot.slane %v1336_v3, %v479_v32 }
 0x71d   : > { %1568 = vmatpush1.bf16.msra.mxu0 %v2401_v9  ;;  %v1353_v9 = vrot.slane %v1336_v3, %v1352_v5 }
 0x71e   : > { %1569 = vmatprep.subr.bf16.mxu0 %v2409_v11 }
 0x721   : > { %1570 = vmatpush1.bf16.msra.mxu0 %v2407_v13 }
 0x722   : > { %1571 = vmatprep.subr.bf16.mxu0 %v2415_v15 }
 0x725   : > { %1572 = vmatpush1.bf16.msra.mxu0 %v2413_v17 }
 0x726   : > { %1573 = vmatprep.subr.bf16.mxu0 %v2421_v20 }
 0x729   : > { %1574 = vmatpush1.bf16.msra.mxu0 %v2419_v22 }
 0x72a   : > { %2210 = vmatprep.subr.bf16.mxu0 %v2423_v25 }
 0x797   : > { %v1277_v56 = vpop.xlane.xlu1 %1276 }
 0x798   : > { %v1279_v57 = vmul.f32 0.0078125, %v1277_v56  ;;  %v2443_v56 = vld [vmem:[%s3028_s9 + $0xd0] sm:$0xff]  }
 0x79a   : > { %v1280_v58 = vsub.f32 %v1271_v46, %v1279_v57  ;;  %v2431_v46 = vld [vmem:[%s3028_s9 + $0xe8] sm:$0xff]   ;;  %v2444_v57 = vld [vmem:[%s3028_s9 + $0x10] sm:$0xff]  }
 0x79c   : > { %v1281_v59 = vmul.f32 %v1280_v58, %v1280_v58 }
 0x79e   : > { %v1282_v60 = vsel %vm1274_vm7, %v1281_v59, 0.0  ;;  %v2446_v59 = vld [vmem:[%s3028_s9 + $0x48] sm:$0xff]  }
 0x79f   : > { %1283 = vadd.xlane.f32.xlu0 %v1282_v60  ;;  %v2447_v60 = vld [vmem:[%s3028_s9 + $0xc8] sm:$0xff]  }
 0x828   : > { %v1284_v26 = vpop.xlane.xlu0 %1283 }
 0x829   : > { %v1285_v27 = vmul.f32 0.0078125, %v1284_v26 }
 0x82b   : > { %v1286_v28 = vadd.f32 1e-05, %v1285_v27 }
 0x82d   : > { %2470 = vrsqrt.f32 %v1286_v28 }
 0x83a   : > { %v2471_v31 = vpop.eup %2470 }
 0x83b   : > { %v1288_v34 = vmul.f32 %v2471_v31, %v1280_v58  ;;  %v2445_v58 = vld [vmem:[%s3028_s9 + $0x90] sm:$0xff]  }
 0x83d   : > { %v1295_v35 = vmul.f32 %v2083_v33, %v1288_v34  ;;  %v2117_v33 = vld [vmem:[%s3029_s10] ss:$0 sm:$0xff] }
 0x83f   : > { %v2895_v36 = vadd.f32 %v2084_v4, %v1295_v35 }
 0x841   : > { %v1303_v39 = vpack.c.bf16 %v2895_v36, %v2895_v36 }
 0x843   : > { %1551 = vmatmul.mubr.bf16.vlgmr.msra.gmra.mxu1 %v1303_v39  ;;  %1592 = vmatmul.mubr.bf16.vlgmr.msra.gmra.mxu0 %v1303_v39 }
 0x844   : > { %2189 = vmatpush3.bf16.msra.mxu1 %v2424_v37  ;;  %2211 = vmatpush3.bf16.msra.mxu0 %v2425_v38 }
 0x845   : > { %2190 = vmatprep.subr.bf16.mxu1 %v2426_v40  ;;  %2212 = vmatprep.subr.bf16.mxu0 %v2427_v41 }
 0x848   : > { %2191 = vmatpush3.bf16.msra.mxu1 %v2428_v42  ;;  %2213 = vmatpush3.bf16.msra.mxu0 %v2429_v43 }
 0x849   : > { %2192 = vmatprep.subr.bf16.mxu1 %v2430_v44  ;;  %2214 = vmatprep.subr.bf16.mxu0 %v2431_v46 }
 0x84c   : > { %2193 = vmatpush3.bf16.msra.mxu1 %v2432_v47  ;;  %2215 = vmatpush3.bf16.msra.mxu0 %v2433_v19 }
 0x84d   : > { %2194 = vmatprep.subr.bf16.mxu1 %v2434_v48  ;;  %2216 = vmatprep.subr.bf16.mxu0 %v2435_v49 }
 0x850   : > { %2195 = vmatpush3.bf16.msra.mxu1 %v2436_v2  ;;  %2217 = vmatpush3.bf16.msra.mxu0 %v2437_v51 }
 0x851   : > { %2196 = vmatprep.subr.bf16.mxu1 %v2438_v23  ;;  %2218 = vmatprep.subr.bf16.mxu0 %v2439_v52 }
 0x854   : > { %2197 = vmatpush3.bf16.msra.mxu1 %v2440_v53  ;;  %2219 = vmatpush3.bf16.msra.mxu0 %v2441_v54 }
 0x855   : > { %2198 = vmatprep.subr.bf16.mxu1 %v2442_v55  ;;  %2220 = vmatprep.subr.bf16.mxu0 %v2443_v56  ;;  %v2151_v55 = vld [vmem:[%s3031_s12] ss:$0 sm:$0xff] }
 0x858   : > { %2199 = vmatpush3.bf16.msra.mxu1 %v2444_v57  ;;  %2221 = vmatpush3.bf16.msra.mxu0 %v2445_v58 }
 0x859   : > { %2200 = vmatprep.subr.bf16.mxu1 %v2446_v59  ;;  %2222 = vmatprep.subr.bf16.mxu0 %v2447_v60 }
 0x85c   : > { %2201 = vmatpush3.bf16.msra.mxu1 %v2448_v61  ;;  %2223 = vmatpush3.bf16.msra.mxu0 %v2449_v62 }
 0x85d   : > { %2202 = vmatprep.subr.bf16.mxu1 %v2450_v63  ;;  %2224 = vmatprep.subr.bf16.mxu0 %v2451_v0 }
 0x860   : > { %2203 = vmatpush3.bf16.msra.mxu1 %v2452_v1  ;;  %2225 = vmatpush3.bf16.msra.mxu0 %v2453_v50 }
 0x903   : > { %v1552_v10 = vpop.f32.mrf.mxu1  ;;  %v1593_v11 = vpop.f32.mrf.mxu0 }
 0x904   : > { %v1553_v12 = vadd.f32 %v1552_v10, %v1341_v6  ;;  %v1594_v13 = vadd.f32 %v1593_v11, %v1349_v7 }
 0x905   : > { %v1554_v14 = vpop.f32.mrf.mxu1  ;;  %v1595_v15 = vpop.f32.mrf.mxu0 }
 0x906   : > { %v1555_v16 = vadd.f32 %v1554_v14, %v1345_v8  ;;  %v1596_v17 = vadd.f32 %v1595_v15, %v1353_v9  ;;  %v1600_v18 = vmax.f32 %v1553_v12, 0.0  ;;  %v1602_v20 = vmax.f32 %v1594_v13, 0.0 }
 0x907   : > { %v1556_v21 = vpop.f32.mrf.mxu1  ;;  %v1597_v22 = vpop.f32.mrf.mxu0 }
 0x908   : > { %v1601_v30 = vmax.f32 %v1555_v16, 0.0  ;;  %v1603_v24 = vmax.f32 %v1596_v17, 0.0  ;;  %v1604_v32 = vpack.c.bf16 %v1600_v18, %v1600_v18  ;;  %v1606_v27 = vpack.c.bf16 %v1602_v20, %v1602_v20 }
 0x909   : > { %v1557_v25 = vpop.f32.mrf.mxu1  ;;  %v1598_v45 = vpop.f32.mrf.mxu0 }
 0x90a   : > { %v1605_v26 = vpack.c.bf16 %v1601_v30, %v1601_v30  ;;  %v1607_v29 = vpack.c.bf16 %v1603_v24, %v1603_v24 }
 0x90c   : > { %1903 = vmatprep.mubr.bf16.mxu1 %v1605_v26  ;;  %1943 = vmatprep.mubr.bf16.mxu0 %v1607_v29 }
 0x90d   : > { %1904 = vmatmul.mubr.bf16.vlgmr.msra.gmra.mxu1 %v1604_v32  ;;  %1944 = vmatmul.mubr.bf16.vlgmr.msra.gmra.mxu0 %v1606_v27 }
 0x9cd   : > { %v2204_v28 = vpop.f32.mrf.mxu1  ;;  %v2226_v31 = vpop.f32.mrf.mxu0 }
 0x9cf   : > { %v2205_v34 = vpop.f32.mrf.mxu1  ;;  %v2227_v4 = vpop.f32.mrf.mxu0 }
 0x9d0   : > { %v2206_v35 = vadd.f32 %v2205_v34, %v2204_v28  ;;  %v2228_v40 = vadd.f32 %v2227_v4, %v2226_v31 }
 0x9d1   : > { %v2207_v37 = vpop.f32.mrf.mxu1  ;;  %v2229_v38 = vpop.f32.mrf.mxu0 }
 0x9d2   : > { %v1906_v39 = vadd.f32 %v2206_v35, %v2117_v33 }
 0x9d3   : > { %v2208_v41 = vpop.f32.mrf.mxu1  ;;  %v2230_v42 = vpop.f32.mrf.mxu0 }
 0x9d4   : > { %v1946_v43 = vadd.f32 %v2228_v40, %v1906_v39 }
 0x9d6   : > { %v1951_v44 = vadd.f32 %v1946_v43, %v2895_v36  ;;  %v2150_v36 = vld [vmem:[%s3030_s11] ss:$0 sm:$0xff] }
 0x9d8   : > { %v1954_v46 = vsel %vm1274_vm7, %v1951_v44, 0.0 }
 0x9d9   : > { %1955 = vadd.xlane.f32.xlu0 %v1954_v46 }
 0xa62   : > { %v1956_v47 = vpop.xlane.xlu0 %1955 }
 0xa63   : > { %v1957_v19 = vmul.f32 0.0078125, %v1956_v47 }
 0xa65   : > { %v1958_v48 = vsub.f32 %v1951_v44, %v1957_v19 }
 0xa67   : > { %v1959_v49 = vmul.f32 %v1958_v48, %v1958_v48 }
 0xa69   : > { %v1960_v2 = vsel %vm1274_vm7, %v1959_v49, 0.0 }
 0xa6a   : > { %1961 = vadd.xlane.f32.xlu1 %v1960_v2 }
 0xaf3   : > { %v1962_v51 = vpop.xlane.xlu1 %1961 }
 0xaf4   : > { %v1963_v23 = vmul.f32 0.0078125, %v1962_v51 }
 0xaf6   : > { %v1964_v52 = vadd.f32 1e-05, %v1963_v23 }
 0xaf8   : > { %2472 = vrsqrt.f32 %v1964_v52 }
 0xb05   : > { %v2473_v53 = vpop.eup %2472 }
 0xb06   : > { %v1966_v54 = vmul.f32 %v2473_v53, %v1958_v48 }
 0xb08   : > { %v1973_v56 = vmul.f32 %v2150_v36, %v1966_v54 }
 0xb0a   : > { %v1980_v57 = vadd.f32 %v2151_v55, %v1973_v56 }
 0xb0c   : > { %1981 = vst [vmem:[%s435_s15] sm:$0xf] %v1980_v57 }
 0xb0d PF: > { %s23_s25 = sadd.s32 1, %s2480_s25  }
 0xb0e   : > { %p20_p4 = scmp.ge.s32.totalorder %s23_s25, 4  }
 0xb10   :  { %22 = sbr.rel (!%p20_p4) target bundleno = 1 (0x1), region = 102 }

// kernel: vqvae_forward.10
= control target key start
LH: loop header
LB: loop body
LE: loop exit
PB: predicated region body
PF: predicated region fallthrough
CT: control target
= control target key end

     0   :  { %10 = vsyncpa [#allocation4], 0  ;;  %s851_s0 = inlined_call_operand.vmem [shape: f32[8,128], index: 0, kind: input, shape index: {}]   ;;  %s852_s1 = inlined_call_operand.vmem [shape: f32[256,128], index: 1, kind: input, shape index: {}]   ;;  %s853_s2 = inlined_call_operand.vmem [shape: f32[8,128], index: 2, kind: output, shape index: {0}]   ;;  %s854_s3 = inlined_call_operand.hbm [shape: s32[8,1], index: 3, kind: output, shape index: {1}]   ;;  %s855_s4 = inlined_call_operand.hbm [shape: f32[1,1], index: 4, kind: output, shape index: {2}]  }
   0x1   :  { %v604_v0 = vld [vmem:[%s852_s1 + $0xf8] sm:$0xff]  ;;  %v614_v2 = vld [vmem:[%s852_s1] sm:$0xff]  ;;  %v622_v4 = vld [vmem:[%s852_s1 + $0xf0] sm:$0xff] }
   0x2   :  { %v609_v1 = vld [vmem:[%s852_s1 + $0x78] sm:$0xff]  ;;  %451 = vmatprep.subr.mxu0 %v604_v0  ;;  %v58_v3 = vmul.f32 %v614_v2, %v614_v2  ;;  %v627_v5 = vld [vmem:[%s852_s1 + $0x8] sm:$0xff]  ;;  %485 = vmatprep.subr.mxu1 %v604_v0  ;;  %v636_v7 = vld [vmem:[%s852_s1 + $0x80] sm:$0xff] }
   0x3   :  { %452 = vmatpush3.xpose.msra.mxu0 %v609_v1  ;;  %v59_v6 = vmul.f32 %v627_v5, %v627_v5  ;;  %486 = vmatpush3.msra.mxu1 %v609_v1  ;;  %v643_v8 = vld [vmem:[%s852_s1 + $0x70] sm:$0xff]  ;;  %v74_v9 = vmul.f32 %v636_v7, %v636_v7  ;;  %v650_v10 = vld [vmem:[%s852_s1 + $0x88] sm:$0xff]  ;;  %v684_v17 = vld [vmem:[%s852_s1 + $0xe0] sm:$0xff] }
   0x4   :  { %90 = vadd.xlane.f32.xlu0 %v58_v3  ;;  %453 = vmatprep.subr.mxu0 %v622_v4  ;;  %v655_v11 = vld [vmem:[%s852_s1 + $0xe8] sm:$0xff]  ;;  %v75_v12 = vmul.f32 %v650_v10, %v650_v10  ;;  %v662_v13 = vld [vmem:[%s852_s1 + $0x10] sm:$0xff]  ;;  %v691_v19 = vld [vmem:[%s852_s1 + $0x18] sm:$0xff] }
   0x5   :  { %92 = vadd.xlane.f32.xlu1 %v59_v6  ;;  %487 = vmatprep.subr.mxu1 %v622_v4  ;;  %v668_v14 = vld [vmem:[%s852_s1 + $0x90] sm:$0xff]  ;;  %v677_v15 = vld [vmem:[%s852_s1 + $0x68] sm:$0xff]  ;;  %v60_v16 = vmul.f32 %v662_v13, %v662_v13  ;;  %v697_v20 = vld [vmem:[%s852_s1 + $0x60] sm:$0xff]  ;;  %v61_v23 = vmul.f32 %v691_v19, %v691_v19 }
   0x6   :  { %488 = vmatpush3.msra.mxu1 %v643_v8  ;;  %v76_v18 = vmul.f32 %v668_v14, %v668_v14  ;;  %v702_v21 = vld [vmem:[%s852_s1 + $0x98] sm:$0xff]  ;;  %v709_v22 = vld [vmem:[%s851_s0] sm:$0xff] }
   0x7   :  { %454 = vmatpush3.xpose.msra.mxu0 %v643_v8  ;;  %489 = vmatprep.subr.mxu1 %v655_v11 }
   0x8   :  { %122 = vadd.xlane.f32.xlu0 %v74_v9  ;;  %455 = vmatprep.subr.mxu0 %v655_v11 }
   0x9   :  { %124 = vadd.xlane.f32.xlu1 %v75_v12  ;;  %490 = vmatpush3.msra.mxu1 %v677_v15 }
   0xa   :  { %491 = vmatprep.subr.mxu1 %v684_v17 }
   0xb   :  { %456 = vmatpush3.xpose.msra.mxu0 %v677_v15  ;;  %492 = vmatpush3.msra.mxu1 %v697_v20 }
   0xc   :  { %94 = vadd.xlane.f32.xlu0 %v60_v16  ;;  %457 = vmatprep.subr.mxu0 %v684_v17 }
   0xd   :  { %11 = vsyncpa [#allocation6], 0  ;;  %126 = vadd.xlane.f32.xlu1 %v76_v18  ;;  %v718_v24 = vld [vmem:[%s852_s1 + $0xd8] sm:$0xff]  ;;  %v77_v25 = vmul.f32 %v702_v21, %v702_v21  ;;  %v725_v26 = vld [vmem:[%s852_s1 + $0x20] sm:$0xff]  ;;  %483 = vmatprep.mubr.f32.mxu0 %v709_v22  ;;  %v70_v57 = vmul.f32 %v697_v20, %v697_v20  ;;  %v86_v58 = vmul.f32 %v684_v17, %v684_v17  ;;  %vm407_vm1 = vcmask 7168   ;;  %s574_s28 = smov [#allocation3]  }
   0xe   :  { %v731_v27 = vld [vmem:[%s852_s1 + $0x58] sm:$0xff]  ;;  %v736_v28 = vld [vmem:[%s852_s1 + $0xa0] sm:$0xff]  ;;  %493 = vmatprep.subr.mxu1 %v718_v24  ;;  %v62_v29 = vmul.f32 %v725_v26, %v725_v26  ;;  %v747_v30 = vld [vmem:[%s852_s1 + $0xd0] sm:$0xff]  ;;  %v85_v56 = vmul.f32 %v718_v24, %v718_v24  ;;  %v71_v59 = vmul.f32 %v677_v15, %v677_v15  ;;  %v87_v60 = vmul.f32 %v655_v11, %v655_v11  ;;  %s423_s29 = sshll.u32 %s574_s28, 4  ;;  %s424_s29 = int_to_ptr.vmem [resolvable:$true] %s423_s29 }
   0xf   :  { %458 = vmatpush3.xpose.msra.mxu0 %v697_v20  ;;  %494 = vmatpush3.msra.mxu1 %v731_v27  ;;  %v33_v31 = vld [vmem:[%s852_s1 + $0x50] sm:$0xff]  ;;  %v78_v32 = vmul.f32 %v736_v28, %v736_v28  ;;  %v757_v33 = vld [vmem:[%s852_s1 + $0x28] sm:$0xff]  ;;  %v47_v40 = vld [vmem:[%s852_s1 + $0xc0] sm:$0xff]  ;;  %v84_v54 = vmul.f32 %v747_v30, %v747_v30  ;;  %v69_v55 = vmul.f32 %v731_v27, %v731_v27  ;;  %vm20_vm4 = vcmask 0   ;;  %s528_s30 = scalar_lea.vmem %s424_s29, 128  ;;  %p533_p1 = scmp.lt.s32.totalorder %s424_s29, %s424_s29 }
  0x10   :  { %96 = vadd.xlane.f32.xlu0 %v61_v23  ;;  %459 = vmatprep.subr.mxu0 %v718_v24  ;;  %v48_v34 = vld [vmem:[%s852_s1 + $0xc8] sm:$0xff]  ;;  %v63_v36 = vmul.f32 %v757_v33, %v757_v33  ;;  %v29_v39 = vld [vmem:[%s852_s1 + $0x30] sm:$0xff]  ;;  %v31_v41 = vld [vmem:[%s852_s1 + $0x40] sm:$0xff]  ;;  %v82_v50 = vmul.f32 %v47_v40, %v47_v40  ;;  %v68_v53 = vmul.f32 %v33_v31, %v33_v31  ;;  %p529_p0 = scmp.ne.s32.totalorder %s424_s29, %s528_s30  ;;  %p534_p2 = scmp.lt.s32.totalorder %s528_s30, %s528_s30 }
  0x11   :  { %128 = vadd.xlane.f32.xlu1 %v77_v25  ;;  %495 = vmatprep.subr.mxu1 %v747_v30  ;;  %v44_v35 = vld [vmem:[%s852_s1 + $0xa8] sm:$0xff]  ;;  %v45_v42 = vld [vmem:[%s852_s1 + $0xb0] sm:$0xff]  ;;  %v64_v43 = vmul.f32 %v29_v39, %v29_v39  ;;  %v46_v44 = vld [vmem:[%s852_s1 + $0xb8] sm:$0xff]  ;;  %v66_v49 = vmul.f32 %v31_v41, %v31_v41  ;;  %v83_v52 = vmul.f32 %v48_v34, %v48_v34 }
  0x12   :  { %496 = vmatpush3.msra.mxu1 %v33_v31  ;;  %v32_v37 = vld [vmem:[%s852_s1 + $0x48] sm:$0xff]  ;;  %v79_v38 = vmul.f32 %v44_v35, %v44_v35  ;;  %v80_v45 = vmul.f32 %v45_v42, %v45_v42  ;;  %v30_v46 = vld [vmem:[%s852_s1 + $0x38] sm:$0xff]  ;;  %v81_v48 = vmul.f32 %v46_v44, %v46_v44  ;;  %v72_v61 = vmul.f32 %v643_v8, %v643_v8  ;;  %p535_p3 = por %p534_p2, %p533_p1 }
  0x13   :  { %460 = vmatpush3.xpose.msra.mxu0 %v731_v27  ;;  %497 = vmatprep.subr.mxu1 %v48_v34  ;;  %v65_v47 = vmul.f32 %v30_v46, %v30_v46  ;;  %v67_v51 = vmul.f32 %v32_v37, %v32_v37  ;;  %v88_v62 = vmul.f32 %v622_v4, %v622_v4 }
  0x14   :  { %98 = vadd.xlane.f32.xlu0 %v62_v29  ;;  %461 = vmatprep.subr.mxu0 %v747_v30  ;;  %v73_v63 = vmul.f32 %v609_v1, %v609_v1  ;;  %v89_v3 = vmul.f32 %v604_v0, %v604_v0  ;;  %v55_v6 = vmul.f32 %v709_v22, %v709_v22  ;;  %p536_p4 = pnand %p535_p3, %p529_p0 }
  0x15   :  { %130 = vadd.xlane.f32.xlu1 %v78_v32  ;;  %498 = vmatpush3.msra.mxu1 %v32_v37 }
  0x16   :  { %499 = vmatprep.subr.mxu1 %v47_v40 }
  0x17   :  { %462 = vmatpush3.xpose.msra.mxu0 %v33_v31  ;;  %500 = vmatpush3.msra.mxu1 %v31_v41 }
  0x18   :  { %100 = vadd.xlane.f32.xlu0 %v63_v36  ;;  %463 = vmatprep.subr.mxu0 %v48_v34 }
  0x19   :  { %132 = vadd.xlane.f32.xlu1 %v79_v38  ;;  %501 = vmatprep.subr.mxu1 %v46_v44 }
  0x1a   :  { %502 = vmatpush3.msra.mxu1 %v30_v46 }
  0x1b   :  { %464 = vmatpush3.xpose.msra.mxu0 %v32_v37  ;;  %503 = vmatprep.subr.mxu1 %v45_v42 }
  0x1c   :  { %102 = vadd.xlane.f32.xlu0 %v64_v43  ;;  %465 = vmatprep.subr.mxu0 %v47_v40 }
  0x1d   :  { %134 = vadd.xlane.f32.xlu1 %v80_v45  ;;  %504 = vmatpush3.msra.mxu1 %v29_v39 }
  0x1e   :  { %505 = vmatprep.subr.mxu1 %v44_v35 }
  0x1f   :  { %466 = vmatpush3.xpose.msra.mxu0 %v31_v41  ;;  %506 = vmatpush3.msra.mxu1 %v757_v33 }
  0x20   :  { %104 = vadd.xlane.f32.xlu0 %v65_v47  ;;  %467 = vmatprep.subr.mxu0 %v46_v44 }
  0x21   :  { %136 = vadd.xlane.f32.xlu1 %v81_v48  ;;  %507 = vmatprep.subr.mxu1 %v736_v28 }
  0x22   :  { %508 = vmatpush3.msra.mxu1 %v725_v26 }
  0x23   :  { %468 = vmatpush3.xpose.msra.mxu0 %v30_v46  ;;  %509 = vmatprep.subr.mxu1 %v702_v21 }
  0x24   :  { %106 = vadd.xlane.f32.xlu0 %v66_v49  ;;  %469 = vmatprep.subr.mxu0 %v45_v42 }
  0x25   :  { %138 = vadd.xlane.f32.xlu1 %v82_v50  ;;  %510 = vmatpush3.msra.mxu1 %v691_v19 }
  0x26   :  { %511 = vmatprep.subr.mxu1 %v668_v14 }
  0x27   :  { %470 = vmatpush3.xpose.msra.mxu0 %v29_v39  ;;  %512 = vmatpush3.msra.mxu1 %v662_v13 }
  0x28   :  { %108 = vadd.xlane.f32.xlu0 %v67_v51  ;;  %471 = vmatprep.subr.mxu0 %v44_v35  ;;  %v293_v35 = vlaneseq }
  0x29   :  { %140 = vadd.xlane.f32.xlu1 %v83_v52  ;;  %513 = vmatprep.subr.mxu1 %v650_v10 }
  0x2a   :  { %514 = vmatpush3.msra.mxu1 %v627_v5  ;;  %v294_v37 = vshrl.u32 %v293_v35, 7  ;;  %v304_v52 = vand.u32 127, %v293_v35 }
  0x2b   :  { %472 = vmatpush3.xpose.msra.mxu0 %v757_v33  ;;  %515 = vmatprep.subr.mxu1 %v636_v7 }
  0x2c   :  { %110 = vadd.xlane.f32.xlu0 %v68_v53  ;;  %473 = vmatprep.subr.mxu0 %v736_v28  ;;  %v295_v39 = vsub.s32 0, %v294_v37 }
  0x2d   :  { %142 = vadd.xlane.f32.xlu1 %v84_v54  ;;  %516 = vmatpush3.msra.mxu1 %v614_v2  ;;  %v305_v54 = vadd.s32 128, %v304_v52 }
  0x2f   :  { %474 = vmatpush3.xpose.msra.mxu0 %v725_v26 }
  0x30   :  { %112 = vadd.xlane.f32.xlu0 %v69_v55  ;;  %475 = vmatprep.subr.mxu0 %v702_v21 }
  0x31   :  { %144 = vadd.xlane.f32.xlu1 %v85_v56 }
  0x33   :  { %476 = vmatpush3.xpose.msra.mxu0 %v691_v19 }
  0x34   :  { %114 = vadd.xlane.f32.xlu0 %v70_v57  ;;  %477 = vmatprep.subr.mxu0 %v668_v14  ;;  %v572_v57 = vmov 1.0  }
  0x35   :  { %146 = vadd.xlane.f32.xlu1 %v86_v58 }
  0x37   :  { %478 = vmatpush3.xpose.msra.mxu0 %v662_v13 }
  0x38   :  { %116 = vadd.xlane.f32.xlu0 %v71_v59  ;;  %479 = vmatprep.subr.mxu0 %v650_v10 }
  0x39   :  { %148 = vadd.xlane.f32.xlu1 %v87_v60 }
  0x3b   :  { %480 = vmatpush3.xpose.msra.mxu0 %v627_v5 }
  0x3c   :  { %118 = vadd.xlane.f32.xlu0 %v72_v61  ;;  %481 = vmatprep.subr.mxu0 %v636_v7 }
  0x3d   :  { %150 = vadd.xlane.f32.xlu1 %v88_v62 }
  0x3f   :  { %482 = vmatpush3.xpose.msra.mxu0 %v614_v2 }
  0x40   :  { %120 = vadd.xlane.f32.xlu0 %v73_v63  ;;  %v573_v63 = vmov 0.0  }
  0x41   :  { %152 = vadd.xlane.f32.xlu1 %v89_v3  ;;  %21 = vst.msk [vmem:[#allocation2] sm:$0x1] %vm20_vm4, %v573_v63 }
  0x42   :  { %484 = vmatmul.mubr.f32.vlgmr.msra.gmra.mxu0 %v709_v22 }
  0x44   :  { %56 = vadd.xlane.f32.xlu0 %v55_v6 }
  0x8d   :  { %v91_v4 = vpop.xlane.xlu0 %90 }
  0x8e   :  { %154 = vxpose.xlu1.b32.start [1/16] (narrow) %v91_v4, 8  ;;  %v93_v5 = vpop.xlane.xlu1 %92 }
  0x91   :  { %v123_v7 = vpop.xlane.xlu0 %122 }
  0x92   :  { %155 = vxpose.xlu1.b32.cont [2/16] (narrow) %v93_v5, 8  ;;  %186 = vxpose.xlu0.b32.start [1/16] (narrow) %v123_v7, 8  ;;  %v125_v1 = vpop.xlane.xlu1 %124 }
  0x95   :  { %v95_v8 = vpop.xlane.xlu0 %94 }
  0x96   :  { %156 = vxpose.xlu1.b32.cont [3/16] (narrow) %v95_v8, 8  ;;  %187 = vxpose.xlu0.b32.cont [2/16] (narrow) %v125_v1, 8  ;;  %v127_v0 = vpop.xlane.xlu1 %126 }
  0x99   :  { %v97_v2 = vpop.xlane.xlu0 %96 }
  0x9a   :  { %157 = vxpose.xlu1.b32.cont [4/16] (narrow) %v97_v2, 8  ;;  %188 = vxpose.xlu0.b32.cont [3/16] (narrow) %v127_v0, 8  ;;  %v129_v9 = vpop.xlane.xlu1 %128 }
  0x9d   :  { %v99_v10 = vpop.xlane.xlu0 %98 }
  0x9e   :  { %158 = vxpose.xlu1.b32.cont [5/16] (narrow) %v99_v10, 8  ;;  %189 = vxpose.xlu0.b32.cont [4/16] (narrow) %v129_v9, 8  ;;  %v131_v11 = vpop.xlane.xlu1 %130 }
  0xa1   :  { %v101_v12 = vpop.xlane.xlu0 %100 }
  0xa2   :  { %159 = vxpose.xlu1.b32.cont [6/16] (narrow) %v101_v12, 8  ;;  %190 = vxpose.xlu0.b32.cont [5/16] (narrow) %v131_v11, 8  ;;  %v133_v13 = vpop.xlane.xlu1 %132 }
  0xa5   :  { %v103_v14 = vpop.xlane.xlu0 %102 }
  0xa6   :  { %160 = vxpose.xlu1.b32.cont [7/16] (narrow) %v103_v14, 8  ;;  %191 = vxpose.xlu0.b32.cont [6/16] (narrow) %v133_v13, 8  ;;  %v135_v15 = vpop.xlane.xlu1 %134 }
  0xa9   :  { %v105_v16 = vpop.xlane.xlu0 %104 }
  0xaa   :  { %161 = vxpose.xlu1.b32.cont [8/16] (narrow) %v105_v16, 8  ;;  %192 = vxpose.xlu0.b32.cont [7/16] (narrow) %v135_v15, 8  ;;  %v137_v17 = vpop.xlane.xlu1 %136 }
  0xad   :  { %v107_v18 = vpop.xlane.xlu0 %106 }
  0xae   :  { %162 = vxpose.xlu1.b32.cont [9/16] (narrow) %v107_v18, 8  ;;  %193 = vxpose.xlu0.b32.cont [8/16] (narrow) %v137_v17, 8  ;;  %v139_v19 = vpop.xlane.xlu1 %138 }
  0xb1   :  { %v109_v20 = vpop.xlane.xlu0 %108 }
  0xb2   :  { %163 = vxpose.xlu1.b32.cont [10/16] (narrow) %v109_v20, 8  ;;  %194 = vxpose.xlu0.b32.cont [9/16] (narrow) %v139_v19, 8  ;;  %v141_v21 = vpop.xlane.xlu1 %140 }
  0xb5   :  { %v111_v23 = vpop.xlane.xlu0 %110 }
  0xb6   :  { %164 = vxpose.xlu1.b32.cont [11/16] (narrow) %v111_v23, 8  ;;  %195 = vxpose.xlu0.b32.cont [10/16] (narrow) %v141_v21, 8  ;;  %v143_v24 = vpop.xlane.xlu1 %142 }
  0xb9   :  { %v113_v25 = vpop.xlane.xlu0 %112 }
  0xba   :  { %165 = vxpose.xlu1.b32.cont [12/16] (narrow) %v113_v25, 8  ;;  %196 = vxpose.xlu0.b32.cont [11/16] (narrow) %v143_v24, 8  ;;  %v145_v26 = vpop.xlane.xlu1 %144 }
  0xbd   :  { %v115_v27 = vpop.xlane.xlu0 %114 }
  0xbe   :  { %166 = vxpose.xlu1.b32.cont [13/16] (narrow) %v115_v27, 8  ;;  %197 = vxpose.xlu0.b32.cont [12/16] (narrow) %v145_v26, 8  ;;  %v147_v28 = vpop.xlane.xlu1 %146 }
  0xc1   :  { %v117_v29 = vpop.xlane.xlu0 %116 }
  0xc2   :  { %167 = vxpose.xlu1.b32.cont [14/16] (narrow) %v117_v29, 8  ;;  %198 = vxpose.xlu0.b32.cont [13/16] (narrow) %v147_v28, 8  ;;  %v149_v30 = vpop.xlane.xlu1 %148 }
  0xc5   :  { %v119_v31 = vpop.xlane.xlu0 %118 }
  0xc6   :  { %168 = vxpose.xlu1.b32.cont [15/16] (narrow) %v119_v31, 8  ;;  %199 = vxpose.xlu0.b32.cont [14/16] (narrow) %v149_v30, 8  ;;  %v151_v32 = vpop.xlane.xlu1 %150 }
  0xc9   :  { %v121_v33 = vpop.xlane.xlu0 %120 }
  0xca   :  { %169 = vxpose.xlu1.b32.end [16/16] (narrow) %v121_v33, 8  ;;  %200 = vxpose.xlu0.b32.cont [15/16] (narrow) %v151_v32, 8  ;;  %v153_v34 = vpop.xlane.xlu1 %152 }
  0xcd   :  { %v57_v40 = vpop.xlane.xlu0 %56 }
  0xce   :  { %201 = vxpose.xlu0.b32.end [16/16] (narrow) %v153_v34, 8 }
 0x102   :  { %v284_v36 = vpop.f32.mrf.mxu0 }
 0x103   :  { %v289_v42 = vmul.f32 2.0, %v284_v36 }
 0x104   :  { %v286_v38 = vpop.f32.mrf.mxu0 }
 0x105   :  { %v290_v43 = vmul.f32 2.0, %v286_v38  ;;  %v291_v46 = vsub.f32 %v57_v40, %v289_v42 }
 0x107   :  { %v292_v47 = vsub.f32 %v57_v40, %v290_v43 }
 0x10a   :  { %v170_v41 = vpop.trf.xlu1 }
 0x10b   :  { %v296_v44 = vrot.slane %v170_v41, %v295_v39 }
 0x10d   :  { %v301_v49 = vadd.f32 %v296_v44, %v291_v46 }
 0x10e   :  { %v202_v45 = vpop.trf.xlu0 }
 0x10f   :  { %v300_v48 = vrot.slane %v202_v45, %v295_v39 }
 0x111   :  { %v302_v50 = vadd.f32 %v300_v48, %v292_v47 }
 0x113   :  { %vm306_vm0 = vcmp.le.f32.partialorder %v301_v49, %v302_v50 }
 0x114   :  { %v307_v51 = vsel %vm306_vm0, %v301_v49, %v302_v50  ;;  %v308_v55 = vsel %vm306_vm0, %v304_v52, %v305_v54 }
 0x115   :  { %309 = vmin.index.xlane.f32.xlu0 %v307_v51 }
 0x19e   :  { %v310_v53 = vpop.xlane.xlu0 %309 }
 0x19f   :  { %527 = vset.pattern.permute.xlu0 %v310_v53  ;;  %526 = vset.pattern.permute.xlu1 %v310_v53 }
 0x1a3   :  { %312 = vperm.xlu1 %526, %v308_v55  }
 0x21e   :  { %v313_v56 = vpop.permute.xlu1 %312 }
 0x21f   :  { %vm315_vm2 = vcmp.eq.s32.totalorder %v305_v54, %v313_v56  ;;  %vm314_vm3 = vcmp.eq.s32.totalorder %v304_v52, %v313_v56  ;;  %408 = vst.msk [vmem:[#allocation3] sm:$0xff] %vm407_vm1, %v313_v56 }
 0x220   :  { %449 = vmatprep.mubr.msk.f32.mxu1 %vm315_vm2, %v572_v57 }
 0x221   :  { %450 = vmatmul.mubr.msk.f32.vlgmr.msra.gmra.mxu1 %vm314_vm3, %v572_v57 }
 0x2e1   :  { %v517_v58 = vpop.f32.mrf.mxu1 }
 0x2e3   :  { %v518_v59 = vpop.f32.mrf.mxu1 }
 0x2e4   :  { %v519_v60 = vadd.f32 %v518_v59, %v517_v58 }
 0x2e6   :  { %406 = vst [vmem:[%s853_s2] sm:$0xff] %v519_v60  ;;  %v390_v61 = vsub.f32 %v709_v22, %v519_v60 }
 0x2e8   :  { %v392_v62 = vmul.f32 %v390_v61, %v390_v61 }
 0x2ea   :  { %393 = vadd.xlane.f32.xlu1 %v392_v62 }
 0x2eb   :  { %539 = shalt.err (!%p536_p4)
}
 0x2ec   :  { %426 = dma.vmem_to_hbm [thread:$0]  %s424_s29, 128, %s854_s3, [#allocation4]   ;;  %v391_v8 = vld [vmem:[#allocation2] sm:$0x1] }
 0x2ed   :  { %s575_s7 = smov [#allocation5]  }
 0x2ee   :  { %s433_s8 = sshll.u32 %s575_s7, 4  ;;  %s434_s8 = int_to_ptr.vmem [resolvable:$true] %s433_s8 }
 0x2ef   :  { %s548_s3 = scalar_lea.vmem %s434_s8, 16  ;;  %s552_s9 = scalar_lea.vmem %s434_s8, 32 }
 0x2f0   :  { %p549_p5 = scmp.ne.s32.totalorder %s434_s8, %s548_s3  ;;  %p553_p6 = scmp.lt.s32.totalorder %s434_s8, %s434_s8 }
 0x2f1   :  { %p554_p7 = scmp.lt.s32.totalorder %s552_s9, %s548_s3 }
 0x2f3   :  { %p555_p8 = por %p554_p7, %p553_p6 }
 0x2f5   :  { %p556_p9 = pnand %p555_p8, %p549_p5 }
 0x373   :  { %v394_v22 = vpop.xlane.xlu1 %393 }
 0x374   :  { %v395_v3 = vrot.slane %v394_v22, 4 }
 0x376   :  { %v396_v6 = vadd.f32 %v395_v3, %v394_v22 }
 0x378   :  { %v397_v4 = vrot.slane %v396_v6, 2 }
 0x37a   :  { %v398_v5 = vadd.f32 %v397_v4, %v396_v6 }
 0x37c   :  { %v399_v7 = vrot.slane %v398_v5, 1 }
 0x37e   :  { %v400_v1 = vadd.f32 %v399_v7, %v398_v5 }
 0x380   :  { %520 = vpush %v400_v1 }
 0x3b1   :  { %s521_s6 = spop %520 }
 0x3b2   :  { %v402_v0 = vstv %s521_s6 }
 0x3b3   :  { %v403_v2 = vadd.f32 %v402_v0, %v391_v8 }
 0x3b5   :  { %405 = vst.msk [vmem:[#allocation2] sm:$0x1] %vm20_vm4, %v403_v2 }
 0x3bc   :  { %v412_v9 = vld [vmem:[#allocation2] sm:$0x1] }
 0x3bd   :  { %v413_v10 = vmul.f32 0.00024414063, %v412_v9 }
 0x3bf   :  { %414 = vst.msk [vmem:[#allocation5] sm:$0x1] %vm20_vm4, %v413_v10 }
 0x3c0   :  { %559 = shalt.err (!%p556_p9)
}
 0x3c1   :  { %436 = dma.vmem_to_hbm [thread:$0]  %s434_s8, 16, %s855_s4, [#allocation6]  }
 0x3c2   :  { %568 = dma.done.wait [#allocation4], 128  }
 0x3c3   :  { %569 = vsyncadd [#allocation4], 4294967168 }
 0x3c4   :  { %570 = dma.done.wait [#allocation6], 16  }
 0x3c5   :  { %571 = vsyncadd [#allocation6], 4294967280 }
 0x3c6   :  { %445 = vsyncpa [#allocation4], 1 }
 0x3c7   :  { %446 = vsyncpa [#allocation6], 1 }

// kernel: vqvae_forward.8
= control target key start
LH: loop header
LB: loop body
LE: loop exit
PB: predicated region body
PF: predicated region fallthrough
CT: control target
= control target key end

     0   :  { %18 = vsyncpa [#allocation3], 0  ;;  %s3031_s0 = inlined_call_operand.vmem [shape: f32[2,4,128], index: 0, kind: input, shape index: {}]   ;;  %s3032_s1 = inlined_call_operand.hbm [shape: bf16[128,384], index: 1, kind: input, shape index: {}]   ;;  %s3033_s2 = inlined_call_operand.vmem [shape: f32[1,384], index: 2, kind: input, shape index: {}]   ;;  %s3034_s3 = inlined_call_operand.vmem [shape: bf16[128,128], index: 3, kind: input, shape index: {}]   ;;  %s3035_s4 = inlined_call_operand.vmem [shape: f32[1,128], index: 4, kind: input, shape index: {}]   ;;  %s3036_s5 = inlined_call_operand.vmem [shape: f32[1,128], index: 5, kind: input, shape index: {}]   ;;  %s3037_s6 = inlined_call_operand.vmem [shape: f32[1,128], index: 6, kind: input, shape index: {}]   ;;  %s3038_s7 = inlined_call_operand.hbm [shape: bf16[128,512], index: 7, kind: input, shape index: {}]   ;;  %s3039_s8 = inlined_call_operand.vmem [shape: f32[1,512], index: 8, kind: input, shape index: {}]   ;;  %s3040_s9 = inlined_call_operand.hbm [shape: bf16[512,128], index: 9, kind: input, shape index: {}]   ;;  %s3041_s10 = inlined_call_operand.vmem [shape: f32[1,128], index: 10, kind: input, shape index: {}]   ;;  %s3042_s11 = inlined_call_operand.vmem [shape: f32[1,128], index: 11, kind: input, shape index: {}]   ;;  %s3043_s12 = inlined_call_operand.vmem [shape: f32[1,128], index: 12, kind: input, shape index: {}]   ;;  %s3044_s13 = inlined_call_operand.vmem [shape: f32[2,4,128], index: 13, kind: output, shape index: {}]  }
   0x1   :  { %19 = vsyncpa [#allocation5], 0  ;;  %s2771_s25 = smov 0  }
   0x2 LB: > { %s2686_s26 = smov [#allocation4]   ;;  %s2777_s28 = sadd.s32 4294967295, %s2684_s25   ;;  %s2684_s25 = sphi %s2771_s25, %s25_s25  }
   0x3   : > { %s374_s27 = sshll.u32 %s2686_s26, 4  ;;  %p2112_p0 = scmp.ge.s32.totalorder %s2684_s25, 1  ;;  %s375_s27 = int_to_ptr.vmem [resolvable:$true] %s374_s27 }
   0x4   : > { %p334_p1 = scmp.lt.s32.totalorder %s2684_s25, 3  ;;  %p2423_p2 = scmp.eq.s32.totalorder %s2777_s28, 0 }
   0x5   : > { %s2687_s30 = smov [#allocation2]   ;;  %s2688_s16 = smov [#allocation6]  }
   0x6   : > { %p2782_p3 = pnand %p2112_p0, %p334_p1  ;;  %s346_s14 = sshll.u32 %s2687_s30, 4  ;;  %s2788_s14 = int_to_ptr.vmem [resolvable:$true] %s346_s14 }
   0x7   : > { %s2796_s17 = sshll.u32 %s2688_s16, 4  ;;  %s2603_s18 = scalar_lea.vmem %s375_s27, 4096  ;;  %s391_s17 = int_to_ptr.vmem [resolvable:$true] %s2796_s17 }
   0x8   : > { %p2413_p4 = pneg %p2782_p3  ;;  %p2604_p7 = scmp.ne.s32.totalorder %s375_s27, %s2603_s18 }
   0x9   : > { %p2611_p10 = scmp.lt.s32.totalorder %s375_s27, %s375_s27  ;;  %p2612_p11 = scmp.lt.s32.totalorder %s2603_s18, %s2603_s18 }
   0xa   : > { %p2792_p5 = pnand %p2423_p2, %p2413_p4 }
   0xb   : > { %p2613_p12 = por %p2612_p11, %p2611_p10 }
   0xc   : > { %p2594_p6 = pneg %p2792_p5 }
   0xe   : > { %p2606_p8 = pnand %p2604_p7, %p2594_p6 }
  0x10   : > { %p2607_p9 = pneg %p2606_p8 }
  0x12   : > { %p2614_p13 = pnand %p2613_p12, %p2607_p9 }
  0x14   : > { %2617 = shalt.err (!%p2614_p13)
}
  0x15   : > { %s2689_s19 = smov 256   ;;  %s2690_s20 = smov 16  }
  0x16   : > { %2419 = dma.hbm_to_vmem [thread:$0]  (!%p2792_p5), %s3038_s7, 4096, %s375_s27, [#allocation5], %s2689_s19, %s2689_s19, %s2690_s20  }
  0x17   : > { %s2629_s23 = scalar_lea.vmem %s2788_s14, 3072  ;;  %p2637_p7 = scmp.lt.s32.totalorder %s2788_s14, %s2788_s14 }
  0x18   : > { %p2630_p0 = scmp.ne.s32.totalorder %s2788_s14, %s2629_s23  ;;  %p2638_p8 = scmp.lt.s32.totalorder %s2629_s23, %s2629_s23 }
  0x1a   : > { %p2632_p1 = pnand %p2630_p0, %p2594_p6  ;;  %p2639_p9 = por %p2638_p8, %p2637_p7 }
  0x1c   : > { %p2633_p4 = pneg %p2632_p1 }
  0x1e   : > { %p2640_p10 = pnand %p2639_p9, %p2633_p4 }
  0x20   : > { %2643 = shalt.err (!%p2640_p10)
}
  0x21   : > { %s2691_s24 = smov 192   ;;  %s2692_s26 = smov 12  }
  0x22   : > { %2416 = dma.hbm_to_vmem [thread:$0]  (!%p2792_p5), %s3032_s1, 3072, %s2788_s14, [#allocation3], %s2691_s24, %s2691_s24, %s2692_s26  }
  0x23   : > { %s2655_s16 = scalar_lea.vmem %s391_s17, 4096  ;;  %p2663_p0 = scmp.lt.s32.totalorder %s391_s17, %s391_s17 }
  0x24   : > { %p2656_p11 = scmp.ne.s32.totalorder %s391_s17, %s2655_s16  ;;  %p2664_p1 = scmp.lt.s32.totalorder %s2655_s16, %s2655_s16 }
  0x26   : > { %p2658_p12 = pnand %p2656_p11, %p2594_p6  ;;  %p2665_p4 = por %p2664_p1, %p2663_p0 }
  0x28   : > { %p2659_p13 = pneg %p2658_p12 }
  0x2a   : > { %p2666_p7 = pnand %p2665_p4, %p2659_p13 }
  0x2c   : > { %2669 = shalt.err (!%p2666_p7)
}
  0x2d   : > { %s2693_s18 = smov 64   ;;  %s2694_s19 = smov 4  }
  0x2e   : > { %2422 = dma.hbm_to_vmem [thread:$0]  (!%p2792_p5), %s3040_s9, 4096, %s391_s17, [#allocation5], %s2693_s18, %s2693_s18, %s2694_s19  }
  0x2f   : > { %422 = sbr.rel (%p2782_p3) target bundleno = 2874 (0xb3a), region = 72 }
  0x34   : > { %2675 = dma.done.wait (%p2423_p2), [#allocation3], 3072  }
  0x35   : > { %2677 = vsyncadd (%p2423_p2), [#allocation3], 4294964224 }
  0x36   : > { %2679 = dma.done.wait (%p2423_p2), [#allocation5], 8192  }
  0x37   : > { %2681 = vsyncadd (%p2423_p2), [#allocation5], 4294959104  ;;  %v2695_v0 = vmov 0   ;;  %v2696_v1 = vmov 0.0   ;;  %v2452_v2 = vld [vmem:[#allocation2 + $0xac] ss:$12 sps:$4 sm:$0xff]   ;;  %v517_v28 = vlaneseq }
  0x38   : > { %692 = vmatprep.mubr.bf16.mxu0 %v2695_v0  ;;  %2313 = vmatprep.subr.bf16.mxu1 %v2696_v1  ;;  %v2454_v3 = vld [vmem:[#allocation2 + $0xa8] ss:$12 sps:$4 sm:$0xff]   ;;  %v2457_v5 = vld [vmem:[#allocation2 + $0x90] ss:$12 sps:$4 sm:$0xff]   ;;  %p472_p3 = scmp.lt.s32.totalorder %s2777_s28, 1  ;;  %vm2697_vm0 = vmmov 0  }
  0x39   : > { %660 = vmatprep.subr.bf16.mxu0 %v2452_v2  ;;  %v2455_v4 = vld [vmem:[#allocation2 + $0x94] ss:$12 sps:$4 sm:$0xff]   ;;  %v2458_v6 = vld [vmem:[#allocation2 + $0x7c] ss:$12 sps:$4 sm:$0xff]   ;;  %v2460_v7 = vld [vmem:[#allocation2 + $0x78] ss:$12 sps:$4 sm:$0xff]   ;;  %2329 = vmatprep.mubr.msk.bf16.mxu1 %vm2697_vm0, %v2696_v1 }
  0x3a   : > { %661 = vmatpush1.bf16.msra.mxu0 %v2454_v3  ;;  %v2461_v8 = vld [vmem:[#allocation2 + $0x64] ss:$12 sps:$4 sm:$0xff]   ;;  %v2463_v9 = vld [vmem:[#allocation2 + $0x60] ss:$12 sps:$4 sm:$0xff]   ;;  %s3048_s28 = smov (!%p472_p3, %s2777_s28), 1  ;;  %v2871_v29 = vshrl.u32 %v517_v28, 7 }
  0x3b   : > { %662 = vmatprep.subr.bf16.mxu0 %v2455_v4  ;;  %v2476_v10 = vld [vmem:[#allocation2 + $0xb0] ss:$12 sps:$4 sm:$0xff]   ;;  %v2464_v11 = vld [vmem:[#allocation2 + $0x4c] ss:$12 sps:$4 sm:$0xff]   ;;  %s2121_s29 = sshll.u32 %s3048_s28, 2  ;;  %vm745_vm1 = vcmask 261120  }
  0x3c   : > { %2314 = vmatpush3.bf16.msra.mxu1 %v2476_v10  ;;  %v2477_v12 = vld [vmem:[#allocation2 + $0x98] ss:$12 sps:$4 sm:$0xff]   ;;  %v2466_v13 = vld [vmem:[#allocation2 + $0x48] ss:$12 sps:$4 sm:$0xff]   ;;  %v2469_v15 = vld [vmem:[#allocation2 + $0x30] ss:$12 sps:$4 sm:$0xff]   ;;  %s475_s17 = scalar_lea.vmem %s3031_s0, %s2121_s29 }
  0x3d   : > { %2315 = vmatprep.subr.bf16.mxu1 %v2696_v1  ;;  %v2467_v14 = vld [vmem:[#allocation2 + $0x34] ss:$12 sps:$4 sm:$0xff]   ;;  %v2470_v17 = vld [vmem:[#allocation2 + $0x1c] ss:$12 sps:$4 sm:$0xff]   ;;  %v2472_v19 = vld [vmem:[#allocation2 + $0x18] ss:$12 sps:$4 sm:$0xff]  }
  0x3e   : > { %663 = vmatpush1.bf16.msra.mxu0 %v2457_v5  ;;  %v2478_v16 = vld [vmem:[#allocation2 + $0x80] ss:$12 sps:$4 sm:$0xff]   ;;  %v2479_v18 = vld [vmem:[#allocation2 + $0x68] ss:$12 sps:$4 sm:$0xff]   ;;  %v2473_v20 = vld [vmem:[#allocation2 + $0x4] ss:$12 sps:$4 sm:$0xff]  }
  0x3f   : > { %664 = vmatprep.subr.bf16.mxu0 %v2458_v6  ;;  %v2480_v21 = vld [vmem:[#allocation2 + $0x50] ss:$12 sps:$4 sm:$0xff]   ;;  %v2475_v22 = vld [vmem:[#allocation2] ss:$12 sps:$4 sm:$0xff]   ;;  %v2481_v24 = vld [vmem:[#allocation2 + $0x38] ss:$12 sps:$4 sm:$0xff]  }
  0x40   : > { %2316 = vmatpush3.bf16.msra.mxu1 %v2477_v12  ;;  %v2855_v23 = vld [vmem:[%s475_s17] sm:$0xf]  ;;  %v2483_v27 = vld [vmem:[#allocation2 + $0x8] ss:$12 sps:$4 sm:$0xff]   ;;  %v519_v30 = vsub.s32 0, %v2871_v29  ;;  %v523_v32 = vsub.s32 1, %v2871_v29 }
  0x41   : > { %2317 = vmatprep.subr.bf16.mxu1 %v2696_v1  ;;  %v482_v25 = vpack.c.bf16 %v2855_v23, %v2855_v23  ;;  %v2482_v26 = vld [vmem:[#allocation2 + $0x20] ss:$12 sps:$4 sm:$0xff]   ;;  %s2698_s24 = smov 96   ;;  %s2699_s26 = smov 64   ;;  %v527_v45 = vsub.s32 2, %v2871_v29  ;;  %vm809_vm2 = vcmask 1041408  }
  0x42   : > { %665 = vmatpush1.bf16.msra.mxu0 %v2460_v7  ;;  %v515_v31 = vld [vmem:[%s3033_s2] sm:$0x7]  ;;  %s2700_s27 = smov 32   ;;  %vm792_vm3 = vcmask 27648   ;;  %vm805_vm4 = vcmask 31744   ;;  %vm1199_vm5 = vcmask 523264  }
  0x43   : > { %666 = vmatprep.subr.bf16.mxu0 %v2461_v8  ;;  %v520_v33 = vrot.slane %v515_v31, %v519_v30  ;;  %v524_v34 = vrot.slane %v515_v31, %v523_v32  ;;  %v528_v46 = vrot.slane %v515_v31, %v527_v45  ;;  %vm1201_vm6 = vcmask 785408  }
  0x44   : > { %2318 = vmatpush3.bf16.msra.mxu1 %v2478_v16  ;;  %vm1318_vm7 = vcmask 1043456  }
  0x45   : > { %2319 = vmatprep.subr.bf16.mxu1 %v2696_v1 }
  0x46   : > { %667 = vmatpush1.bf16.msra.mxu0 %v2463_v9 }
  0x47   : > { %668 = vmatprep.subr.bf16.mxu0 %v2464_v11 }
  0x48   : > { %2320 = vmatpush3.bf16.msra.mxu1 %v2479_v18 }
  0x49   : > { %2321 = vmatprep.subr.bf16.mxu1 %v2696_v1 }
  0x4a   : > { %669 = vmatpush1.bf16.msra.mxu0 %v2466_v13 }
  0x4b   : > { %670 = vmatprep.subr.bf16.mxu0 %v2467_v14 }
  0x4c   : > { %2322 = vmatpush3.bf16.msra.mxu1 %v2480_v21 }
  0x4d   : > { %2323 = vmatprep.subr.bf16.mxu1 %v2696_v1 }
  0x4e   : > { %671 = vmatpush1.bf16.msra.mxu0 %v2469_v15 }
  0x4f   : > { %672 = vmatprep.subr.bf16.mxu0 %v2470_v17 }
  0x50   : > { %2324 = vmatpush3.bf16.msra.mxu1 %v2481_v24 }
  0x51   : > { %2325 = vmatprep.subr.bf16.mxu1 %v2696_v1 }
  0x52   : > { %673 = vmatpush1.bf16.msra.mxu0 %v2472_v19 }
  0x53   : > { %674 = vmatprep.subr.bf16.mxu0 %v2473_v20 }
  0x54   : > { %2326 = vmatpush3.bf16.msra.mxu1 %v2482_v26 }
  0x55   : > { %2327 = vmatprep.subr.bf16.mxu1 %v2696_v1 }
  0x56   : > { %675 = vmatpush1.bf16.msra.mxu0 %v2475_v22 }
  0x57   : > { %2357 = vmatprep.subr.bf16.mxu0 %v2696_v1 }
  0x58   : > { %2328 = vmatpush3.bf16.msra.mxu1 %v2483_v27 }
  0x59   : > { %693 = vmatmul.mubr.bf16.vlgmr.msra.gmra.mxu0 %v482_v25  ;;  %2333 = vmatprep.subr.bf16.mxu1 %v2696_v1 }
  0x5a   : > { %2359 = vmatprep.mubr.msk.bf16.mxu0 %vm2697_vm0, %v2696_v1 }
  0x5b   : > { %2330 = vmatmul.mubr.bf16.vlgmr.msra.gmra.mxu1 %v482_v25 }
  0x5c   : > { %2335 = vmatprep.mubr.msk.bf16.mxu1 %vm2697_vm0, %v2696_v1 }
 0x119   : > { %v694_v35 = vpop.f32.mrf.mxu0 }
 0x11a   : > { %v695_v36 = vadd.f32 %v694_v35, %v520_v33 }
 0x11b   : > { %v696_v37 = vpop.f32.mrf.mxu0  ;;  %v735_v47 = vpop.f32.mrf.mxu1 }
 0x11c   : > { %v697_v38 = vadd.f32 %v696_v37, %v524_v34  ;;  %v741_v40 = vmul.f32 0.17677669, %v695_v36  ;;  %v736_v48 = vadd.f32 %v735_v47, %v528_v46 }
 0x11d   : > { %v698_v39 = vpop.f32.mrf.mxu0  ;;  %v2331_v49 = vpop.f32.mrf.mxu1 }
 0x11e   : > { %v743_v41 = vpack.c.bf16 %v697_v38, %v697_v38  ;;  %v742_v44 = vpack.c.bf16 %v741_v40, %v741_v40  ;;  %v2895_v50 = vpack.c.bf16 %v736_v48, %v736_v48 }
 0x11f   : > { %v699_v42 = vpop.f32.mrf.mxu0  ;;  %v738_v51 = vpop.f32.mrf.mxu1 }
 0x120   : > { %857 = vrot.lane.b32.xlu1 %v743_v41, %s2698_s24  ;;  %v750_v43 = vsel %vm745_vm1, %v743_v41, 0  ;;  %v811_v52 = vsel %vm809_vm2, %v2895_v50, 0 }
 0x121   : > { %2334 = vmatpush3.bf16.xpose.msra.mxu1 %v750_v43  ;;  %v2332_v53 = vpop.f32.mrf.mxu1 }
 0x122   : > { %2339 = vmatprep.subr.bf16.mxu1 %v2696_v1 }
 0x124   : > { %854 = vrot.lane.b32.xlu1 %v742_v44, %s2698_s24 }
 0x128   : > { %966 = vrot.lane.b32.xlu1 %v742_v44, %s2699_s26  ;;  %2336 = vmatmul.mubr.msk.bf16.vlgmr.msra.gmra.mxu1 %vm745_vm1, %v742_v44 }
 0x129   : > { %2341 = vmatprep.mubr.msk.bf16.mxu1 %vm2697_vm0, %v2696_v1  ;;  %2340 = vmatpush3.bf16.msra.mxu1 %v811_v52 }
 0x12a   : > { %2345 = vmatprep.subr.bf16.mxu1 %v2696_v1 }
 0x12c   : > { %1078 = vrot.lane.b32.xlu1 %v743_v41, %s2700_s27 }
 0x130   : > { %1076 = vrot.lane.b32.xlu1 %v742_v44, %s2700_s27 }
 0x192   : > { %v858_v2 = vpop.permute.xlu1 %857 }
 0x193   : > { %v863_v13 = vsel %vm745_vm1, %v858_v2, 0 }
 0x196   : > { %v855_v3 = vpop.permute.xlu1 %854 }
 0x19a   : > { %v967_v5 = vpop.permute.xlu1 %966 }
 0x19e   : > { %v1079_v8 = vpop.permute.xlu1 %1078 }
 0x19f   : > { %v1084_v9 = vsel %vm745_vm1, %v1079_v8, 0 }
 0x1a2   : > { %v1077_v14 = vpop.permute.xlu1 %1076 }
 0x1e8   : > { %v786_v54 = vpop.f32.mrf.mxu1 }
 0x1e9   : > { %v793_v55 = vsel %vm792_vm3, %v786_v54, -inf }
 0x1ea   : > { %794 = vmax.xlane.f32.xlu0 %v793_v55  ;;  %v2337_v56 = vpop.f32.mrf.mxu1 }
 0x1ec   : > { %v789_v57 = vpop.f32.mrf.mxu1 }
 0x1ee   : > { %v2338_v58 = vpop.f32.mrf.mxu1 }
 0x273   : > { %v795_v59 = vpop.xlane.xlu0 %794 }
 0x274   : > { %v796_v60 = vsub.f32 %v786_v54, %v795_v59 }
 0x276   : > { %v797_v61 = vmul.f32 1.442695, %v796_v60 }
 0x278   : > { %2572 = vpow2.f32 %v797_v61 }
 0x285   : > { %v2573_v62 = vpop.eup %2572 }
 0x286   : > { %v799_v63 = vsel %vm792_vm3, %v2573_v62, 0.0 }
 0x287   : > { %800 = vadd.xlane.f32.xlu0 %v799_v63 }
 0x29d   : > { %968 = vrot.lane.b32.xlu0 %v743_v41, %s2699_s26 }
 0x310   : > { %v801_v4 = vpop.xlane.xlu0 %800 }
 0x311   : > { %2574 = vrcp.f32 %v801_v4 }
 0x314   : > { %v969_v6 = vpop.permute.xlu0 %968 }
 0x315   : > { %v974_v7 = vsel %vm745_vm1, %v969_v6, 0 }
 0x316   : > { %2358 = vmatpush3.bf16.xpose.msra.mxu0 %v974_v7 }
 0x317   : > { %2369 = vmatprep.subr.bf16.mxu0 %v2696_v1 }
 0x31d   : > { %2360 = vmatmul.mubr.msk.bf16.vlgmr.msra.gmra.mxu0 %vm745_vm1, %v967_v5 }
 0x31e   : > { %v2575_v10 = vpop.eup %2574  ;;  %2370 = vmatpush3.bf16.xpose.msra.mxu0 %v1084_v9  ;;  %2371 = vmatprep.mubr.msk.bf16.mxu0 %vm2697_vm0, %v2696_v1 }
 0x31f   : > { %v803_v11 = vmul.f32 %v2575_v10, %v2573_v62  ;;  %2381 = vmatprep.subr.bf16.mxu0 %v2696_v1  ;;  %v2484_v10 = vld [vmem:[%s3034_s3 + $0x38] sm:$0xff]  }
 0x321   : > { %v804_v12 = vpack.c.bf16 %v803_v11, %v803_v11  ;;  %v2485_v11 = vld [vmem:[%s3034_s3 + $0x30] sm:$0xff]  }
 0x323   : > { %2342 = vmatmul.mubr.msk.bf16.vlgmr.msra.gmra.mxu1 %vm805_vm4, %v804_v12  ;;  %v2486_v12 = vld [vmem:[%s3034_s3 + $0x28] sm:$0xff]  }
 0x324   : > { %2346 = vmatpush3.bf16.xpose.msra.mxu1 %v863_v13  ;;  %2347 = vmatprep.mubr.msk.bf16.mxu1 %vm2697_vm0, %v2696_v1  ;;  %v2487_v13 = vld [vmem:[%s3034_s3 + $0x20] sm:$0xff]  }
 0x325   : > { %2372 = vmatmul.mubr.msk.bf16.vlgmr.msra.gmra.mxu0 %vm745_vm1, %v1077_v14  ;;  %2351 = vmatprep.subr.bf16.mxu1 %v2696_v1  ;;  %v2488_v14 = vld [vmem:[%s3034_s3 + $0x18] sm:$0xff]  }
 0x326   : > { %2397 = vmatprep.mubr.msk.bf16.mxu0 %vm2697_vm0, %v2696_v1  ;;  %2382 = vmatpush3.bf16.msra.mxu0 %v2484_v10  ;;  %v2524_v10 = vld [vmem:[#allocation4 + $0x44] ss:$16 sps:$4 sm:$0xff]  }
 0x327   : > { %2383 = vmatprep.subr.bf16.mxu0 %v2696_v1 }
 0x32a   : > { %2384 = vmatpush3.bf16.msra.mxu0 %v2485_v11  ;;  %v2527_v11 = vld [vmem:[#allocation4 + $0x4c] ss:$16 sps:$4 sm:$0xff]  }
 0x32b   : > { %2348 = vmatmul.mubr.msk.bf16.vlgmr.msra.gmra.mxu1 %vm745_vm1, %v855_v3  ;;  %2385 = vmatprep.subr.bf16.mxu0 %v2696_v1 }
 0x32c   : > { %2353 = vmatprep.mubr.msk.bf16.mxu1 %vm2697_vm0, %v2696_v1 }
 0x32e   : > { %2386 = vmatpush3.bf16.msra.mxu0 %v2486_v12  ;;  %v2522_v12 = vld [vmem:[#allocation4 + $0x40] ss:$16 sps:$4 sm:$0xff]  }
 0x32f   : > { %2387 = vmatprep.subr.bf16.mxu0 %v2696_v1 }
 0x332   : > { %2388 = vmatpush3.bf16.msra.mxu0 %v2487_v13  ;;  %v2525_v13 = vld [vmem:[#allocation4 + $0x48] ss:$16 sps:$4 sm:$0xff]  }
 0x333   : > { %2389 = vmatprep.subr.bf16.mxu0 %v2696_v1 }
 0x336   : > { %2390 = vmatpush3.bf16.msra.mxu0 %v2488_v14  ;;  %v2530_v14 = vld [vmem:[#allocation4 + $0x24] ss:$16 sps:$4 sm:$0xff]  }
 0x337   : > { %2391 = vmatprep.subr.bf16.mxu0 %v2696_v1 }
 0x3dd   : > { %v1010_v15 = vpop.f32.mrf.mxu0 }
 0x3de   : > { %v1016_v16 = vsel %vm792_vm3, %v1010_v15, -inf }
 0x3df   : > { %1017 = vmax.xlane.f32.xlu0 %v1016_v16  ;;  %v2361_v17 = vpop.f32.mrf.mxu0  ;;  %v2490_v16 = vld [vmem:[%s3034_s3 + $0x8] sm:$0xff]  }
 0x3e1   : > { %v1013_v18 = vpop.f32.mrf.mxu0 }
 0x3e3   : > { %v2922_v19 = vpop.f32.mrf.mxu1  ;;  %v2362_v20 = vpop.f32.mrf.mxu0 }
 0x3e4   : > { %v2491_v20 = vld [vmem:[%s3034_s3] sm:$0xff]  }
 0x3e5   : > { %v2343_v21 = vpop.f32.mrf.mxu1  ;;  %v1120_v22 = vpop.f32.mrf.mxu0 }
 0x3e6   : > { %v1126_v36 = vsel %vm792_vm3, %v1120_v22, -inf }
 0x3e7   : > { %v850_v24 = vpop.f32.mrf.mxu1  ;;  %v2373_v25 = vpop.f32.mrf.mxu0 }
 0x3e9   : > { %v2344_v26 = vpop.f32.mrf.mxu1  ;;  %v1123_v27 = vpop.f32.mrf.mxu0 }
 0x3eb   : > { %v899_v28 = vpop.f32.mrf.mxu1  ;;  %v2374_v31 = vpop.f32.mrf.mxu0 }
 0x3ec   : > { %v905_v33 = vsel %vm792_vm3, %v899_v28, -inf }
 0x3ed   : > { %906 = vmax.xlane.f32.xlu1 %v905_v33  ;;  %v2349_v34 = vpop.f32.mrf.mxu1 }
 0x3ef   : > { %v902_v35 = vpop.f32.mrf.mxu1 }
 0x3f1   : > { %1127 = vmax.xlane.f32.xlu1 %v1126_v36  ;;  %v2350_v37 = vpop.f32.mrf.mxu1 }
 0x468   : > { %v1018_v38 = vpop.xlane.xlu0 %1017 }
 0x469   : > { %v1019_v39 = vsub.f32 %v1010_v15, %v1018_v38  ;;  %v2489_v15 = vld [vmem:[%s3034_s3 + $0x10] sm:$0xff]  }
 0x46a   : > { %2392 = vmatpush3.bf16.msra.mxu0 %v2489_v15  ;;  %v2533_v15 = vld [vmem:[#allocation4 + $0x2c] ss:$16 sps:$4 sm:$0xff]  }
 0x46b   : > { %v1020_v40 = vmul.f32 1.442695, %v1019_v39  ;;  %2393 = vmatprep.subr.bf16.mxu0 %v2696_v1 }
 0x46d   : > { %2576 = vpow2.f32 %v1020_v40 }
 0x46e   : > { %2394 = vmatpush3.bf16.msra.mxu0 %v2490_v16  ;;  %v2528_v16 = vld [vmem:[#allocation4 + $0x20] ss:$16 sps:$4 sm:$0xff]  }
 0x46f   : > { %2395 = vmatprep.subr.bf16.mxu0 %v2696_v1 }
 0x472   : > { %2396 = vmatpush3.bf16.msra.mxu0 %v2491_v20  ;;  %v2539_v20 = vld [vmem:[#allocation4 + $0xc] ss:$16 sps:$4 sm:$0xff]  }
 0x476   : > { %v907_v41 = vpop.xlane.xlu1 %906 }
 0x477   : > { %v908_v42 = vsub.f32 %v899_v28, %v907_v41  ;;  %v2155_v41 = vld [vmem:[%s3035_s4] ss:$0 sm:$0xff] }
 0x479   : > { %v909_v48 = vmul.f32 1.442695, %v908_v42 }
 0x47a   : > { %v2577_v43 = vpop.eup %2576  ;;  %v1128_v44 = vpop.xlane.xlu1 %1127 }
 0x47b   : > { %v1129_v46 = vsub.f32 %v1120_v22, %v1128_v44  ;;  %v1022_v47 = vsel %vm792_vm3, %v2577_v43, 0.0 }
 0x47c   : > { %1023 = vadd.xlane.f32.xlu0 %v1022_v47 }
 0x47d   : > { %v1130_v49 = vmul.f32 1.442695, %v1129_v46 }
 0x47f   : > { %2578 = vpow2.f32 %v1130_v49  ;;  %v2492_v49 = vld [vmem:[#allocation4 + $0xe0] ss:$16 sps:$4 sm:$0xff]  }
 0x480   : > { %2580 = vpow2.f32 %v909_v48 }
 0x48c   : > { %v2579_v51 = vpop.eup %2578 }
 0x48d   : > { %v1132_v52 = vsel %vm792_vm3, %v2579_v51, 0.0  ;;  %v2581_v53 = vpop.eup %2580 }
 0x48e   : > { %1133 = vadd.xlane.f32.xlu1 %v1132_v52  ;;  %v911_v54 = vsel %vm792_vm3, %v2581_v53, 0.0  ;;  %v2495_v52 = vld [vmem:[#allocation4 + $0xe8] ss:$16 sps:$4 sm:$0xff]  }
 0x492   : > { %918 = vrot.lane.b32.xlu0 %v2895_v50, %s2698_s24  ;;  %912 = vadd.xlane.f32.xlu1 %v911_v54  ;;  %v2503_v54 = vld [vmem:[#allocation4 + $0xcc] ss:$16 sps:$4 sm:$0xff]  }
 0x4a3   : > { %1028 = vrot.lane.b32.xlu1 %v2895_v50, %s2699_s26 }
 0x4a7   : > { %1138 = vrot.lane.b32.xlu1 %v2895_v50, %s2700_s27 }
 0x505   : > { %v1024_v55 = vpop.xlane.xlu0 %1023 }
 0x509   : > { %v919_v56 = vpop.permute.xlu0 %918 }
 0x50a   : > { %v924_v57 = vsel %vm809_vm2, %v919_v56, 0  ;;  %v2501_v56 = vld [vmem:[#allocation4 + $0xc8] ss:$16 sps:$4 sm:$0xff]  }
 0x50b   : > { %2352 = vmatpush3.bf16.msra.mxu1 %v924_v57 }
 0x50c   : > { %2363 = vmatprep.subr.bf16.mxu1 %v2696_v1 }
 0x517   : > { %v1134_v58 = vpop.xlane.xlu1 %1133 }
 0x51b   : > { %v913_v59 = vpop.xlane.xlu1 %912 }
 0x51c   : > { %2582 = vrcp.f32 %v913_v59 }
 0x51d   : > { %2584 = vrcp.f32 %v1024_v55  ;;  %v2498_v55 = vld [vmem:[#allocation4 + $0xc0] ss:$16 sps:$4 sm:$0xff]  }
 0x51e   : > { %2586 = vrcp.f32 %v1134_v58 }
 0x51f   : > { %v1029_v62 = vpop.permute.xlu1 %1028 }
 0x520   : > { %v1034_v3 = vsel %vm809_vm2, %v1029_v62, 0  ;;  %v2509_v62 = vld [vmem:[#allocation4 + $0xac] ss:$16 sps:$4 sm:$0xff]  }
 0x523   : > { %v1139_v4 = vpop.permute.xlu1 %1138 }
 0x524   : > { %v1144_v7 = vsel %vm809_vm2, %v1139_v4, 0  ;;  %v2513_v4 = vld [vmem:[#allocation4 + $0x88] ss:$16 sps:$4 sm:$0xff]  }
 0x529   : > { %v2583_v60 = vpop.eup %2582 }
 0x52a   : > { %v915_v61 = vmul.f32 %v2583_v60, %v2581_v53  ;;  %v2585_v2 = vpop.eup %2584  ;;  %v2497_v53 = vld [vmem:[#allocation4 + $0xec] ss:$16 sps:$4 sm:$0xff]  }
 0x52b   : > { %v1026_v50 = vmul.f32 %v2585_v2, %v2577_v43  ;;  %v2587_v6 = vpop.eup %2586  ;;  %1603 = vmatprep.subr.bf16.mxu0 %v2497_v53  ;;  %v2507_v2 = vld [vmem:[#allocation4 + $0xa8] ss:$16 sps:$4 sm:$0xff]  }
 0x52c   : > { %v916_v63 = vpack.c.bf16 %v915_v61, %v915_v61  ;;  %v1136_v8 = vmul.f32 %v2587_v6, %v2579_v51  ;;  %v2494_v51 = vld [vmem:[#allocation4 + $0xe4] ss:$16 sps:$4 sm:$0xff]   ;;  %v2556_v53 = vld [vmem:[#allocation6 + $0x58] sm:$0xff]  }
 0x52d   : > { %v1027_v5 = vpack.c.bf16 %v1026_v50, %v1026_v50  ;;  %v2506_v61 = vld [vmem:[#allocation4 + $0xa4] ss:$16 sps:$4 sm:$0xff]  }
 0x52e   : > { %2354 = vmatmul.mubr.msk.bf16.vlgmr.msra.gmra.mxu1 %vm805_vm4, %v916_v63  ;;  %v1137_v9 = vpack.c.bf16 %v1136_v8, %v1136_v8  ;;  %v2504_v63 = vld [vmem:[#allocation4 + $0xa0] ss:$16 sps:$4 sm:$0xff]   ;;  %v2512_v50 = vld [vmem:[#allocation4 + $0x84] ss:$16 sps:$4 sm:$0xff]  }
 0x52f   : > { %2364 = vmatpush3.bf16.msra.mxu1 %v1034_v3  ;;  %2365 = vmatprep.mubr.msk.bf16.mxu1 %vm2697_vm0, %v2696_v1  ;;  %v2510_v3 = vld [vmem:[#allocation4 + $0x80] ss:$16 sps:$4 sm:$0xff]   ;;  %v2518_v6 = vld [vmem:[#allocation4 + $0x64] ss:$16 sps:$4 sm:$0xff]  }
 0x530   : > { %2375 = vmatprep.subr.bf16.mxu1 %v2696_v1  ;;  %v2516_v8 = vld [vmem:[#allocation4 + $0x60] ss:$16 sps:$4 sm:$0xff]  }
 0x536   : > { %2366 = vmatmul.mubr.msk.bf16.vlgmr.msra.gmra.mxu1 %vm805_vm4, %v1027_v5  ;;  %v2515_v5 = vld [vmem:[#allocation4 + $0x8c] ss:$16 sps:$4 sm:$0xff]  }
 0x537   : > { %2376 = vmatpush3.bf16.msra.mxu1 %v1144_v7  ;;  %2377 = vmatprep.mubr.msk.bf16.mxu1 %vm2697_vm0, %v2696_v1  ;;  %v2521_v7 = vld [vmem:[#allocation4 + $0x6c] ss:$16 sps:$4 sm:$0xff]  }
 0x538   : > { %1562 = vmatprep.subr.bf16.mxu1 %v2494_v51  ;;  %v2554_v51 = vld [vmem:[#allocation6 + $0x20] sm:$0xff]  }
 0x53e   : > { %2378 = vmatmul.mubr.msk.bf16.vlgmr.msra.gmra.mxu1 %vm805_vm4, %v1137_v9  ;;  %v2519_v9 = vld [vmem:[#allocation4 + $0x68] ss:$16 sps:$4 sm:$0xff]  }
 0x53f   : > { %1594 = vmatprep.mubr.bf16.mxu1 %v2695_v0  ;;  %1563 = vmatpush1.bf16.msra.mxu1 %v2492_v49  ;;  %v2553_v49 = vld [vmem:[#allocation6 + $0xe0] sm:$0xff]  }
 0x5ee   : > { %v960_v17 = vpop.f32.mrf.mxu1 }
 0x5ef   : > { %1187 = vrot.lane.b32.xlu0 %v960_v17, %s2700_s27  ;;  %v2531_v17 = vld [vmem:[#allocation4 + $0x28] ss:$16 sps:$4 sm:$0xff]  }
 0x5f0   : > { %v2355_v18 = vpop.f32.mrf.mxu1 }
 0x5f1   : > { %v2536_v18 = vld [vmem:[#allocation4 + $0x4] ss:$16 sps:$4 sm:$0xff]  }
 0x5f2   : > { %v963_v21 = vpop.f32.mrf.mxu1 }
 0x5f3   : > { %v2534_v21 = vld [vmem:[#allocation4] ss:$16 sps:$4 sm:$0xff]  }
 0x5f4   : > { %v2356_v22 = vpop.f32.mrf.mxu1 }
 0x5f5   : > { %v2537_v22 = vld [vmem:[#allocation4 + $0x8] ss:$16 sps:$4 sm:$0xff]  }
 0x5f6   : > { %v1070_v24 = vpop.f32.mrf.mxu1 }
 0x5f7   : > { %1191 = vrot.lane.b32.xlu1 %v1070_v24, %s2699_s26  ;;  %v2540_v24 = vld [vmem:[#allocation6 + $0x78] sm:$0xff]  }
 0x5f8   : > { %v2367_v25 = vpop.f32.mrf.mxu1 }
 0x5f9   : > { %v2541_v25 = vld [vmem:[#allocation6 + $0xf8] sm:$0xff]  }
 0x5fa   : > { %v1073_v26 = vpop.f32.mrf.mxu1 }
 0x5fc   : > { %v2368_v27 = vpop.f32.mrf.mxu1 }
 0x5fe   : > { %v1180_v28 = vpop.f32.mrf.mxu1 }
 0x5ff   : > { %1195 = vrot.lane.b32.xlu0 %v1180_v28, %s2698_s24  ;;  %s479_s24 = scalar_lea.vmem %s3044_s13, %s2121_s29 }
 0x600   : > { %v2379_v31 = vpop.f32.mrf.mxu1 }
 0x602   : > { %v1183_v33 = vpop.f32.mrf.mxu1 }
 0x603   : > { %v2164_v33 = vld [vmem:[%s3036_s5] ss:$0 sm:$0xff] }
 0x604   : > { %v2380_v34 = vpop.f32.mrf.mxu1 }
 0x661   : > { %v1188_v1 = vpop.permute.xlu0 %1187 }
 0x662   : > { %v1198_v36 = vsel %vm745_vm1, %v2922_v19, %v1188_v1  ;;  %v2165_v1 = vld [vmem:[%s3037_s6] ss:$0 sm:$0xff] }
 0x669   : > { %v1192_v35 = vpop.permute.xlu1 %1191 }
 0x66a   : > { %v1200_v37 = vsel %vm1199_vm5, %v1198_v36, %v1192_v35 }
 0x671   : > { %v1196_v38 = vpop.permute.xlu0 %1195 }
 0x672   : > { %v1202_v39 = vsel %vm1201_vm6, %v1200_v37, %v1196_v38  ;;  %v2542_v37 = vld [vmem:[#allocation6 + $0x38] sm:$0xff]  }
 0x673   : > { %v1203_v40 = vpack.c.bf16 %v1202_v39, %v1202_v39  ;;  %v2543_v38 = vld [vmem:[#allocation6 + $0xb8] sm:$0xff]  }
 0x675   : > { %2398 = vmatmul.mubr.bf16.vlgmr.msra.gmra.mxu0 %v1203_v40  ;;  %v2544_v40 = vld [vmem:[#allocation6 + $0x70] sm:$0xff]  }
 0x676   : > { %1635 = vmatprep.mubr.bf16.mxu0 %v2695_v0  ;;  %v2500_v0 = vld [vmem:[#allocation4 + $0xc4] ss:$16 sps:$4 sm:$0xff]   ;;  %1604 = vmatpush1.bf16.msra.mxu0 %v2495_v52 }
 0x677   : > { %1564 = vmatprep.subr.bf16.mxu1 %v2500_v0  ;;  %1605 = vmatprep.subr.bf16.mxu0 %v2503_v54  ;;  %v2555_v52 = vld [vmem:[#allocation6 + $0xa0] sm:$0xff]   ;;  %v2557_v0 = vld [vmem:[#allocation6 + $0xd8] sm:$0xff]  }
 0x678   : > { %1565 = vmatpush1.bf16.msra.mxu1 %v2498_v55  ;;  %v2558_v54 = vld [vmem:[#allocation6 + $0x18] sm:$0xff]  }
 0x679   : > { %1566 = vmatprep.subr.bf16.mxu1 %v2506_v61  ;;  %v2559_v55 = vld [vmem:[#allocation6 + $0x98] sm:$0xff]   ;;  %v2566_v61 = vld [vmem:[#allocation6 + $0x8] sm:$0xff]  }
 0x67a   : > { %1606 = vmatpush1.bf16.msra.mxu0 %v2501_v56  ;;  %v2560_v56 = vld [vmem:[#allocation6 + $0x50] sm:$0xff]  }
 0x67b   : > { %1607 = vmatprep.subr.bf16.mxu0 %v2509_v62  ;;  %v2567_v62 = vld [vmem:[#allocation6 + $0x88] sm:$0xff]  }
 0x67c   : > { %1567 = vmatpush1.bf16.msra.mxu1 %v2504_v63  ;;  %v2568_v63 = vld [vmem:[#allocation6 + $0x40] sm:$0xff]  }
 0x67d   : > { %1568 = vmatprep.subr.bf16.mxu1 %v2512_v50  ;;  %v2571_v50 = vld [vmem:[#allocation6 + $0x80] sm:$0xff]  }
 0x67e   : > { %1608 = vmatpush1.bf16.msra.mxu0 %v2507_v2  ;;  %v2569_v2 = vld [vmem:[#allocation6 + $0xc0] sm:$0xff]  }
 0x67f   : > { %1609 = vmatprep.subr.bf16.mxu0 %v2515_v5  ;;  %v1396_v5 = vsub.s32 3, %v2871_v29 }
 0x680   : > { %1569 = vmatpush1.bf16.msra.mxu1 %v2510_v3  ;;  %v2570_v3 = vld [vmem:[#allocation6] sm:$0xff]  }
 0x681   : > { %1570 = vmatprep.subr.bf16.mxu1 %v2518_v6 }
 0x682   : > { %1610 = vmatpush1.bf16.msra.mxu0 %v2513_v4  ;;  %v1380_v4 = vld [vmem:[%s3039_s8] sm:$0xf] }
 0x683   : > { %1611 = vmatprep.subr.bf16.mxu0 %v2521_v7  ;;  %v1385_v6 = vrot.slane %v1380_v4, %v519_v30  ;;  %v1393_v7 = vrot.slane %v1380_v4, %v527_v45 }
 0x684   : > { %1571 = vmatpush1.bf16.msra.mxu1 %v2516_v8  ;;  %v1389_v8 = vrot.slane %v1380_v4, %v523_v32 }
 0x685   : > { %1572 = vmatprep.subr.bf16.mxu1 %v2524_v10 }
 0x686   : > { %1612 = vmatpush1.bf16.msra.mxu0 %v2519_v9  ;;  %v1397_v9 = vrot.slane %v1380_v4, %v1396_v5 }
 0x687   : > { %1613 = vmatprep.subr.bf16.mxu0 %v2527_v11 }
 0x688   : > { %1573 = vmatpush1.bf16.msra.mxu1 %v2522_v12 }
 0x689   : > { %1574 = vmatprep.subr.bf16.mxu1 %v2530_v14 }
 0x68a   : > { %1614 = vmatpush1.bf16.msra.mxu0 %v2525_v13 }
 0x68b   : > { %1615 = vmatprep.subr.bf16.mxu0 %v2533_v15 }
 0x68c   : > { %1575 = vmatpush1.bf16.msra.mxu1 %v2528_v16 }
 0x68d   : > { %1576 = vmatprep.subr.bf16.mxu1 %v2536_v18 }
 0x68e   : > { %1616 = vmatpush1.bf16.msra.mxu0 %v2531_v17 }
 0x68f   : > { %1617 = vmatprep.subr.bf16.mxu0 %v2539_v20 }
 0x690   : > { %1577 = vmatpush1.bf16.msra.mxu1 %v2534_v21 }
 0x691   : > { %2269 = vmatprep.subr.bf16.mxu1 %v2540_v24 }
 0x692   : > { %1618 = vmatpush1.bf16.msra.mxu0 %v2537_v22 }
 0x693   : > { %2291 = vmatprep.subr.bf16.mxu0 %v2541_v25 }
 0x735   : > { %v1309_v42 = vpop.f32.mrf.mxu0 }
 0x736   : > { %v1310_v43 = vadd.f32 %v2155_v41, %v1309_v42  ;;  %v2545_v41 = vld [vmem:[#allocation6 + $0xf0] sm:$0xff]  }
 0x737   : > { %v2399_v44 = vpop.f32.mrf.mxu0  ;;  %v2546_v42 = vld [vmem:[#allocation6 + $0x30] sm:$0xff]  }
 0x738   : > { %v1315_v46 = vadd.f32 %v1310_v43, %v2855_v23  ;;  %v2547_v43 = vld [vmem:[#allocation6 + $0xb0] sm:$0xff]   ;;  %v2548_v44 = vld [vmem:[#allocation6 + $0x68] sm:$0xff]  }
 0x739   : > { %v1312_v47 = vpop.f32.mrf.mxu0 }
 0x73a   : > { %v1319_v19 = vsel %vm1318_vm7, %v1315_v46, 0.0  ;;  %v2550_v47 = vld [vmem:[#allocation6 + $0x28] sm:$0xff]  }
 0x73b   : > { %1320 = vadd.xlane.f32.xlu1 %v1319_v19  ;;  %v2400_v48 = vpop.f32.mrf.mxu0  ;;  %v2551_v19 = vld [vmem:[#allocation6 + $0xa8] sm:$0xff]  }
 0x73c   : > { %v2552_v48 = vld [vmem:[#allocation6 + $0x60] sm:$0xff]  }
 0x7c4   : > { %v1321_v23 = vpop.xlane.xlu1 %1320 }
 0x7c5   : > { %v1323_v57 = vmul.f32 0.0078125, %v1321_v23  ;;  %v2561_v23 = vld [vmem:[#allocation6 + $0xd0] sm:$0xff]  }
 0x7c7   : > { %v1324_v58 = vsub.f32 %v1315_v46, %v1323_v57  ;;  %v2549_v46 = vld [vmem:[#allocation6 + $0xe8] sm:$0xff]   ;;  %v2562_v57 = vld [vmem:[#allocation6 + $0x10] sm:$0xff]  }
 0x7c9   : > { %v1325_v59 = vmul.f32 %v1324_v58, %v1324_v58 }
 0x7cb   : > { %v1326_v60 = vsel %vm1318_vm7, %v1325_v59, 0.0  ;;  %v2564_v59 = vld [vmem:[#allocation6 + $0x48] sm:$0xff]  }
 0x7cc   : > { %1327 = vadd.xlane.f32.xlu0 %v1326_v60  ;;  %v2565_v60 = vld [vmem:[#allocation6 + $0xc8] sm:$0xff]  }
 0x855   : > { %v1328_v26 = vpop.xlane.xlu0 %1327 }
 0x856   : > { %v1329_v27 = vmul.f32 0.0078125, %v1328_v26 }
 0x858   : > { %v1330_v28 = vadd.f32 1e-05, %v1329_v27 }
 0x85a   : > { %2588 = vrsqrt.f32 %v1330_v28 }
 0x867   : > { %v2589_v31 = vpop.eup %2588 }
 0x868   : > { %v1332_v34 = vmul.f32 %v2589_v31, %v1324_v58  ;;  %v2563_v58 = vld [vmem:[#allocation6 + $0x90] sm:$0xff]  }
 0x86a   : > { %v1339_v35 = vmul.f32 %v2164_v33, %v1332_v34  ;;  %v2198_v33 = vld [vmem:[%s3041_s10] ss:$0 sm:$0xff] }
 0x86c   : > { %v2997_v36 = vadd.f32 %v2165_v1, %v1339_v35 }
 0x86e   : > { %v1347_v39 = vpack.c.bf16 %v2997_v36, %v2997_v36 }
 0x870   : > { %1595 = vmatmul.mubr.bf16.vlgmr.msra.gmra.mxu1 %v1347_v39  ;;  %1636 = vmatmul.mubr.bf16.vlgmr.msra.gmra.mxu0 %v1347_v39 }
 0x871   : > { %2270 = vmatpush3.bf16.msra.mxu1 %v2542_v37  ;;  %2292 = vmatpush3.bf16.msra.mxu0 %v2543_v38 }
 0x872   : > { %2271 = vmatprep.subr.bf16.mxu1 %v2544_v40  ;;  %2293 = vmatprep.subr.bf16.mxu0 %v2545_v41 }
 0x875   : > { %2272 = vmatpush3.bf16.msra.mxu1 %v2546_v42  ;;  %2294 = vmatpush3.bf16.msra.mxu0 %v2547_v43 }
 0x876   : > { %2273 = vmatprep.subr.bf16.mxu1 %v2548_v44  ;;  %2295 = vmatprep.subr.bf16.mxu0 %v2549_v46 }
 0x879   : > { %2274 = vmatpush3.bf16.msra.mxu1 %v2550_v47  ;;  %2296 = vmatpush3.bf16.msra.mxu0 %v2551_v19 }
 0x87a   : > { %2275 = vmatprep.subr.bf16.mxu1 %v2552_v48  ;;  %2297 = vmatprep.subr.bf16.mxu0 %v2553_v49 }
 0x87d   : > { %2276 = vmatpush3.bf16.msra.mxu1 %v2554_v51  ;;  %2298 = vmatpush3.bf16.msra.mxu0 %v2555_v52 }
 0x87e   : > { %2277 = vmatprep.subr.bf16.mxu1 %v2556_v53  ;;  %2299 = vmatprep.subr.bf16.mxu0 %v2557_v0 }
 0x881   : > { %2278 = vmatpush3.bf16.msra.mxu1 %v2558_v54  ;;  %2300 = vmatpush3.bf16.msra.mxu0 %v2559_v55 }
 0x882   : > { %2279 = vmatprep.subr.bf16.mxu1 %v2560_v56  ;;  %2301 = vmatprep.subr.bf16.mxu0 %v2561_v23  ;;  %v2232_v56 = vld [vmem:[%s3043_s12] ss:$0 sm:$0xff] }
 0x885   : > { %2280 = vmatpush3.bf16.msra.mxu1 %v2562_v57  ;;  %2302 = vmatpush3.bf16.msra.mxu0 %v2563_v58 }
 0x886   : > { %2281 = vmatprep.subr.bf16.mxu1 %v2564_v59  ;;  %2303 = vmatprep.subr.bf16.mxu0 %v2565_v60 }
 0x889   : > { %2282 = vmatpush3.bf16.msra.mxu1 %v2566_v61  ;;  %2304 = vmatpush3.bf16.msra.mxu0 %v2567_v62 }
 0x88a   : > { %2283 = vmatprep.subr.bf16.mxu1 %v2568_v63  ;;  %2305 = vmatprep.subr.bf16.mxu0 %v2569_v2 }
 0x88d   : > { %2284 = vmatpush3.bf16.msra.mxu1 %v2570_v3  ;;  %2306 = vmatpush3.bf16.msra.mxu0 %v2571_v50 }
 0x930   : > { %v1596_v10 = vpop.f32.mrf.mxu1  ;;  %v1637_v11 = vpop.f32.mrf.mxu0 }
 0x931   : > { %v1597_v12 = vadd.f32 %v1596_v10, %v1385_v6  ;;  %v1638_v13 = vadd.f32 %v1637_v11, %v1393_v7 }
 0x932   : > { %v1598_v14 = vpop.f32.mrf.mxu1  ;;  %v1639_v15 = vpop.f32.mrf.mxu0 }
 0x933   : > { %v1599_v16 = vadd.f32 %v1598_v14, %v1389_v8  ;;  %v1640_v17 = vadd.f32 %v1639_v15, %v1397_v9  ;;  %v1644_v18 = vmax.f32 %v1597_v12, 0.0  ;;  %v1646_v20 = vmax.f32 %v1638_v13, 0.0 }
 0x934   : > { %v1600_v21 = vpop.f32.mrf.mxu1  ;;  %v1641_v22 = vpop.f32.mrf.mxu0 }
 0x935   : > { %v1645_v30 = vmax.f32 %v1599_v16, 0.0  ;;  %v1647_v24 = vmax.f32 %v1640_v17, 0.0  ;;  %v1648_v32 = vpack.c.bf16 %v1644_v18, %v1644_v18  ;;  %v1650_v27 = vpack.c.bf16 %v1646_v20, %v1646_v20 }
 0x936   : > { %v1601_v25 = vpop.f32.mrf.mxu1  ;;  %v1642_v45 = vpop.f32.mrf.mxu0 }
 0x937   : > { %v1649_v26 = vpack.c.bf16 %v1645_v30, %v1645_v30  ;;  %v1651_v29 = vpack.c.bf16 %v1647_v24, %v1647_v24 }
 0x939   : > { %1947 = vmatprep.mubr.bf16.mxu1 %v1649_v26  ;;  %1987 = vmatprep.mubr.bf16.mxu0 %v1651_v29 }
 0x93a   : > { %1948 = vmatmul.mubr.bf16.vlgmr.msra.gmra.mxu1 %v1648_v32  ;;  %1988 = vmatmul.mubr.bf16.vlgmr.msra.gmra.mxu0 %v1650_v27 }
 0x9fa   : > { %v2285_v28 = vpop.f32.mrf.mxu1  ;;  %v2307_v31 = vpop.f32.mrf.mxu0 }
 0x9fc   : > { %v2286_v34 = vpop.f32.mrf.mxu1  ;;  %v2308_v1 = vpop.f32.mrf.mxu0 }
 0x9fd   : > { %v2287_v35 = vadd.f32 %v2286_v34, %v2285_v28  ;;  %v2309_v40 = vadd.f32 %v2308_v1, %v2307_v31 }
 0x9fe   : > { %v2288_v37 = vpop.f32.mrf.mxu1  ;;  %v2310_v38 = vpop.f32.mrf.mxu0 }
 0x9ff   : > { %v1950_v39 = vadd.f32 %v2287_v35, %v2198_v33 }
 0xa00   : > { %v2289_v41 = vpop.f32.mrf.mxu1  ;;  %v2311_v42 = vpop.f32.mrf.mxu0 }
 0xa01   : > { %v1990_v43 = vadd.f32 %v2309_v40, %v1950_v39 }
 0xa03   : > { %v1995_v44 = vadd.f32 %v1990_v43, %v2997_v36  ;;  %v2231_v36 = vld [vmem:[%s3042_s11] ss:$0 sm:$0xff] }
 0xa05   : > { %v1998_v46 = vsel %vm1318_vm7, %v1995_v44, 0.0 }
 0xa06   : > { %1999 = vadd.xlane.f32.xlu0 %v1998_v46 }
 0xa8f   : > { %v2000_v47 = vpop.xlane.xlu0 %1999 }
 0xa90   : > { %v2001_v19 = vmul.f32 0.0078125, %v2000_v47 }
 0xa92   : > { %v2002_v48 = vsub.f32 %v1995_v44, %v2001_v19 }
 0xa94   : > { %v2003_v49 = vmul.f32 %v2002_v48, %v2002_v48 }
 0xa96   : > { %v2004_v51 = vsel %vm1318_vm7, %v2003_v49, 0.0 }
 0xa97   : > { %2005 = vadd.xlane.f32.xlu1 %v2004_v51 }
 0xb20   : > { %v2006_v52 = vpop.xlane.xlu1 %2005 }
 0xb21   : > { %v2007_v53 = vmul.f32 0.0078125, %v2006_v52 }
 0xb23   : > { %v2008_v0 = vadd.f32 1e-05, %v2007_v53 }
 0xb25   : > { %2590 = vrsqrt.f32 %v2008_v0 }
 0xb32   : > { %v2591_v54 = vpop.eup %2590 }
 0xb33   : > { %v2010_v55 = vmul.f32 %v2591_v54, %v2002_v48 }
 0xb35   : > { %v2017_v23 = vmul.f32 %v2231_v36, %v2010_v55 }
 0xb37   : > { %v2024_v57 = vadd.f32 %v2232_v56, %v2017_v23 }
 0xb39   : > { %2025 = vst [vmem:[%s479_s24] sm:$0xf] %v2024_v57 }
 0xb3a PF: > { %s25_s25 = sadd.s32 1, %s2684_s25  }
 0xb3b   : > { %p22_p2 = scmp.ge.s32.totalorder %s25_s25, 4  }
 0xb3d   :  { %24 = sbr.rel (!%p22_p2) target bundleno = 2 (0x2), region = 115 }
 0xb42   :  { %2045 = vsyncpa [#allocation3], 1 }
 0xb43   :  { %2047 = vsyncpa [#allocation3 + $0x1], 1 }
 0xb44   :  { %2048 = vsyncpa [#allocation5], 1 }

// kernel: vqvae_forward.13
= control target key start
LH: loop header
LB: loop body
LE: loop exit
PB: predicated region body
PF: predicated region fallthrough
CT: control target
= control target key end

     0   :  { %v182_v0 = vmov 0.0   ;;  %vm183_vm0 = vmmov 0   ;;  %vm128_vm1 = vcmask 523264   ;;  %s237_s1 = inlined_call_operand.vmem [shape: bf16[128,64], index: 1, kind: input, shape index: {}]   ;;  %s238_s0 = inlined_call_operand.vmem [shape: f32[8,128], index: 0, kind: input, shape index: {}]   ;;  %s239_s2 = inlined_call_operand.vmem [shape: f32[1,64], index: 2, kind: input, shape index: {}]   ;;  %s240_s3 = inlined_call_operand.vmem [shape: f32[8,64], index: 3, kind: output, shape index: {}]  }
   0x1   :  { %152 = vmatprep.subr.bf16.mxu0 %v182_v0  ;;  %v174_v1 = vld [vmem:[%s237_s1 + $0x38] sm:$0xff]   ;;  %168 = vmatprep.mubr.msk.bf16.mxu0 %vm183_vm0, %v182_v0  ;;  %v175_v2 = vld [vmem:[%s237_s1 + $0x30] sm:$0xff]   ;;  %v176_v3 = vld [vmem:[%s237_s1 + $0x28] sm:$0xff]  }
   0x2   :  { %153 = vmatpush3.bf16.msra.mxu0 %v174_v1  ;;  %v177_v4 = vld [vmem:[%s237_s1 + $0x20] sm:$0xff]   ;;  %v178_v5 = vld [vmem:[%s237_s1 + $0x18] sm:$0xff]   ;;  %v179_v6 = vld [vmem:[%s237_s1 + $0x10] sm:$0xff]  }
   0x3   :  { %154 = vmatprep.subr.bf16.mxu0 %v182_v0  ;;  %v180_v7 = vld [vmem:[%s237_s1 + $0x8] sm:$0xff]   ;;  %v181_v8 = vld [vmem:[%s237_s1] sm:$0xff]  }
   0x4   :  { %v15_v9 = vld [vmem:[%s238_s0] sm:$0xff] }
   0x5   :  { %v16_v10 = vpack.c.bf16 %v15_v9, %v15_v9  ;;  %v134_v11 = vld [vmem:[%s239_s2] ss:$0 sm:$0xff] }
   0x6   :  { %155 = vmatpush3.bf16.msra.mxu0 %v175_v2 }
   0x7   :  { %156 = vmatprep.subr.bf16.mxu0 %v182_v0 }
   0xa   :  { %157 = vmatpush3.bf16.msra.mxu0 %v176_v3 }
   0xb   :  { %158 = vmatprep.subr.bf16.mxu0 %v182_v0 }
   0xe   :  { %159 = vmatpush3.bf16.msra.mxu0 %v177_v4 }
   0xf   :  { %160 = vmatprep.subr.bf16.mxu0 %v182_v0 }
  0x12   :  { %161 = vmatpush3.bf16.msra.mxu0 %v178_v5 }
  0x13   :  { %162 = vmatprep.subr.bf16.mxu0 %v182_v0 }
  0x16   :  { %163 = vmatpush3.bf16.msra.mxu0 %v179_v6 }
  0x17   :  { %164 = vmatprep.subr.bf16.mxu0 %v182_v0 }
  0x1a   :  { %165 = vmatpush3.bf16.msra.mxu0 %v180_v7 }
  0x1b   :  { %166 = vmatprep.subr.bf16.mxu0 %v182_v0 }
  0x1e   :  { %167 = vmatpush3.bf16.msra.mxu0 %v181_v8 }
  0x21   :  { %169 = vmatmul.mubr.bf16.vlgmr.msra.gmra.mxu0 %v16_v10 }
  0xe1   :  { %v122_v12 = vpop.f32.mrf.mxu0 }
  0xe2   :  { %v123_v13 = vadd.f32 %v134_v11, %v122_v12 }
  0xe3   :  { %v170_v14 = vpop.f32.mrf.mxu0 }
  0xe4   :  { %129 = vst.msk [vmem:[%s240_s3] sm:$0xff] %vm128_vm1, %v123_v13 }
  0xe5   :  { %v125_v15 = vpop.f32.mrf.mxu0 }
  0xe7   :  { %v171_v16 = vpop.f32.mrf.mxu0 }

</bundles_post_ra>
